<compile_context>
chip_gen: v7x
topology: tpu7x:2x2x1
jax: 0.10.0
libtpu: 0.0.40
codegen_flags: <defaults>
</compile_context>

<pallas_src>
import functools

import jax
import jax.numpy as jnp
from jax.experimental import pallas as pl
from jax.experimental.pallas import tpu as pltpu


_VMEM_BUDGET_BYTES = 48 * 1024 * 1024   # conservative tile budget (fits v7x 64 MiB VMEM)
_VMEM_LIMIT_BYTES = 64 * 1024 * 1024    # raised scoped limit (<= physical on v5e/v6e/v7x)


def _adapter_kernel(x_ref, w1_ref, b1_ref, w2_ref, b2_ref, o_ref):
    x = x_ref[...]                                   # native dtype (f32 or bf16)

    # fc1 on the MXU: native-dtype operands, f32 accumulation.
    h = jnp.dot(x, w1_ref[...], preferred_element_type=jnp.float32)
    h = h + b1_ref[...].astype(jnp.float32)

    # Exact (erf-based) GELU in f32 — matches torch.nn.GELU() default.
    h = 0.5 * h * (1.0 + jax.lax.erf(h * jnp.float32(0.7071067811865476)))

    # fc2 on the MXU: cast activation to the weight dtype so bf16 weights get a
    # bf16 feed (no-op for f32), f32 accumulation.
    h = h.astype(w2_ref.dtype)
    y = jnp.dot(h, w2_ref[...], preferred_element_type=jnp.float32)
    y = y + b2_ref[...].astype(jnp.float32)

    # Skip connection: residual add in f32, single cast to output dtype.
    o_ref[...] = (x.astype(jnp.float32) + y).astype(o_ref.dtype)


def _round_up(v, m):
    return ((v + m - 1) // m) * m


def _pick_tm(M, D, Dh, itemsize, tm_request):
    """Pick the M-tile: multiple of 16 (bf16-safe), clamped to the VMEM budget."""
    tm = min(_round_up(tm_request, 16), _round_up(M, 16))
    # Weights/biases conservatively counted as double-buffered.
    w_bytes = 2 * (D * Dh + Dh * D + Dh + D) * itemsize
    while tm > 16:
        io_bytes = 2 * 2 * tm * D * itemsize         # x + out, double-buffered
        f32_live = tm * (D + Dh) * 4                 # rough f32 epilogue intermediates
        if w_bytes + io_bytes + f32_live <= _VMEM_BUDGET_BYTES:
            break
        tm = max(16, _round_up(tm // 2, 16))
    return tm


@functools.lru_cache(maxsize=None)
def _build_adapter_call(M, D, Dh, tm, dtype_name, single_buffer_weights):
    dtype = jnp.dtype(dtype_name)

    def const_spec(shape):
        # Grid-invariant operand: fetched once; single-buffer it when supported.
        if single_buffer_weights:
            return pl.BlockSpec(shape, lambda i: (0, 0),
                                pipeline_mode=pl.Buffered(1))
        return pl.BlockSpec(shape, lambda i: (0, 0))

    grid = (pl.cdiv(M, tm),)
    return pl.pallas_call(
        _adapter_kernel,
        out_shape=jax.ShapeDtypeStruct((M, D), dtype),
        grid_spec=pltpu.PrefetchScalarGridSpec(
            num_scalar_prefetch=0,
            grid=grid,
            in_specs=[
                pl.BlockSpec((tm, D), lambda i: (i, 0)),   # x tile (pipelined)
                const_spec((D, Dh)),                       # W1 (resident)
                const_spec((1, Dh)),                       # b1
                const_spec((Dh, D)),                       # W2 (resident)
                const_spec((1, D)),                        # b2
            ],
            out_specs=pl.BlockSpec((tm, D), lambda i: (i, 0)),
        ),
        compiler_params=pltpu.CompilerParams(
            dimension_semantics=("parallel",),
            vmem_limit_bytes=_VMEM_LIMIT_BYTES,
        ),
    )


_single_buffer_supported = None  # decided on first call (pl.Buffered(1) probe)


def adapter_forward(x, w1, b1, w2, b2, *, tm=512):
    """x: (B, N, D) -> (B, N, D) = x + fc2(gelu(fc1(x)))."""
    global _single_buffer_supported
    B, N, D = x.shape
    Dh = w1.shape[1]
    M = B * N
    x2d = x.reshape(M, D)
    tm_eff = _pick_tm(M, D, Dh, jnp.dtype(x.dtype).itemsize, tm)

    attempts = ((True, False) if _single_buffer_supported is None
                else (_single_buffer_supported,))
    err = None
    for single in attempts:
        try:
            fn = _build_adapter_call(M, D, Dh, tm_eff,
                                     jnp.dtype(x.dtype).name, single)
            out = fn(x2d, w1, b1, w2, b2)
            _single_buffer_supported = single
            return out.reshape(B, N, D)
        except Exception as e:  # pl.Buffered(1) unsupported -> default double buffering
            err = e
    raise err


def adapter_reference(x, w1, b1, w2, b2):
    """Pure-JAX reference mirroring the kernel's dtype handling."""
    h = jnp.dot(x, w1, preferred_element_type=jnp.float32) + b1[0].astype(jnp.float32)
    h = 0.5 * h * (1.0 + jax.lax.erf(h * jnp.float32(0.7071067811865476)))
    h = h.astype(w2.dtype)
    y = jnp.dot(h, w2, preferred_element_type=jnp.float32) + b2[0].astype(jnp.float32)
    return (x.astype(jnp.float32) + y).astype(x.dtype)


if __name__ == "__main__":
    # Small shapes consistent with the module: tokens (B, N, D), mlp_ratio=0.25.
    # D = 128 keeps the output lane axis dense; M = 2048 gives a multi-step
    # parallel grid (4 steps at tm=512) so both v7x TensorCores get work.
    B, N, D = 2, 1024, 128
    Dh = int(D * 0.25)          # 32

    key = jax.random.PRNGKey(0)
    kx, kw1, kb1, kw2, kb2 = jax.random.split(key, 5)

    x = jax.random.normal(kx, (B, N, D), dtype=jnp.float32)
    # nn.Linear parameters stored as (in, out) so the kernel computes x @ W + b.
    w1 = jax.random.normal(kw1, (D, Dh), dtype=jnp.float32) * 0.1
    b1 = jax.random.normal(kb1, (1, Dh), dtype=jnp.float32) * 0.1
    w2 = jax.random.normal(kw2, (Dh, D), dtype=jnp.float32) * 0.1
    b2 = jax.random.normal(kb2, (1, D), dtype=jnp.float32) * 0.1

    # f32 path (tolerance accounts for TPU default-precision matmul passes).
    out = jax.block_until_ready(adapter_forward(x, w1, b1, w2, b2))
    ref = adapter_reference(x, w1, b1, w2, b2)
    assert out.shape == (B, N, D)
    assert jnp.allclose(out, ref, atol=2e-2, rtol=2e-2)

    # bf16 path: native bf16 MXU feeds with f32 accumulation/epilogue.
    xb, w1b, b1b, w2b, b2b = (a.astype(jnp.bfloat16) for a in (x, w1, b1, w2, b2))
    outb = jax.block_until_ready(adapter_forward(xb, w1b, b1b, w2b, b2b))
    refb = adapter_reference(xb, w1b, b1b, w2b, b2b)
    assert outb.shape == (B, N, D) and outb.dtype == jnp.bfloat16
    assert jnp.allclose(outb.astype(jnp.float32), refb.astype(jnp.float32),
                        atol=5e-2, rtol=5e-2)

    print("KERNEL_OK")
</pallas_src>

<mosaic_0001>
module attributes {stable_mosaic.version = 11 : i64} {
  func.func @_adapter_kernel(%arg0: i32, %arg1: memref<512x128xf32, #tpu.memory_space<vmem>>, %arg2: memref<128x32xf32, #tpu.memory_space<vmem>>, %arg3: memref<1x32xf32, #tpu.memory_space<vmem>>, %arg4: memref<32x128xf32, #tpu.memory_space<vmem>>, %arg5: memref<1x128xf32, #tpu.memory_space<vmem>>, %arg6: memref<512x128xf32, #tpu.memory_space<vmem>>) attributes {dimension_semantics = [#tpu.dimension_semantics<parallel>], iteration_bounds = array<i64: 4>, scalar_prefetch = 0 : i64, scratch_operands = 0 : i64, tpu.core_type = #tpu.core_type<tc>, window_params = [{transform_indices = @transform_0, window_bounds = array<i64: 512, 128>}, {pipeline_mode = #tpu.pipeline_mode<synchronous>, transform_indices = @transform_1, window_bounds = array<i64: 128, 32>}, {pipeline_mode = #tpu.pipeline_mode<synchronous>, transform_indices = @transform_2, window_bounds = array<i64: 1, 32>}, {pipeline_mode = #tpu.pipeline_mode<synchronous>, transform_indices = @transform_3, window_bounds = array<i64: 32, 128>}, {pipeline_mode = #tpu.pipeline_mode<synchronous>, transform_indices = @transform_4, window_bounds = array<i64: 1, 128>}, {transform_indices = @transform_5, window_bounds = array<i64: 512, 128>}]} {
    %c0 = arith.constant 0 : index
    %c0_0 = arith.constant 0 : index
    %0 = vector.load %arg1[%c0, %c0_0] : memref<512x128xf32, #tpu.memory_space<vmem>>, vector<512x128xf32>
    %c0_1 = arith.constant 0 : index
    %c0_2 = arith.constant 0 : index
    %1 = vector.load %arg2[%c0_1, %c0_2] : memref<128x32xf32, #tpu.memory_space<vmem>>, vector<128x32xf32>
    %cst = arith.constant dense<0.000000e+00> : vector<512x32xf32>
    %2 = tpu.matmul %0, %1, %cst {dimension_numbers = #tpu.dot_dimension_numbers<[1], [0], [0], [1], [0, 0, 1, 1], [], []>} : vector<512x128xf32>, vector<128x32xf32>, vector<512x32xf32> -> vector<512x32xf32>
    %c0_3 = arith.constant 0 : index
    %c0_4 = arith.constant 0 : index
    %3 = vector.load %arg3[%c0_3, %c0_4] : memref<1x32xf32, #tpu.memory_space<vmem>>, vector<1x32xf32>
    %4 = vector.broadcast %3 : vector<1x32xf32> to vector<512x32xf32>
    %5 = arith.addf %2, %4 : vector<512x32xf32>
    %cst_5 = arith.constant 5.000000e-01 : f32
    %6 = vector.broadcast %cst_5 : f32 to vector<512x32xf32>
    %7 = arith.mulf %6, %5 : vector<512x32xf32>
    %cst_6 = arith.constant 0.707106769 : f32
    %8 = vector.broadcast %cst_6 : f32 to vector<512x32xf32>
    %9 = arith.mulf %5, %8 : vector<512x32xf32>
    %10 = math.erf %9 : vector<512x32xf32>
    %cst_7 = arith.constant 1.000000e+00 : f32
    %11 = vector.broadcast %cst_7 : f32 to vector<512x32xf32>
    %12 = arith.addf %11, %10 : vector<512x32xf32>
    %13 = arith.mulf %7, %12 : vector<512x32xf32>
    %c0_8 = arith.constant 0 : index
    %c0_9 = arith.constant 0 : index
    %14 = vector.load %arg4[%c0_8, %c0_9] : memref<32x128xf32, #tpu.memory_space<vmem>>, vector<32x128xf32>
    %cst_10 = arith.constant dense<0.000000e+00> : vector<512x128xf32>
    %15 = tpu.matmul %13, %14, %cst_10 {dimension_numbers = #tpu.dot_dimension_numbers<[1], [0], [0], [1], [0, 0, 1, 1], [], []>} : vector<512x32xf32>, vector<32x128xf32>, vector<512x128xf32> -> vector<512x128xf32>
    %c0_11 = arith.constant 0 : index
    %c0_12 = arith.constant 0 : index
    %16 = vector.load %arg5[%c0_11, %c0_12] : memref<1x128xf32, #tpu.memory_space<vmem>>, vector<1x128xf32>
    %17 = vector.broadcast %16 : vector<1x128xf32> to vector<512x128xf32>
    %18 = arith.addf %15, %17 : vector<512x128xf32>
    %19 = arith.addf %0, %18 : vector<512x128xf32>
    %c0_13 = arith.constant 0 : index
    %c0_14 = arith.constant 0 : index
    %20 = vector.load %arg6[%c0_13, %c0_14] : memref<512x128xf32, #tpu.memory_space<vmem>>, vector<512x128xf32>
    tpu.vector_store %arg6[%c0_13, %c0_14], %19 {strides = array<i32>} : memref<512x128xf32, #tpu.memory_space<vmem>>, vector<512x128xf32>,
    return
  }
  func.func @transform_0(%arg0: i32) -> (i32, i32) {
    %c0_i32 = arith.constant 0 : i32
    %c0_i32_0 = arith.constant 0 : i32
    return %arg0, %c0_i32 : i32, i32
  }
  func.func @transform_1(%arg0: i32) -> (i32, i32) {
    %c0_i32 = arith.constant 0 : i32
    %c0_i32_0 = arith.constant 0 : i32
    %c0_i32_1 = arith.constant 0 : i32
    return %c0_i32, %c0_i32_0 : i32, i32
  }
  func.func @transform_2(%arg0: i32) -> (i32, i32) {
    %c0_i32 = arith.constant 0 : i32
    %c0_i32_0 = arith.constant 0 : i32
    %c0_i32_1 = arith.constant 0 : i32
    return %c0_i32, %c0_i32_0 : i32, i32
  }
  func.func @transform_3(%arg0: i32) -> (i32, i32) {
    %c0_i32 = arith.constant 0 : i32
    %c0_i32_0 = arith.constant 0 : i32
    %c0_i32_1 = arith.constant 0 : i32
    return %c0_i32, %c0_i32_0 : i32, i32
  }
  func.func @transform_4(%arg0: i32) -> (i32, i32) {
    %c0_i32 = arith.constant 0 : i32
    %c0_i32_0 = arith.constant 0 : i32
    %c0_i32_1 = arith.constant 0 : i32
    return %c0_i32, %c0_i32_0 : i32, i32
  }
  func.func @transform_5(%arg0: i32) -> (i32, i32) {
    %c0_i32 = arith.constant 0 : i32
    %c0_i32_0 = arith.constant 0 : i32
    return %arg0, %c0_i32 : i32, i32
  }
}

module attributes {stable_mosaic.version = 11 : i64} {
  func.func @_adapter_kernel(%arg0: i32, %arg1: memref<512x128xf32, #tpu.memory_space<vmem>>, %arg2: memref<128x32xf32, #tpu.memory_space<vmem>>, %arg3: memref<1x32xf32, #tpu.memory_space<vmem>>, %arg4: memref<32x128xf32, #tpu.memory_space<vmem>>, %arg5: memref<1x128xf32, #tpu.memory_space<vmem>>, %arg6: memref<512x128xf32, #tpu.memory_space<vmem>>) attributes {dimension_semantics = [#tpu.dimension_semantics<parallel>], iteration_bounds = array<i64: 4>, scalar_prefetch = 0 : i64, scratch_operands = 0 : i64, tpu.core_type = #tpu.core_type<tc>, window_params = [{transform_indices = @transform_0, window_bounds = array<i64: 512, 128>}, {pipeline_mode = #tpu.pipeline_mode<synchronous>, transform_indices = @transform_1, window_bounds = array<i64: 128, 32>}, {pipeline_mode = #tpu.pipeline_mode<synchronous>, transform_indices = @transform_2, window_bounds = array<i64: 1, 32>}, {pipeline_mode = #tpu.pipeline_mode<synchronous>, transform_indices = @transform_3, window_bounds = array<i64: 32, 128>}, {pipeline_mode = #tpu.pipeline_mode<synchronous>, transform_indices = @transform_4, window_bounds = array<i64: 1, 128>}, {transform_indices = @transform_5, window_bounds = array<i64: 512, 128>}]} {
    %c0 = arith.constant 0 : index
    %c0_0 = arith.constant 0 : index
    %0 = vector.load %arg1[%c0, %c0_0] : memref<512x128xf32, #tpu.memory_space<vmem>>, vector<512x128xf32>
    %c0_1 = arith.constant 0 : index
    %c0_2 = arith.constant 0 : index
    %1 = vector.load %arg2[%c0_1, %c0_2] : memref<128x32xf32, #tpu.memory_space<vmem>>, vector<128x32xf32>
    %cst = arith.constant dense<0.000000e+00> : vector<512x32xf32>
    %2 = tpu.matmul %0, %1, %cst {dimension_numbers = #tpu.dot_dimension_numbers<[1], [0], [0], [1], [0, 0, 1, 1], [], []>} : vector<512x128xf32>, vector<128x32xf32>, vector<512x32xf32> -> vector<512x32xf32>
    %c0_3 = arith.constant 0 : index
    %c0_4 = arith.constant 0 : index
    %3 = vector.load %arg3[%c0_3, %c0_4] : memref<1x32xf32, #tpu.memory_space<vmem>>, vector<1x32xf32>
    %4 = vector.broadcast %3 : vector<1x32xf32> to vector<512x32xf32>
    %5 = arith.addf %2, %4 : vector<512x32xf32>
    %cst_5 = arith.constant 5.000000e-01 : f32
    %6 = vector.broadcast %cst_5 : f32 to vector<512x32xf32>
    %7 = arith.mulf %6, %5 : vector<512x32xf32>
    %cst_6 = arith.constant 0.707106769 : f32
    %8 = vector.broadcast %cst_6 : f32 to vector<512x32xf32>
    %9 = arith.mulf %5, %8 : vector<512x32xf32>
    %10 = math.erf %9 : vector<512x32xf32>
    %cst_7 = arith.constant 1.000000e+00 : f32
    %11 = vector.broadcast %cst_7 : f32 to vector<512x32xf32>
    %12 = arith.addf %11, %10 : vector<512x32xf32>
    %13 = arith.mulf %7, %12 : vector<512x32xf32>
    %c0_8 = arith.constant 0 : index
    %c0_9 = arith.constant 0 : index
    %14 = vector.load %arg4[%c0_8, %c0_9] : memref<32x128xf32, #tpu.memory_space<vmem>>, vector<32x128xf32>
    %cst_10 = arith.constant dense<0.000000e+00> : vector<512x128xf32>
    %15 = tpu.matmul %13, %14, %cst_10 {dimension_numbers = #tpu.dot_dimension_numbers<[1], [0], [0], [1], [0, 0, 1, 1], [], []>} : vector<512x32xf32>, vector<32x128xf32>, vector<512x128xf32> -> vector<512x128xf32>
    %c0_11 = arith.constant 0 : index
    %c0_12 = arith.constant 0 : index
    %16 = vector.load %arg5[%c0_11, %c0_12] : memref<1x128xf32, #tpu.memory_space<vmem>>, vector<1x128xf32>
    %17 = vector.broadcast %16 : vector<1x128xf32> to vector<512x128xf32>
    %18 = arith.addf %15, %17 : vector<512x128xf32>
    %19 = arith.addf %0, %18 : vector<512x128xf32>
    %c0_13 = arith.constant 0 : index
    %c0_14 = arith.constant 0 : index
    %20 = vector.load %arg6[%c0_13, %c0_14] : memref<512x128xf32, #tpu.memory_space<vmem>>, vector<512x128xf32>
    tpu.vector_store %arg6[%c0_13, %c0_14], %19 {strides = array<i32>} : memref<512x128xf32, #tpu.memory_space<vmem>>, vector<512x128xf32>,
    return
  }
  func.func @transform_0(%arg0: i32) -> (i32, i32) {
    %c0_i32 = arith.constant 0 : i32
    %c0_i32_0 = arith.constant 0 : i32
    return %arg0, %c0_i32 : i32, i32
  }
  func.func @transform_1(%arg0: i32) -> (i32, i32) {
    %c0_i32 = arith.constant 0 : i32
    %c0_i32_0 = arith.constant 0 : i32
    %c0_i32_1 = arith.constant 0 : i32
    return %c0_i32, %c0_i32_0 : i32, i32
  }
  func.func @transform_2(%arg0: i32) -> (i32, i32) {
    %c0_i32 = arith.constant 0 : i32
    %c0_i32_0 = arith.constant 0 : i32
    %c0_i32_1 = arith.constant 0 : i32
    return %c0_i32, %c0_i32_0 : i32, i32
  }
  func.func @transform_3(%arg0: i32) -> (i32, i32) {
    %c0_i32 = arith.constant 0 : i32
    %c0_i32_0 = arith.constant 0 : i32
    %c0_i32_1 = arith.constant 0 : i32
    return %c0_i32, %c0_i32_0 : i32, i32
  }
  func.func @transform_4(%arg0: i32) -> (i32, i32) {
    %c0_i32 = arith.constant 0 : i32
    %c0_i32_0 = arith.constant 0 : i32
    %c0_i32_1 = arith.constant 0 : i32
    return %c0_i32, %c0_i32_0 : i32, i32
  }
  func.func @transform_5(%arg0: i32) -> (i32, i32) {
    %c0_i32 = arith.constant 0 : i32
    %c0_i32_0 = arith.constant 0 : i32
    return %arg0, %c0_i32 : i32, i32
  }
}

</mosaic_0001>

<bundles_post_ra>
// kernel: tpu_custom_call.1
= control target key start
LH: loop header
LB: loop body
LE: loop exit
PB: predicated region body
PF: predicated region fallthrough
CT: control target
= control target key end

     0   :  { %10 = vsyncpa [#allocation3], 0  ;;  %s3872_s0 = inlined_call_operand.hbm [shape: f32[2048,128], index: 0, kind: input, shape index: {}]   ;;  %s3873_s1 = inlined_call_operand.hbm [shape: f32[128,32], index: 1, kind: input, shape index: {}]   ;;  %s3874_s2 = inlined_call_operand.hbm [shape: f32[1,32], index: 2, kind: input, shape index: {}]   ;;  %s3875_s3 = inlined_call_operand.hbm [shape: f32[32,128], index: 3, kind: input, shape index: {}]   ;;  %s3876_s4 = inlined_call_operand.hbm [shape: f32[1,128], index: 4, kind: input, shape index: {}]   ;;  %s3877_s5 = inlined_call_operand.hbm [shape: f32[2048,128], index: 5, kind: output, shape index: {}]  }
   0x1   :  { %12 = vsyncpa [#allocation3 + $0x1], 0 }
   0x2   :  { %13 = vsyncpa [#allocation6], 0 }
   0x3   :  { %14 = vsyncpa [#allocation9], 0 }
   0x4   :  { %15 = vsyncpa [#allocation4], 0 }
   0x5   :  { %17 = vsyncpa [#allocation4 + $0x1], 0  ;;  %s2985_s18 = smov 0   ;;  %s2987_s19 = smov 0  }
   0x6   :  { %s2989_s20 = smov 0   ;;  %s2991_s21 = smov 0  }
   0x7 LB: > { %s3006_s22 = sadd.s32 4294967295, %s2943_s21   ;;  %s1933_s23 = sadd.s32 4294967294, %s2943_s21   ;;  %s2943_s21 = sphi %s2991_s21, %s3899_s21   ;;  %s2939_s20 = sphi %s2989_s20, %s3898_s20   ;;  %s2935_s19 = sphi %s2987_s19, %s3897_s19   ;;  %s2931_s18 = sphi %s2985_s18, %s3896_s18  }
   0x8   : > { %p43_p0 = scmp.ne.s32.totalorder %s2935_s19, %s2931_s18  ;;  %p3878_p1 = scmp.eq.s32.totalorder %s3006_s22, 0 }
   0x9   : > { %p157_p3 = scmp.eq.s32.totalorder %s1933_s23, 3  ;;  %p1934_p5 = scmp.ge.s32.totalorder %s2943_s21, 1 }
   0xa   : > { %p3015_p4 = por %p3878_p1, %p43_p0  ;;  %p164_p7 = scmp.lt.s32.totalorder %s2943_s21, 5 }
   0xb   : > { %p3020_p6 = por %p157_p3, %p43_p0  ;;  %s2945_s27 = smov [#allocation5]  }
   0xc   : > { %s3881_s24 = scalar_select %p3015_p4, 1, 0 }
   0xd   : > { %s3882_s25 = scalar_select %p3020_p6, 1, 0 }
   0xe   : > { %p3025_p8 = pnand %p1934_p5, %p164_p7  ;;  %s176_s28 = sshll.u32 %s2945_s27, 4  ;;  %s3029_s28 = int_to_ptr.vmem [resolvable:$true] %s176_s28 }
   0xf   : > { %s2946_s30 = smov [#allocation8]   ;;  %s2947_s7 = smov [#allocation7]  }
  0x10   : > { %s3883_s26 = scalar_select %p3025_p8, 1, 0 }
  0x11   : > { %p2463_p9 = pneg %p3025_p8  ;;  %s200_s6 = sshll.u32 %s2946_s30, 4  ;;  %s3039_s6 = int_to_ptr.vmem [resolvable:$true] %s200_s6 }
  0x12   : > { %s3041_s8 = sshll.u32 %s2947_s7, 4  ;;  %s2727_s11 = scalar_lea.hbm %s3873_s1, 2048  ;;  %s191_s8 = int_to_ptr.vmem [resolvable:$true] %s3041_s8 }
  0x13   : > { %p3035_p10 = pnand %p2463_p9, %p3878_p1  ;;  %p2728_p11 = scmp.ne.s32.totalorder %s3873_s1, %s2727_s11 }
  0x14   : > { %p2734_p3 = scmp.lt.u32.totalorder %s2727_s11, %s3873_s1 }
  0x15   : > { %p3051_p12 = pneg %p3035_p10 }
  0x17   : > { %p2730_p13 = pnand %p3051_p12, %p2728_p11 }
  0x19   : > { %p2731_p0 = pneg %p2730_p13 }
  0x1b   : > { %p2736_p5 = pnand %p2734_p3, %p2731_p0 }
  0x1d   : > { %2739 = shalt.err (!%p2736_p5)
}
  0x1e   : > { %s2740_s17 = scalar_lea.vmem %s3029_s28, 2048  ;;  %p2748_p2 = scmp.lt.s32.totalorder %s3029_s28, %s3029_s28 }
  0x1f   : > { %p2741_p7 = scmp.ne.s32.totalorder %s3029_s28, %s2740_s17  ;;  %p2749_p6 = scmp.lt.s32.totalorder %s2740_s17, %s2740_s17 }
  0x21   : > { %p2743_p9 = pnand %p2741_p7, %p3051_p12  ;;  %p2750_p11 = por %p2749_p6, %p2748_p2 }
  0x23   : > { %p2744_p1 = pneg %p2743_p9 }
  0x25   : > { %p2751_p13 = pnand %p2750_p11, %p2744_p1 }
  0x27   : > { %2754 = shalt.err (!%p2751_p13)
}
  0x28   : > { %s2948_s23 = smov 128   ;;  %s2949_s27 = smov 8  }
  0x29   : > { %2466 = dma.hbm_to_vmem [thread:$0]  (!%p3035_p10), %s3873_s1, 2048, %s3029_s28, [#allocation6], %s2948_s23, %s2948_s23, %s2949_s27  }
  0x2a   : > { %s2755_s11 = scalar_lea.hbm %s3875_s3, 512 }
  0x2b   : > { %p2756_p1 = scmp.ne.s32.totalorder %s3875_s3, %s2755_s11  ;;  %p2762_p0 = scmp.lt.u32.totalorder %s2755_s11, %s3875_s3 }
  0x2d   : > { %p2758_p2 = pnand %p2756_p1, %p3051_p12 }
  0x2f   : > { %p2759_p6 = pneg %p2758_p2 }
  0x31   : > { %p2764_p3 = pnand %p2762_p0, %p2759_p6 }
  0x33   : > { %2767 = shalt.err (!%p2764_p3)
}
  0x34   : > { %s2768_s28 = scalar_lea.vmem %s3039_s6, 512  ;;  %p2776_p11 = scmp.lt.s32.totalorder %s3039_s6, %s3039_s6 }
  0x35   : > { %p2769_p5 = scmp.ne.s32.totalorder %s3039_s6, %s2768_s28  ;;  %p2777_p13 = scmp.lt.s32.totalorder %s2768_s28, %s2768_s28 }
  0x37   : > { %p2771_p7 = pnand %p2769_p5, %p3051_p12  ;;  %p2778_p1 = por %p2777_p13, %p2776_p11 }
  0x39   : > { %p2772_p9 = pneg %p2771_p7 }
  0x3b   : > { %p2779_p2 = pnand %p2778_p1, %p2772_p9 }
  0x3d   : > { %2782 = shalt.err (!%p2779_p2)
}
  0x3e   : > { %2472 = dma.hbm_to_vmem [thread:$0]  (!%p3035_p10), %s3875_s3, 512, %s3039_s6, [#allocation9], %s2948_s23, %s2948_s23, %s2949_s27  }
  0x3f   : > { %s2783_s10 = scalar_lea.hbm %s3874_s2, 16 }
  0x40   : > { %p2784_p6 = scmp.ne.s32.totalorder %s3874_s2, %s2783_s10  ;;  %p2790_p5 = scmp.lt.u32.totalorder %s2783_s10, %s3874_s2 }
  0x42   : > { %p2786_p0 = pnand %p2784_p6, %p3051_p12 }
  0x44   : > { %p2787_p3 = pneg %p2786_p0 }
  0x46   : > { %p2792_p7 = pnand %p2790_p5, %p2787_p3 }
  0x48   : > { %2795 = shalt.err (!%p2792_p7)
}
  0x49   : > { %s2796_s16 = scalar_lea.vmem %s191_s8, 16  ;;  %s2803_s6 = scalar_lea.vmem %s191_s8, 32 }
  0x4a   : > { %p2797_p9 = scmp.ne.s32.totalorder %s191_s8, %s2796_s16  ;;  %p2804_p1 = scmp.lt.s32.totalorder %s191_s8, %s191_s8 }
  0x4b   : > { %p2805_p2 = scmp.lt.s32.totalorder %s2803_s6, %s2796_s16 }
  0x4c   : > { %p2799_p11 = pnand %p2797_p9, %p3051_p12 }
  0x4d   : > { %p2806_p4 = por %p2805_p2, %p2804_p1 }
  0x4e   : > { %p2800_p13 = pneg %p2799_p11 }
  0x50   : > { %p2807_p8 = pnand %p2806_p4, %p2800_p13 }
  0x52   : > { %2810 = shalt.err (!%p2807_p8)
}
  0x53   : > { %2469 = dma.hbm_to_vmem [thread:$0]  (!%p3035_p10), %s3874_s2, 16, %s191_s8, [#allocation6]  }
  0x54   : > { %s2950_s30 = smov [#allocation10]   ;;  %s2811_s11 = scalar_lea.hbm %s3876_s4, 16 }
  0x55   : > { %s214_s7 = sshll.u32 %s2950_s30, 4  ;;  %p2812_p6 = scmp.ne.s32.totalorder %s3876_s4, %s2811_s11  ;;  %s215_s7 = int_to_ptr.vmem [resolvable:$true] %s214_s7 }
  0x56   : > { %p2818_p0 = scmp.lt.u32.totalorder %s2811_s11, %s3876_s4 }
  0x57   : > { %p2814_p4 = pnand %p2812_p6, %p3051_p12 }
  0x59   : > { %p2815_p8 = pneg %p2814_p4 }
  0x5b   : > { %p2820_p3 = pnand %p2818_p0, %p2815_p8 }
  0x5d   : > { %2823 = shalt.err (!%p2820_p3)
}
  0x5e   : > { %s2824_s8 = scalar_lea.vmem %s215_s7, 16  ;;  %s2831_s6 = scalar_lea.vmem %s215_s7, 32 }
  0x5f   : > { %p2825_p5 = scmp.ne.s32.totalorder %s215_s7, %s2824_s8  ;;  %p2832_p11 = scmp.lt.s32.totalorder %s215_s7, %s215_s7 }
  0x60   : > { %p2833_p13 = scmp.lt.s32.totalorder %s2831_s6, %s2824_s8 }
  0x61   : > { %p2827_p7 = pnand %p2825_p5, %p3051_p12 }
  0x62   : > { %p2834_p1 = por %p2833_p13, %p2832_p11 }
  0x63   : > { %p2828_p9 = pneg %p2827_p7 }
  0x65   : > { %p2835_p2 = pnand %p2834_p1, %p2828_p9 }
  0x67   : > { %2838 = shalt.err (!%p2835_p2)
}
  0x68   : > { %2475 = dma.hbm_to_vmem [thread:$0]  (!%p3035_p10), %s3876_s4, 16, %s215_s7, [#allocation9]  }
  0x69   : > { %s3139_s14 = sadd.s32 1, %s2943_s21   ;;  %s30_s30 = sadd.s32 1, %s2939_s20 }
  0x6a   : > { %s27_s29 = ssub.s32 %s2943_s21, %s3139_s14  ;;  %p37_p12 = scmp.ne.s32.totalorder %s2939_s20, %s2935_s19 }
  0x6b   : > { %p28_p6 = scmp.eq.s32.totalorder %s27_s29, 0  ;;  %p38_p4 = scmp.eq.s32.totalorder %s2943_s21, 0 }
  0x6c   : > { %p3886_p8 = scmp.eq.s32.totalorder %s3006_s22, 3  ;;  %p2488_p3 = scmp.lt.s32.totalorder %s2943_s21, 4 }
  0x6d   : > { %s3155_s10 = scalar_select %p28_p6, %s2939_s20, %s30_s30  }
  0x6e   : > { %p3149_p0 = por %p3886_p8, %p37_p12  ;;  %p39_p5 = por %p38_p4, %p37_p12 }
  0x6f   : > { %s225_s11 = sand.u32 1, %s2939_s20   ;;  %s2021_s7 = sshll.u32 %s2943_s21, 13 }
  0x70   : > { %s1940_s12 = sshll.u32 %s225_s11, 9  ;;  %s3162_s16 = scalar_lea.hbm %s3872_s0, %s2021_s7 }
  0x71   : > { %s229_s8 = scalar_lea.vmem [#allocation2], %s1940_s12  ;;  %p3166_p10 = pnand %p2488_p3, %p39_p5 }
  0x72   : > { %s236_s6 = sshll.u32 %s229_s8, 4  ;;  %s3170_s17 = scalar_lea.sflag [#allocation3], %s225_s11  ;;  %s3164_s6 = int_to_ptr.vmem [resolvable:$true] %s236_s6 }
  0x73   : > { %s2839_s30 = scalar_lea.hbm %s3162_s16, 8192  ;;  %p2841_p9 = pneg %p3166_p10 }
  0x74   : > { %p2840_p7 = scmp.ne.s32.totalorder %s3162_s16, %s2839_s30  ;;  %s2844_s7 = scalar_lea.hbm %s3872_s0, 32768 }
  0x75   : > { %p2845_p1 = scmp.lt.u32.totalorder %s3162_s16, %s3872_s0  ;;  %p2846_p2 = scmp.lt.u32.totalorder %s2844_s7, %s2839_s30 }
  0x76   : > { %p2842_p11 = pnand %p2841_p9, %p2840_p7  ;;  %p2848_p6 = scmp.lt.u32.totalorder %s2839_s30, %s3162_s16 }
  0x77   : > { %p2847_p12 = por %p2846_p2, %p2845_p1 }
  0x78   : > { %p2843_p13 = pneg %p2842_p11 }
  0x79   : > { %p2849_p4 = por %p2848_p6, %p2847_p12 }
  0x7b   : > { %p2850_p8 = pnand %p2849_p4, %p2843_p13 }
  0x7d   : > { %2853 = shalt.err (!%p2850_p8)
}
  0x7e   : > { %s2854_s11 = scalar_lea.vmem %s3164_s6, 8192  ;;  %s2951_s8 = smov [#allocation2]  }
  0x7f   : > { %p2855_p3 = scmp.ne.s32.totalorder %s3164_s6, %s2854_s11  ;;  %s2859_s29 = sshll.u32 %s2951_s8, 4  ;;  %s2860_s29 = int_to_ptr.vmem [resolvable:$false] %s2859_s29 }
  0x80   : > { %s2861_s12 = scalar_lea.vmem %s2860_s29, 16384  ;;  %p2862_p11 = scmp.lt.s32.totalorder %s3164_s6, %s2860_s29 }
  0x81   : > { %p2857_p5 = pnand %p2855_p3, %p2841_p9  ;;  %p2863_p1 = scmp.lt.s32.totalorder %s2861_s12, %s2854_s11 }
  0x83   : > { %p2858_p7 = pneg %p2857_p5  ;;  %p2864_p2 = por %p2863_p1, %p2862_p11 }
  0x85   : > { %p2865_p12 = pnand %p2864_p2, %p2858_p7 }
  0x87   : > { %2868 = shalt.err (!%p2865_p12)
}
  0x88   : > { %2479 = dma.hbm_to_vmem [thread:$0]  (!%p3166_p10), %s3162_s16, 8192, %s3164_s6, %s3170_s17, %s2948_s23, %s2948_s23, %s2949_s27  }
  0x89   : > { %p3889_p9 = scmp.ne.s32.totalorder %s3883_s26, 0 }
  0x8a   : > { %s3204_s30 = sand.u32 (!%p3889_p9), 1, %s2935_s19   ;;  %p3890_p13 = scmp.ne.s32.totalorder (!%p3889_p9), %s3881_s24, 0 }
  0x8b   : > { %248 = sbr.rel (%p3889_p9) target bundleno = 778 (0x30a), region = 40  ;;  %s1944_s7 = sshll.u32 (!%p3889_p9), %s3204_s30, 9 }
  0x8c   : > { %s251_s13 = scalar_lea.sflag (!%p3889_p9), [#allocation3], %s3204_s30  ;;  %s3210_s28 = scalar_lea.vmem (!%p3889_p9), [#allocation2], %s1944_s7 }
  0x92   : > { %2914 = dma.done.wait (%p3890_p13), %s251_s13, 8192  }
  0x93   : > { %2916 = vsyncadd (%p3890_p13), %s251_s13, 4294959104  ;;  %p3891_p10 = scmp.eq.s32.totalorder %s3006_s22, 0 }
  0x95   : > { %2918 = dma.done.wait (%p3891_p10), [#allocation6], 2064   ;;  %p3892_p6 = pmov %p3891_p10 }
  0x97   : > { %2920 = vsyncadd (%p3892_p6), [#allocation6], 4294965232  ;;  %p3893_p4 = pmov %p3892_p6 }
  0x99   : > { %2922 = dma.done.wait (%p3893_p4), [#allocation9], 528   ;;  %p3894_p8 = pmov %p3893_p4 }
  0x9a   : > { %v363_v0 = vld [vmem:[#allocation5] sm:$0xff]  ;;  %v364_v1 = vld [vmem:[#allocation5 + $0x8] sm:$0xff]  ;;  %v365_v2 = vld [vmem:[#allocation5 + $0x10] sm:$0xff]  ;;  %vm1102_vm0 = vcmask 261120   ;;  %s3632_s24 = scalar_lea.vmem [#allocation11], %s1944_s7  ;;  %s2022_s26 = sshll.u32 %s3006_s22, 13 }
  0x9b   : > { %2924 = vsyncadd (%p3894_p8), [#allocation9], 4294966768  ;;  %v2403_v3 = vpack.c.bf16 %v364_v1, %v363_v0  ;;  %v366_v4 = vld [vmem:[#allocation5 + $0x18] sm:$0xff]  ;;  %v367_v6 = vld [vmem:[#allocation5 + $0x20] sm:$0xff]  ;;  %s1822_s23 = sshll.u32 %s3632_s24, 4  ;;  %s3824_s6 = scalar_lea.hbm %s3877_s5, %s2022_s26  ;;  %s3826_s23 = int_to_ptr.vmem [resolvable:$true] %s1822_s23 }
  0x9c   : > { %v2407_v5 = vpack.c.bf16 %v366_v4, %v365_v2  ;;  %v368_v7 = vld [vmem:[#allocation5 + $0x28] sm:$0xff]  ;;  %v299_v9 = vld [vmem:[%s3210_s28] sm:$0xff]  ;;  %v369_v10 = vld [vmem:[#allocation5 + $0x30] sm:$0xff]  ;;  %s1809_s22 = scalar_lea.sflag [#allocation4], %s3204_s30  ;;  %s2869_s17 = scalar_lea.vmem %s3826_s23, 8192 }
  0x9d   : > { %2404 = vmatprep.subr.bf16.mxu0 %v2403_v3  ;;  %v2411_v8 = vpack.c.bf16 %v368_v7, %v367_v6  ;;  %v370_v11 = vld [vmem:[#allocation5 + $0x38] sm:$0xff]  ;;  %2203 = vmatprep.mubr.f32.mxu0 %v299_v9  ;;  %v371_v13 = vld [vmem:[#allocation5 + $0x40] sm:$0xff]  ;;  %v372_v14 = vld [vmem:[#allocation5 + $0x48] sm:$0xff]  ;;  %p2870_p3 = scmp.ne.s32.totalorder %s3826_s23, %s2869_s17  ;;  %s2952_s15 = smov [#allocation11]  }
  0x9e   : > { %2406 = vmatpush3.bf16.msra.mxu0 %v2403_v3  ;;  %v2415_v12 = vpack.c.bf16 %v370_v11, %v369_v10  ;;  %v2419_v15 = vpack.c.bf16 %v372_v14, %v371_v13  ;;  %v373_v16 = vld [vmem:[#allocation5 + $0x50] sm:$0xff]  ;;  %v374_v17 = vld [vmem:[#allocation5 + $0x58] sm:$0xff]  ;;  %v375_v19 = vld [vmem:[#allocation5 + $0x60] sm:$0xff]  ;;  %s2873_s11 = sshll.u32 %s2952_s15, 4  ;;  %s2874_s11 = int_to_ptr.vmem [resolvable:$false] %s2873_s11 }
  0x9f   : > { %2408 = vmatprep.subr.bf16.mxu0 %v2407_v5  ;;  %v2423_v18 = vpack.c.bf16 %v374_v17, %v373_v16  ;;  %v376_v20 = vld [vmem:[#allocation5 + $0x68] sm:$0xff]  ;;  %v377_v22 = vld [vmem:[#allocation5 + $0x70] sm:$0xff]  ;;  %v378_v23 = vld [vmem:[#allocation5 + $0x78] sm:$0xff]  ;;  %p2871_p5 = pnand %p2870_p3, %p3149_p0  ;;  %s2875_s8 = scalar_lea.vmem %s2874_s11, 16384 }
  0xa0   : > { %v2427_v21 = vpack.c.bf16 %v376_v20, %v375_v19  ;;  %v2431_v24 = vpack.c.bf16 %v378_v23, %v377_v22  ;;  %v300_v25 = vld [vmem:[%s3210_s28 + $0x8] sm:$0xff]  ;;  %v301_v26 = vld [vmem:[%s3210_s28 + $0x10] sm:$0xff]  ;;  %v302_v27 = vld [vmem:[%s3210_s28 + $0x18] sm:$0xff]  ;;  %p2876_p11 = scmp.lt.s32.totalorder %s3826_s23, %s2874_s11  ;;  %p2877_p1 = scmp.lt.s32.totalorder %s2875_s8, %s2869_s17 }
  0xa1   : > { %v303_v28 = vld [vmem:[%s3210_s28 + $0x20] sm:$0xff]  ;;  %v304_v29 = vld [vmem:[%s3210_s28 + $0x28] sm:$0xff]  ;;  %v305_v30 = vld [vmem:[%s3210_s28 + $0x30] sm:$0xff]  ;;  %p2872_p7 = pneg %p2871_p5 }
  0xa2   : > { %2410 = vmatpush3.bf16.msra.mxu0 %v2407_v5  ;;  %v306_v31 = vld [vmem:[%s3210_s28 + $0x38] sm:$0xff]  ;;  %v307_v32 = vld [vmem:[%s3210_s28 + $0x40] sm:$0xff]  ;;  %v308_v33 = vld [vmem:[%s3210_s28 + $0x48] sm:$0xff]  ;;  %p2878_p2 = por %p2877_p1, %p2876_p11 }
  0xa3   : > { %2412 = vmatprep.subr.bf16.mxu0 %v2411_v8  ;;  %v309_v34 = vld [vmem:[%s3210_s28 + $0x50] sm:$0xff]  ;;  %v310_v35 = vld [vmem:[%s3210_s28 + $0x58] sm:$0xff]  ;;  %v311_v36 = vld [vmem:[%s3210_s28 + $0x60] sm:$0xff] }
  0xa4   : > { %v312_v37 = vld [vmem:[%s3210_s28 + $0x68] sm:$0xff]  ;;  %v313_v38 = vld [vmem:[%s3210_s28 + $0x70] sm:$0xff]  ;;  %v314_v39 = vld [vmem:[%s3210_s28 + $0x78] sm:$0xff]  ;;  %p2879_p12 = pnand %p2878_p2, %p2872_p7 }
  0xa5   : > { %v315_v40 = vld [vmem:[%s3210_s28 + $0x80] sm:$0xff]  ;;  %v316_v41 = vld [vmem:[%s3210_s28 + $0x88] sm:$0xff]  ;;  %v317_v42 = vld [vmem:[%s3210_s28 + $0x90] sm:$0xff] }
  0xa6   : > { %2414 = vmatpush3.bf16.msra.mxu0 %v2411_v8  ;;  %v318_v43 = vld [vmem:[%s3210_s28 + $0x98] sm:$0xff]  ;;  %v319_v44 = vld [vmem:[%s3210_s28 + $0xa0] sm:$0xff]  ;;  %v320_v45 = vld [vmem:[%s3210_s28 + $0xa8] sm:$0xff] }
  0xa7   : > { %2416 = vmatprep.subr.bf16.mxu0 %v2415_v12  ;;  %v321_v46 = vld [vmem:[%s3210_s28 + $0xb0] sm:$0xff]  ;;  %v322_v47 = vld [vmem:[%s3210_s28 + $0xb8] sm:$0xff]  ;;  %v323_v48 = vld [vmem:[%s3210_s28 + $0xc0] sm:$0xff] }
  0xa8   : > { %v324_v49 = vld [vmem:[%s3210_s28 + $0xc8] sm:$0xff]  ;;  %v325_v50 = vld [vmem:[%s3210_s28 + $0xd0] sm:$0xff]  ;;  %v326_v51 = vld [vmem:[%s3210_s28 + $0xd8] sm:$0xff] }
  0xa9   : > { %v327_v52 = vld [vmem:[%s3210_s28 + $0xe0] sm:$0xff]  ;;  %v328_v53 = vld [vmem:[%s3210_s28 + $0xe8] sm:$0xff]  ;;  %v329_v54 = vld [vmem:[%s3210_s28 + $0xf0] sm:$0xff] }
  0xaa   : > { %2418 = vmatpush3.bf16.msra.mxu0 %v2415_v12  ;;  %v330_v55 = vld [vmem:[%s3210_s28 + $0xf8] sm:$0xff]  ;;  %v331_v56 = vld [vmem:[%s3210_s28 + $0x100] sm:$0xff]  ;;  %v332_v57 = vld [vmem:[%s3210_s28 + $0x108] sm:$0xff] }
  0xab   : > { %2420 = vmatprep.subr.bf16.mxu0 %v2419_v15  ;;  %v333_v58 = vld [vmem:[%s3210_s28 + $0x110] sm:$0xff]  ;;  %v334_v59 = vld [vmem:[%s3210_s28 + $0x118] sm:$0xff]  ;;  %v335_v60 = vld [vmem:[%s3210_s28 + $0x120] sm:$0xff] }
  0xac   : > { %v336_v61 = vld [vmem:[%s3210_s28 + $0x128] sm:$0xff]  ;;  %v337_v62 = vld [vmem:[%s3210_s28 + $0x130] sm:$0xff]  ;;  %v338_v63 = vld [vmem:[%s3210_s28 + $0x138] sm:$0xff] }
  0xad   : > { %v339_v0 = vld [vmem:[%s3210_s28 + $0x140] sm:$0xff]  ;;  %v340_v1 = vld [vmem:[%s3210_s28 + $0x148] sm:$0xff]  ;;  %v341_v2 = vld [vmem:[%s3210_s28 + $0x150] sm:$0xff] }
  0xae   : > { %2422 = vmatpush3.bf16.msra.mxu0 %v2419_v15  ;;  %v342_v3 = vld [vmem:[%s3210_s28 + $0x158] sm:$0xff]  ;;  %v343_v4 = vld [vmem:[%s3210_s28 + $0x160] sm:$0xff]  ;;  %v344_v5 = vld [vmem:[%s3210_s28 + $0x168] sm:$0xff] }
  0xaf   : > { %2424 = vmatprep.subr.bf16.mxu0 %v2423_v18  ;;  %v345_v6 = vld [vmem:[%s3210_s28 + $0x170] sm:$0xff]  ;;  %v346_v7 = vld [vmem:[%s3210_s28 + $0x178] sm:$0xff]  ;;  %v347_v8 = vld [vmem:[%s3210_s28 + $0x180] sm:$0xff] }
  0xb0   : > { %v348_v9 = vld [vmem:[%s3210_s28 + $0x188] sm:$0xff]  ;;  %v349_v10 = vld [vmem:[%s3210_s28 + $0x190] sm:$0xff]  ;;  %v350_v14 = vld [vmem:[%s3210_s28 + $0x198] sm:$0xff] }
  0xb1   : > { %v1091_v11 = vld [vmem:[#allocation8] sm:$0xff]  ;;  %v1092_v12 = vld [vmem:[#allocation8 + $0x8] sm:$0xff]  ;;  %v1093_v16 = vld [vmem:[#allocation8 + $0x10] sm:$0xff] }
  0xb2   : > { %2426 = vmatpush3.bf16.msra.mxu0 %v2423_v18  ;;  %v2435_v13 = vpack.c.bf16 %v1092_v12, %v1091_v11  ;;  %v351_v15 = vld [vmem:[%s3210_s28 + $0x1a0] sm:$0xff]  ;;  %v352_v19 = vld [vmem:[%s3210_s28 + $0x1a8] sm:$0xff]  ;;  %v353_v20 = vld [vmem:[%s3210_s28 + $0x1b0] sm:$0xff] }
  0xb3   : > { %2428 = vmatprep.subr.bf16.mxu0 %v2427_v21  ;;  %v1094_v17 = vld [vmem:[#allocation8 + $0x18] sm:$0xff]  ;;  %v356_v23 = vld [vmem:[%s3210_s28 + $0x1c8] sm:$0xff] }
  0xb4   : > { %2436 = vmatprep.subr.bf16.mxu1 %v2435_v13  ;;  %v2439_v18 = vpack.c.bf16 %v1094_v17, %v1093_v16  ;;  %v355_v22 = vld [vmem:[%s3210_s28 + $0x1c0] sm:$0xff] }
  0xb5   : > { %2438 = vmatpush3.bf16.msra.mxu1 %v2435_v13 }
  0xb6   : > { %2430 = vmatpush3.bf16.msra.mxu0 %v2427_v21  ;;  %2440 = vmatprep.subr.bf16.mxu1 %v2439_v18  ;;  %v354_v21 = vld [vmem:[%s3210_s28 + $0x1b8] sm:$0xff] }
  0xb7   : > { %2432 = vmatprep.subr.bf16.mxu0 %v2431_v24 }
  0xb9   : > { %2442 = vmatpush3.bf16.msra.mxu1 %v2439_v18 }
  0xba   : > { %2434 = vmatpush3.bf16.msra.mxu0 %v2431_v24  ;;  %v357_v24 = vld [vmem:[%s3210_s28 + $0x1d0] sm:$0xff] }
  0xbd   : > { %2204 = vmatmul.mubr.f32.vlgmr.msra.gmra.mrb[0].mxu0 %v300_v25  ;;  %v358_v25 = vld [vmem:[%s3210_s28 + $0x1d8] sm:$0xff] }
  0xbe   : > { %2206 = vmatprep.mubr.f32.mxu0 %v301_v26  ;;  %v359_v26 = vld [vmem:[%s3210_s28 + $0x1e0] sm:$0xff] }
  0xc1   : > { %2207 = vmatmul.mubr.f32.gmra.mrb[2].mxu0 %v302_v27  ;;  %v360_v27 = vld [vmem:[%s3210_s28 + $0x1e8] sm:$0xff] }
  0xc2   : > { %2209 = vmatprep.mubr.f32.mxu0 %v303_v28  ;;  %v361_v28 = vld [vmem:[%s3210_s28 + $0x1f0] sm:$0xff] }
  0xc5   : > { %2210 = vmatmul.mubr.f32.gmra.mrb[4].mxu0 %v304_v29  ;;  %v362_v29 = vld [vmem:[%s3210_s28 + $0x1f8] sm:$0xff] }
  0xc6   : > { %2212 = vmatprep.mubr.f32.mxu0 %v305_v30  ;;  %v3288_v30 = vld [vmem:[#allocation7] ss:$0 sm:$0xff] }
  0xc9   : > { %2213 = vmatmul.mubr.f32.gmra.mrb[6].mxu0 %v306_v31 }
  0xca   : > { %2215 = vmatprep.mubr.f32.mxu0 %v307_v32 }
  0xcd   : > { %2216 = vmatmul.mubr.f32.gmra.mrb[8].mxu0 %v308_v33 }
  0xce   : > { %2218 = vmatprep.mubr.f32.mxu0 %v309_v34 }
  0xd1   : > { %2219 = vmatmul.mubr.f32.gmra.mrb[10].mxu0 %v310_v35 }
  0xd2   : > { %2221 = vmatprep.mubr.f32.mxu0 %v311_v36 }
  0xd5   : > { %2222 = vmatmul.mubr.f32.gmra.mrb[12].mxu0 %v312_v37 }
  0xd6   : > { %2224 = vmatprep.mubr.f32.mxu0 %v313_v38 }
  0xd9   : > { %2225 = vmatmul.mubr.f32.gmra.mrb[14].mxu0 %v314_v39 }
  0xda   : > { %2227 = vmatprep.mubr.f32.mxu0 %v315_v40 }
  0xdd   : > { %2228 = vmatmul.mubr.f32.gmra.mrb[16].mxu0 %v316_v41 }
  0xde   : > { %2230 = vmatprep.mubr.f32.mxu0 %v317_v42 }
  0xe1   : > { %2231 = vmatmul.mubr.f32.gmra.mrb[18].mxu0 %v318_v43 }
  0xe2   : > { %2233 = vmatprep.mubr.f32.mxu0 %v319_v44 }
  0xe5   : > { %2234 = vmatmul.mubr.f32.gmra.mrb[20].mxu0 %v320_v45 }
  0xe6   : > { %2236 = vmatprep.mubr.f32.mxu0 %v321_v46 }
  0xe9   : > { %2237 = vmatmul.mubr.f32.gmra.mrb[22].mxu0 %v322_v47 }
  0xea   : > { %2239 = vmatprep.mubr.f32.mxu0 %v323_v48 }
  0xed   : > { %2240 = vmatmul.mubr.f32.gmra.mrb[24].mxu0 %v324_v49 }
  0xee   : > { %2242 = vmatprep.mubr.f32.mxu0 %v325_v50 }
  0xf1   : > { %2243 = vmatmul.mubr.f32.gmra.mrb[26].mxu0 %v326_v51 }
  0xf2   : > { %2245 = vmatprep.mubr.f32.mxu0 %v327_v52 }
  0xf5   : > { %2246 = vmatmul.mubr.f32.gmra.mrb[28].mxu0 %v328_v53 }
  0xf6   : > { %2248 = vmatprep.mubr.f32.mxu0 %v329_v54 }
  0xf9   : > { %2249 = vmatmul.mubr.f32.gmra.mrb[30].mxu0 %v330_v55 }
  0xfa   : > { %2251 = vmatprep.mubr.f32.mxu0 %v331_v56 }
  0xfd   : > { %2252 = vmatmul.mubr.f32.gmra.mrb[32].mxu0 %v332_v57 }
  0xfe   : > { %2254 = vmatprep.mubr.f32.mxu0 %v333_v58 }
 0x101   : > { %2255 = vmatmul.mubr.f32.gmra.mrb[34].mxu0 %v334_v59 }
 0x102   : > { %2257 = vmatprep.mubr.f32.mxu0 %v335_v60 }
 0x105   : > { %2258 = vmatmul.mubr.f32.gmra.mrb[36].mxu0 %v336_v61 }
 0x106   : > { %2260 = vmatprep.mubr.f32.mxu0 %v337_v62 }
 0x109   : > { %2261 = vmatmul.mubr.f32.gmra.mrb[38].mxu0 %v338_v63 }
 0x10a   : > { %2263 = vmatprep.mubr.f32.mxu0 %v339_v0 }
 0x10d   : > { %2264 = vmatmul.mubr.f32.gmra.mrb[40].mxu0 %v340_v1 }
 0x10e   : > { %2266 = vmatprep.mubr.f32.mxu0 %v341_v2 }
 0x111   : > { %2267 = vmatmul.mubr.f32.gmra.mrb[42].mxu0 %v342_v3 }
 0x112   : > { %2269 = vmatprep.mubr.f32.mxu0 %v343_v4 }
 0x115   : > { %2270 = vmatmul.mubr.f32.gmra.mrb[44].mxu0 %v344_v5 }
 0x116   : > { %2272 = vmatprep.mubr.f32.mxu0 %v345_v6 }
 0x119   : > { %2273 = vmatmul.mubr.f32.gmra.mrb[46].mxu0 %v346_v7 }
 0x11a   : > { %2275 = vmatprep.mubr.f32.mxu0 %v347_v8 }
 0x11d   : > { %2276 = vmatmul.mubr.f32.gmra.mrb[48].mxu0 %v348_v9 }
 0x11e   : > { %2278 = vmatprep.mubr.f32.mxu0 %v349_v10 }
 0x121   : > { %2279 = vmatmul.mubr.f32.gmra.mrb[50].mxu0 %v350_v14 }
 0x122   : > { %2281 = vmatprep.mubr.f32.mxu0 %v351_v15 }
 0x125   : > { %2282 = vmatmul.mubr.f32.gmra.mrb[52].mxu0 %v352_v19 }
 0x126   : > { %2284 = vmatprep.mubr.f32.mxu0 %v353_v20 }
 0x129   : > { %2285 = vmatmul.mubr.f32.gmra.mrb[54].mxu0 %v354_v21 }
 0x12a   : > { %2287 = vmatprep.mubr.f32.mxu0 %v355_v22 }
 0x12d   : > { %2288 = vmatmul.mubr.f32.gmra.mrb[56].mxu0 %v356_v23 }
 0x12e   : > { %2290 = vmatprep.mubr.f32.mxu0 %v357_v24 }
 0x131   : > { %2291 = vmatmul.mubr.f32.gmra.mrb[58].mxu0 %v358_v25 }
 0x132   : > { %2293 = vmatprep.mubr.f32.mxu0 %v359_v26 }
 0x135   : > { %2294 = vmatmul.mubr.f32.gmra.mrb[60].mxu0 %v360_v27 }
 0x136   : > { %2296 = vmatprep.mubr.f32.mxu0 %v361_v28 }
 0x139   : > { %2297 = vmatmul.mubr.f32.gmra.mrb[62].mxu0 %v362_v29 }
 0x190   : > { %v2205_v31 = vpop.f32.mrb[0].mxu0 }
 0x191   : > { %v458_v32 = vadd.f32 %v2205_v31, %v3288_v30  ;;  %v452_v33 = vpop.f32.mrb[1].mxu0 }
 0x192   : > { %v453_v34 = vadd.f32 %v3288_v30, %v452_v33 }
 0x193   : > { %v836_v35 = vmul.f32 0.70710677, %v458_v32  ;;  %v772_v63 = vmul.f32 0.5, %v458_v32 }
 0x194   : > { %v835_v36 = vmul.f32 0.70710677, %v453_v34  ;;  %v2208_v37 = vpop.f32.mrb[2].mxu0  ;;  %v771_v59 = vmul.f32 0.5, %v453_v34 }
 0x195   : > { %2534 = verf.f32 %v836_v35  ;;  %v468_v38 = vadd.f32 %v2208_v37, %v3288_v30  ;;  %v462_v39 = vpop.f32.mrb[3].mxu0 }
 0x196   : > { %2536 = verf.f32 %v835_v36  ;;  %v463_v40 = vadd.f32 %v3288_v30, %v462_v39 }
 0x197   : > { %v838_v41 = vmul.f32 0.70710677, %v468_v38  ;;  %v774_v13 = vmul.f32 0.5, %v468_v38 }
 0x198   : > { %v837_v42 = vmul.f32 0.70710677, %v463_v40  ;;  %v2211_v43 = vpop.f32.mrb[4].mxu0  ;;  %v773_v9 = vmul.f32 0.5, %v463_v40 }
 0x199   : > { %2538 = verf.f32 %v838_v41  ;;  %v478_v44 = vadd.f32 %v2211_v43, %v3288_v30  ;;  %v472_v45 = vpop.f32.mrb[5].mxu0 }
 0x19a   : > { %2540 = verf.f32 %v837_v42  ;;  %v473_v46 = vadd.f32 %v3288_v30, %v472_v45 }
 0x19b   : > { %v840_v47 = vmul.f32 0.70710677, %v478_v44  ;;  %v776_v27 = vmul.f32 0.5, %v478_v44 }
 0x19c   : > { %v839_v48 = vmul.f32 0.70710677, %v473_v46  ;;  %v2214_v49 = vpop.f32.mrb[6].mxu0  ;;  %v775_v23 = vmul.f32 0.5, %v473_v46 }
 0x19d   : > { %2542 = verf.f32 %v840_v47  ;;  %v3297_v50 = vadd.f32 %v2214_v49, %v3288_v30  ;;  %v482_v51 = vpop.f32.mrb[7].mxu0 }
 0x19e   : > { %2544 = verf.f32 %v839_v48  ;;  %v483_v52 = vadd.f32 %v3288_v30, %v482_v51 }
 0x19f   : > { %v2535_v53 = vpop.eup %2534  ;;  %v842_v54 = vmul.f32 0.70710677, %v3297_v50  ;;  %v778_v42 = vmul.f32 0.5, %v3297_v50 }
 0x1a0   : > { %v2537_v55 = vpop.eup %2536  ;;  %v964_v56 = vadd.f32 1.0, %v2535_v53  ;;  %v841_v57 = vmul.f32 0.70710677, %v483_v52  ;;  %v2217_v58 = vpop.f32.mrb[8].mxu0  ;;  %v777_v38 = vmul.f32 0.5, %v483_v52 }
 0x1a1   : > { %2546 = verf.f32 %v842_v54  ;;  %v3302_v60 = vadd.f32 %v2217_v58, %v3288_v30  ;;  %v492_v61 = vpop.f32.mrb[9].mxu0  ;;  %v963_v62 = vadd.f32 1.0, %v2537_v55 }
 0x1a2   : > { %2548 = verf.f32 %v841_v57  ;;  %v3305_v0 = vadd.f32 %v3288_v30, %v492_v61  ;;  %v1028_v5 = vmul.f32 %v964_v56, %v772_v63 }
 0x1a3   : > { %v2539_v1 = vpop.eup %2538  ;;  %v844_v2 = vmul.f32 0.70710677, %v3302_v60  ;;  %v1027_v3 = vmul.f32 %v963_v62, %v771_v59  ;;  %v780_v56 = vmul.f32 0.5, %v3302_v60 }
 0x1a4   : > { %v2541_v4 = vpop.eup %2540  ;;  %v966_v6 = vadd.f32 1.0, %v2539_v1  ;;  %v843_v7 = vmul.f32 0.70710677, %v3305_v0  ;;  %v2220_v8 = vpop.f32.mrb[10].mxu0  ;;  %v779_v53 = vmul.f32 0.5, %v3305_v0 }
 0x1a5   : > { %v965_v10 = vadd.f32 1.0, %v2541_v4  ;;  %2550 = verf.f32 %v844_v2  ;;  %v3310_v11 = vadd.f32 %v2220_v8, %v3288_v30  ;;  %v502_v12 = vpop.f32.mrb[11].mxu0  ;;  %2307 = vmatprep.mubr.msk.f32.mxu1 %vm1102_vm0, %v1027_v3 }
 0x1a6   : > { %2552 = verf.f32 %v843_v7  ;;  %v3314_v14 = vadd.f32 %v3288_v30, %v502_v12  ;;  %2308 = vmatmul.mubr.msk.f32.vlgmr.msra.gmra.mrb[0].mxu1 %vm1102_vm0, %v1028_v5  ;;  %v1030_v19 = vmul.f32 %v966_v6, %v774_v13 }
 0x1a7   : > { %v2543_v15 = vpop.eup %2542  ;;  %v1029_v16 = vmul.f32 %v965_v10, %v773_v9  ;;  %v846_v17 = vmul.f32 0.70710677, %v3310_v11  ;;  %v782_v6 = vmul.f32 0.5, %v3310_v11 }
 0x1a8   : > { %v2545_v18 = vpop.eup %2544  ;;  %v968_v20 = vadd.f32 1.0, %v2543_v15  ;;  %v845_v21 = vmul.f32 0.70710677, %v3314_v14  ;;  %v2223_v22 = vpop.f32.mrb[12].mxu0  ;;  %v781_v3 = vmul.f32 0.5, %v3314_v14 }
 0x1a9   : > { %v967_v24 = vadd.f32 1.0, %v2545_v18  ;;  %2554 = verf.f32 %v846_v17  ;;  %v3320_v25 = vadd.f32 %v2223_v22, %v3288_v30  ;;  %v512_v26 = vpop.f32.mrb[13].mxu0  ;;  %2310 = vmatprep.mubr.msk.f32.mxu1 %vm1102_vm0, %v1029_v16 }
 0x1aa   : > { %2556 = verf.f32 %v845_v21  ;;  %v3324_v28 = vadd.f32 %v3288_v30, %v512_v26  ;;  %2311 = vmatmul.mubr.msk.f32.gmra.mrb[2].mxu1 %vm1102_vm0, %v1030_v19  ;;  %v1032_v34 = vmul.f32 %v968_v20, %v776_v27 }
 0x1ab   : > { %v2547_v29 = vpop.eup %2546  ;;  %v1031_v31 = vmul.f32 %v967_v24, %v775_v23  ;;  %v848_v32 = vmul.f32 0.70710677, %v3320_v25  ;;  %v784_v20 = vmul.f32 0.5, %v3320_v25 }
 0x1ac   : > { %v2549_v33 = vpop.eup %2548  ;;  %v970_v35 = vadd.f32 1.0, %v2547_v29  ;;  %v847_v36 = vmul.f32 0.70710677, %v3324_v28  ;;  %v2226_v37 = vpop.f32.mrb[14].mxu0  ;;  %v783_v17 = vmul.f32 0.5, %v3324_v28 }
 0x1ad   : > { %v969_v39 = vadd.f32 1.0, %v2549_v33  ;;  %2558 = verf.f32 %v848_v32  ;;  %v3330_v40 = vadd.f32 %v2226_v37, %v3288_v30  ;;  %v522_v41 = vpop.f32.mrb[15].mxu0  ;;  %2313 = vmatprep.mubr.msk.f32.mxu1 %vm1102_vm0, %v1031_v31 }
 0x1ae   : > { %2560 = verf.f32 %v847_v36  ;;  %v3335_v43 = vadd.f32 %v3288_v30, %v522_v41  ;;  %2314 = vmatmul.mubr.msk.f32.gmra.mrb[4].mxu1 %vm1102_vm0, %v1032_v34  ;;  %v1034_v48 = vmul.f32 %v970_v35, %v778_v42 }
 0x1af   : > { %v2551_v44 = vpop.eup %2550  ;;  %v1033_v45 = vmul.f32 %v969_v39, %v777_v38  ;;  %v850_v46 = vmul.f32 0.70710677, %v3330_v40  ;;  %v786_v35 = vmul.f32 0.5, %v3330_v40 }
 0x1b0   : > { %v2553_v47 = vpop.eup %2552  ;;  %v972_v49 = vadd.f32 1.0, %v2551_v44  ;;  %v849_v51 = vmul.f32 0.70710677, %v3335_v43  ;;  %v2229_v52 = vpop.f32.mrb[16].mxu0  ;;  %v785_v32 = vmul.f32 0.5, %v3335_v43 }
 0x1b1   : > { %v971_v54 = vadd.f32 1.0, %v2553_v47  ;;  %2562 = verf.f32 %v850_v46  ;;  %v3342_v50 = vadd.f32 %v2229_v52, %v3288_v30  ;;  %v532_v55 = vpop.f32.mrb[17].mxu0  ;;  %2316 = vmatprep.mubr.msk.f32.mxu1 %vm1102_vm0, %v1033_v45 }
 0x1b2   : > { %2564 = verf.f32 %v849_v51  ;;  %v3347_v57 = vadd.f32 %v3288_v30, %v532_v55  ;;  %2317 = vmatmul.mubr.msk.f32.gmra.mrb[6].mxu1 %vm1102_vm0, %v1034_v48  ;;  %v1036_v63 = vmul.f32 %v972_v49, %v780_v56 }
 0x1b3   : > { %v2555_v58 = vpop.eup %2554  ;;  %v1035_v59 = vmul.f32 %v971_v54, %v779_v53  ;;  %v852_v61 = vmul.f32 0.70710677, %v3342_v50  ;;  %v788_v49 = vmul.f32 0.5, %v3342_v50 }
 0x1b4   : > { %v2557_v62 = vpop.eup %2556  ;;  %v974_v0 = vadd.f32 1.0, %v2555_v58  ;;  %v851_v1 = vmul.f32 0.70710677, %v3347_v57  ;;  %v2232_v2 = vpop.f32.mrb[18].mxu0  ;;  %v787_v46 = vmul.f32 0.5, %v3347_v57 }
 0x1b5   : > { %v973_v4 = vadd.f32 1.0, %v2557_v62  ;;  %2566 = verf.f32 %v852_v61  ;;  %v3354_v60 = vadd.f32 %v2232_v2, %v3288_v30  ;;  %v542_v5 = vpop.f32.mrb[19].mxu0  ;;  %2319 = vmatprep.mubr.msk.f32.mxu1 %vm1102_vm0, %v1035_v59 }
 0x1b6   : > { %2568 = verf.f32 %v851_v1  ;;  %v3359_v7 = vadd.f32 %v3288_v30, %v542_v5  ;;  %2320 = vmatmul.mubr.msk.f32.gmra.mrb[8].mxu1 %vm1102_vm0, %v1036_v63  ;;  %v1038_v13 = vmul.f32 %v974_v0, %v782_v6 }
 0x1b7   : > { %v2559_v8 = vpop.eup %2558  ;;  %v1037_v9 = vmul.f32 %v973_v4, %v781_v3  ;;  %v854_v10 = vmul.f32 0.70710677, %v3354_v60  ;;  %v790_v0 = vmul.f32 0.5, %v3354_v60 }
 0x1b8   : > { %v2561_v12 = vpop.eup %2560  ;;  %v976_v14 = vadd.f32 1.0, %v2559_v8  ;;  %v853_v15 = vmul.f32 0.70710677, %v3359_v7  ;;  %v2235_v16 = vpop.f32.mrb[20].mxu0  ;;  %v789_v61 = vmul.f32 0.5, %v3359_v7 }
 0x1b9   : > { %v975_v18 = vadd.f32 1.0, %v2561_v12  ;;  %2570 = verf.f32 %v854_v10  ;;  %v3366_v11 = vadd.f32 %v2235_v16, %v3288_v30  ;;  %v552_v19 = vpop.f32.mrb[21].mxu0  ;;  %2322 = vmatprep.mubr.msk.f32.mxu1 %vm1102_vm0, %v1037_v9 }
 0x1ba   : > { %2572 = verf.f32 %v853_v15  ;;  %v3371_v21 = vadd.f32 %v3288_v30, %v552_v19  ;;  %2323 = vmatmul.mubr.msk.f32.gmra.mrb[10].mxu1 %vm1102_vm0, %v1038_v13  ;;  %v1040_v27 = vmul.f32 %v976_v14, %v784_v20 }
 0x1bb   : > { %v2563_v22 = vpop.eup %2562  ;;  %v1039_v23 = vmul.f32 %v975_v18, %v783_v17  ;;  %v856_v24 = vmul.f32 0.70710677, %v3366_v11  ;;  %v792_v14 = vmul.f32 0.5, %v3366_v11 }
 0x1bc   : > { %v2565_v26 = vpop.eup %2564  ;;  %v978_v28 = vadd.f32 1.0, %v2563_v22  ;;  %v855_v29 = vmul.f32 0.70710677, %v3371_v21  ;;  %v2238_v31 = vpop.f32.mrb[22].mxu0  ;;  %v791_v10 = vmul.f32 0.5, %v3371_v21 }
 0x1bd   : > { %v977_v33 = vadd.f32 1.0, %v2565_v26  ;;  %2574 = verf.f32 %v856_v24  ;;  %v3378_v25 = vadd.f32 %v2238_v31, %v3288_v30  ;;  %v562_v34 = vpop.f32.mrb[23].mxu0  ;;  %2325 = vmatprep.mubr.msk.f32.mxu1 %vm1102_vm0, %v1039_v23 }
 0x1be   : > { %2576 = verf.f32 %v855_v29  ;;  %v3383_v36 = vadd.f32 %v3288_v30, %v562_v34  ;;  %2326 = vmatmul.mubr.msk.f32.gmra.mrb[12].mxu1 %vm1102_vm0, %v1040_v27  ;;  %v1042_v42 = vmul.f32 %v978_v28, %v786_v35 }
 0x1bf   : > { %v2567_v37 = vpop.eup %2566  ;;  %v1041_v38 = vmul.f32 %v977_v33, %v785_v32  ;;  %v858_v39 = vmul.f32 0.70710677, %v3378_v25  ;;  %v794_v28 = vmul.f32 0.5, %v3378_v25 }
 0x1c0   : > { %v2569_v41 = vpop.eup %2568  ;;  %v980_v43 = vadd.f32 1.0, %v2567_v37  ;;  %v857_v44 = vmul.f32 0.70710677, %v3383_v36  ;;  %v2241_v45 = vpop.f32.mrb[24].mxu0  ;;  %v793_v24 = vmul.f32 0.5, %v3383_v36 }
 0x1c1   : > { %v979_v47 = vadd.f32 1.0, %v2569_v41  ;;  %2578 = verf.f32 %v858_v39  ;;  %v3390_v40 = vadd.f32 %v2241_v45, %v3288_v30  ;;  %v572_v48 = vpop.f32.mrb[25].mxu0  ;;  %2328 = vmatprep.mubr.msk.f32.mxu1 %vm1102_vm0, %v1041_v38 }
 0x1c2   : > { %2580 = verf.f32 %v857_v44  ;;  %v3395_v51 = vadd.f32 %v3288_v30, %v572_v48  ;;  %2329 = vmatmul.mubr.msk.f32.gmra.mrb[14].mxu1 %vm1102_vm0, %v1042_v42  ;;  %v1044_v56 = vmul.f32 %v980_v43, %v788_v49 }
 0x1c3   : > { %v2571_v52 = vpop.eup %2570  ;;  %v1043_v53 = vmul.f32 %v979_v47, %v787_v46  ;;  %v860_v54 = vmul.f32 0.70710677, %v3390_v40  ;;  %v796_v43 = vmul.f32 0.5, %v3390_v40 }
 0x1c4   : > { %v2573_v55 = vpop.eup %2572  ;;  %v982_v57 = vadd.f32 1.0, %v2571_v52  ;;  %v859_v58 = vmul.f32 0.70710677, %v3395_v51  ;;  %v2244_v59 = vpop.f32.mrb[26].mxu0  ;;  %v795_v39 = vmul.f32 0.5, %v3395_v51 }
 0x1c5   : > { %v981_v62 = vadd.f32 1.0, %v2573_v55  ;;  %2582 = verf.f32 %v860_v54  ;;  %v3402_v50 = vadd.f32 %v2244_v59, %v3288_v30  ;;  %v582_v63 = vpop.f32.mrb[27].mxu0  ;;  %2331 = vmatprep.mubr.msk.f32.mxu1 %vm1102_vm0, %v1043_v53 }
 0x1c6   : > { %2584 = verf.f32 %v859_v58  ;;  %v3407_v1 = vadd.f32 %v3288_v30, %v582_v63  ;;  %2332 = vmatmul.mubr.msk.f32.gmra.mrb[16].mxu1 %vm1102_vm0, %v1044_v56  ;;  %v1046_v6 = vmul.f32 %v982_v57, %v790_v0 }
 0x1c7   : > { %v2575_v2 = vpop.eup %2574  ;;  %v1045_v3 = vmul.f32 %v981_v62, %v789_v61  ;;  %v862_v4 = vmul.f32 0.70710677, %v3402_v50  ;;  %v798_v57 = vmul.f32 0.5, %v3402_v50 }
 0x1c8   : > { %v2577_v5 = vpop.eup %2576  ;;  %v984_v7 = vadd.f32 1.0, %v2575_v2  ;;  %v861_v8 = vmul.f32 0.70710677, %v3407_v1  ;;  %v2247_v9 = vpop.f32.mrb[28].mxu0  ;;  %v797_v54 = vmul.f32 0.5, %v3407_v1 }
 0x1c9   : > { %v983_v12 = vadd.f32 1.0, %v2577_v5  ;;  %2586 = verf.f32 %v862_v4  ;;  %v3414_v60 = vadd.f32 %v2247_v9, %v3288_v30  ;;  %v592_v13 = vpop.f32.mrb[29].mxu0  ;;  %2334 = vmatprep.mubr.msk.f32.mxu1 %vm1102_vm0, %v1045_v3 }
 0x1ca   : > { %2588 = verf.f32 %v861_v8  ;;  %v3419_v15 = vadd.f32 %v3288_v30, %v592_v13  ;;  %2335 = vmatmul.mubr.msk.f32.gmra.mrb[18].mxu1 %vm1102_vm0, %v1046_v6  ;;  %v1048_v20 = vmul.f32 %v984_v7, %v792_v14 }
 0x1cb   : > { %v2579_v16 = vpop.eup %2578  ;;  %v1047_v17 = vmul.f32 %v983_v12, %v791_v10  ;;  %v864_v18 = vmul.f32 0.70710677, %v3414_v60  ;;  %v800_v7 = vmul.f32 0.5, %v3414_v60 }
 0x1cc   : > { %v2581_v19 = vpop.eup %2580  ;;  %v986_v21 = vadd.f32 1.0, %v2579_v16  ;;  %v863_v22 = vmul.f32 0.70710677, %v3419_v15  ;;  %v2250_v23 = vpop.f32.mrb[30].mxu0  ;;  %v799_v4 = vmul.f32 0.5, %v3419_v15 }
 0x1cd   : > { %v985_v26 = vadd.f32 1.0, %v2581_v19  ;;  %2590 = verf.f32 %v864_v18  ;;  %v3426_v11 = vadd.f32 %v2250_v23, %v3288_v30  ;;  %v602_v27 = vpop.f32.mrb[31].mxu0  ;;  %2337 = vmatprep.mubr.msk.f32.mxu1 %vm1102_vm0, %v1047_v17 }
 0x1ce   : > { %2592 = verf.f32 %v863_v22  ;;  %v3431_v29 = vadd.f32 %v3288_v30, %v602_v27  ;;  %2338 = vmatmul.mubr.msk.f32.gmra.mrb[20].mxu1 %vm1102_vm0, %v1048_v20  ;;  %v1050_v35 = vmul.f32 %v986_v21, %v794_v28 }
 0x1cf   : > { %v2583_v31 = vpop.eup %2582  ;;  %v1049_v32 = vmul.f32 %v985_v26, %v793_v24  ;;  %v866_v33 = vmul.f32 0.70710677, %v3426_v11  ;;  %v802_v21 = vmul.f32 0.5, %v3426_v11 }
 0x1d0   : > { %v2585_v34 = vpop.eup %2584  ;;  %v988_v36 = vadd.f32 1.0, %v2583_v31  ;;  %v865_v37 = vmul.f32 0.70710677, %v3431_v29  ;;  %v2253_v38 = vpop.f32.mrb[32].mxu0  ;;  %v801_v18 = vmul.f32 0.5, %v3431_v29 }
 0x1d1   : > { %v987_v41 = vadd.f32 1.0, %v2585_v34  ;;  %2594 = verf.f32 %v866_v33  ;;  %v3438_v25 = vadd.f32 %v2253_v38, %v3288_v30  ;;  %v612_v42 = vpop.f32.mrb[33].mxu0  ;;  %2340 = vmatprep.mubr.msk.f32.mxu1 %vm1102_vm0, %v1049_v32 }
 0x1d2   : > { %2596 = verf.f32 %v865_v37  ;;  %v3443_v44 = vadd.f32 %v3288_v30, %v612_v42  ;;  %2341 = vmatmul.mubr.msk.f32.gmra.mrb[22].mxu1 %vm1102_vm0, %v1050_v35  ;;  %v1052_v49 = vmul.f32 %v988_v36, %v796_v43 }
 0x1d3   : > { %v2587_v45 = vpop.eup %2586  ;;  %v1051_v46 = vmul.f32 %v987_v41, %v795_v39  ;;  %v868_v47 = vmul.f32 0.70710677, %v3438_v25  ;;  %v804_v36 = vmul.f32 0.5, %v3438_v25 }
 0x1d4   : > { %v2589_v48 = vpop.eup %2588  ;;  %v990_v51 = vadd.f32 1.0, %v2587_v45  ;;  %v867_v52 = vmul.f32 0.70710677, %v3443_v44  ;;  %v2256_v53 = vpop.f32.mrb[34].mxu0  ;;  %v803_v33 = vmul.f32 0.5, %v3443_v44 }
 0x1d5   : > { %v989_v55 = vadd.f32 1.0, %v2589_v48  ;;  %2598 = verf.f32 %v868_v47  ;;  %v3450_v40 = vadd.f32 %v2256_v53, %v3288_v30  ;;  %v622_v56 = vpop.f32.mrb[35].mxu0  ;;  %2343 = vmatprep.mubr.msk.f32.mxu1 %vm1102_vm0, %v1051_v46 }
 0x1d6   : > { %2600 = verf.f32 %v867_v52  ;;  %v3455_v58 = vadd.f32 %v3288_v30, %v622_v56  ;;  %2344 = vmatmul.mubr.msk.f32.gmra.mrb[24].mxu1 %vm1102_vm0, %v1052_v49  ;;  %v1054_v0 = vmul.f32 %v990_v51, %v798_v57 }
 0x1d7   : > { %v2591_v59 = vpop.eup %2590  ;;  %v1053_v61 = vmul.f32 %v989_v55, %v797_v54  ;;  %v870_v62 = vmul.f32 0.70710677, %v3450_v40  ;;  %v806_v51 = vmul.f32 0.5, %v3450_v40 }
 0x1d8   : > { %v2593_v63 = vpop.eup %2592  ;;  %v992_v1 = vadd.f32 1.0, %v2591_v59  ;;  %v869_v2 = vmul.f32 0.70710677, %v3455_v58  ;;  %v2259_v3 = vpop.f32.mrb[36].mxu0  ;;  %v805_v47 = vmul.f32 0.5, %v3455_v58 }
 0x1d9   : > { %v991_v5 = vadd.f32 1.0, %v2593_v63  ;;  %2602 = verf.f32 %v870_v62  ;;  %v3462_v50 = vadd.f32 %v2259_v3, %v3288_v30  ;;  %v632_v6 = vpop.f32.mrb[37].mxu0  ;;  %2346 = vmatprep.mubr.msk.f32.mxu1 %vm1102_vm0, %v1053_v61 }
 0x1da   : > { %2604 = verf.f32 %v869_v2  ;;  %v3467_v8 = vadd.f32 %v3288_v30, %v632_v6  ;;  %2347 = vmatmul.mubr.msk.f32.gmra.mrb[26].mxu1 %vm1102_vm0, %v1054_v0  ;;  %v1056_v14 = vmul.f32 %v992_v1, %v800_v7 }
 0x1db   : > { %v2595_v9 = vpop.eup %2594  ;;  %v1055_v10 = vmul.f32 %v991_v5, %v799_v4  ;;  %v872_v12 = vmul.f32 0.70710677, %v3462_v50  ;;  %v808_v1 = vmul.f32 0.5, %v3462_v50 }
 0x1dc   : > { %v2597_v13 = vpop.eup %2596  ;;  %v994_v15 = vadd.f32 1.0, %v2595_v9  ;;  %v871_v16 = vmul.f32 0.70710677, %v3467_v8  ;;  %v2262_v17 = vpop.f32.mrb[38].mxu0  ;;  %v807_v62 = vmul.f32 0.5, %v3467_v8 }
 0x1dd   : > { %v993_v19 = vadd.f32 1.0, %v2597_v13  ;;  %2606 = verf.f32 %v872_v12  ;;  %v3474_v60 = vadd.f32 %v2262_v17, %v3288_v30  ;;  %v642_v20 = vpop.f32.mrb[39].mxu0  ;;  %2349 = vmatprep.mubr.msk.f32.mxu1 %vm1102_vm0, %v1055_v10 }
 0x1de   : > { %2608 = verf.f32 %v871_v16  ;;  %v3479_v22 = vadd.f32 %v3288_v30, %v642_v20  ;;  %2350 = vmatmul.mubr.msk.f32.gmra.mrb[28].mxu1 %vm1102_vm0, %v1056_v14  ;;  %v1058_v28 = vmul.f32 %v994_v15, %v802_v21 }
 0x1df   : > { %v2599_v23 = vpop.eup %2598  ;;  %v1057_v24 = vmul.f32 %v993_v19, %v801_v18  ;;  %v874_v26 = vmul.f32 0.70710677, %v3474_v60  ;;  %v810_v15 = vmul.f32 0.5, %v3474_v60 }
 0x1e0   : > { %v2601_v27 = vpop.eup %2600  ;;  %v996_v29 = vadd.f32 1.0, %v2599_v23  ;;  %v873_v31 = vmul.f32 0.70710677, %v3479_v22  ;;  %v2265_v32 = vpop.f32.mrb[40].mxu0  ;;  %v809_v12 = vmul.f32 0.5, %v3479_v22 }
 0x1e1   : > { %v995_v34 = vadd.f32 1.0, %v2601_v27  ;;  %2610 = verf.f32 %v874_v26  ;;  %v3486_v11 = vadd.f32 %v2265_v32, %v3288_v30  ;;  %v652_v35 = vpop.f32.mrb[41].mxu0  ;;  %2352 = vmatprep.mubr.msk.f32.mxu1 %vm1102_vm0, %v1057_v24 }
 0x1e2   : > { %2612 = verf.f32 %v873_v31  ;;  %v3491_v37 = vadd.f32 %v3288_v30, %v652_v35  ;;  %2353 = vmatmul.mubr.msk.f32.gmra.mrb[30].mxu1 %vm1102_vm0, %v1058_v28  ;;  %v1060_v43 = vmul.f32 %v996_v29, %v804_v36 }
 0x1e3   : > { %v2603_v38 = vpop.eup %2602  ;;  %v1059_v39 = vmul.f32 %v995_v34, %v803_v33  ;;  %v876_v41 = vmul.f32 0.70710677, %v3486_v11  ;;  %v812_v29 = vmul.f32 0.5, %v3486_v11 }
 0x1e4   : > { %v2605_v42 = vpop.eup %2604  ;;  %v998_v44 = vadd.f32 1.0, %v2603_v38  ;;  %v875_v45 = vmul.f32 0.70710677, %v3491_v37  ;;  %v2268_v46 = vpop.f32.mrb[42].mxu0  ;;  %v811_v26 = vmul.f32 0.5, %v3491_v37 }
 0x1e5   : > { %v997_v48 = vadd.f32 1.0, %v2605_v42  ;;  %2614 = verf.f32 %v876_v41  ;;  %v3498_v25 = vadd.f32 %v2268_v46, %v3288_v30  ;;  %v662_v49 = vpop.f32.mrb[43].mxu0  ;;  %2355 = vmatprep.mubr.msk.f32.mxu1 %vm1102_vm0, %v1059_v39 }
 0x1e6   : > { %2616 = verf.f32 %v875_v45  ;;  %v3503_v52 = vadd.f32 %v3288_v30, %v662_v49  ;;  %2356 = vmatmul.mubr.msk.f32.gmra.mrb[32].mxu1 %vm1102_vm0, %v1060_v43  ;;  %v1062_v57 = vmul.f32 %v998_v44, %v806_v51 }
 0x1e7   : > { %v2607_v53 = vpop.eup %2606  ;;  %v1061_v54 = vmul.f32 %v997_v48, %v805_v47  ;;  %v878_v55 = vmul.f32 0.70710677, %v3498_v25  ;;  %v814_v44 = vmul.f32 0.5, %v3498_v25 }
 0x1e8   : > { %v2609_v56 = vpop.eup %2608  ;;  %v1000_v58 = vadd.f32 1.0, %v2607_v53  ;;  %v877_v59 = vmul.f32 0.70710677, %v3503_v52  ;;  %v2271_v61 = vpop.f32.mrb[44].mxu0  ;;  %v813_v41 = vmul.f32 0.5, %v3503_v52 }
 0x1e9   : > { %v999_v63 = vadd.f32 1.0, %v2609_v56  ;;  %2618 = verf.f32 %v878_v55  ;;  %v3510_v40 = vadd.f32 %v2271_v61, %v3288_v30  ;;  %v672_v0 = vpop.f32.mrb[45].mxu0  ;;  %2358 = vmatprep.mubr.msk.f32.mxu1 %vm1102_vm0, %v1061_v54 }
 0x1ea   : > { %2620 = verf.f32 %v877_v59  ;;  %v3515_v2 = vadd.f32 %v3288_v30, %v672_v0  ;;  %2359 = vmatmul.mubr.msk.f32.gmra.mrb[34].mxu1 %vm1102_vm0, %v1062_v57  ;;  %v1064_v7 = vmul.f32 %v1000_v58, %v808_v1 }
 0x1eb   : > { %v2611_v3 = vpop.eup %2610  ;;  %v1063_v4 = vmul.f32 %v999_v63, %v807_v62  ;;  %v880_v5 = vmul.f32 0.70710677, %v3510_v40  ;;  %v816_v58 = vmul.f32 0.5, %v3510_v40 }
 0x1ec   : > { %v2613_v6 = vpop.eup %2612  ;;  %v1002_v8 = vadd.f32 1.0, %v2611_v3  ;;  %v879_v9 = vmul.f32 0.70710677, %v3515_v2  ;;  %v2274_v10 = vpop.f32.mrb[46].mxu0  ;;  %v815_v55 = vmul.f32 0.5, %v3515_v2 }
 0x1ed   : > { %v1001_v13 = vadd.f32 1.0, %v2613_v6  ;;  %2622 = verf.f32 %v880_v5  ;;  %v3522_v50 = vadd.f32 %v2274_v10, %v3288_v30  ;;  %v682_v14 = vpop.f32.mrb[47].mxu0  ;;  %2361 = vmatprep.mubr.msk.f32.mxu1 %vm1102_vm0, %v1063_v4 }
 0x1ee   : > { %2624 = verf.f32 %v879_v9  ;;  %v3527_v16 = vadd.f32 %v3288_v30, %v682_v14  ;;  %2362 = vmatmul.mubr.msk.f32.gmra.mrb[36].mxu1 %vm1102_vm0, %v1064_v7  ;;  %v1066_v21 = vmul.f32 %v1002_v8, %v810_v15 }
 0x1ef   : > { %v2615_v17 = vpop.eup %2614  ;;  %v1065_v18 = vmul.f32 %v1001_v13, %v809_v12  ;;  %v882_v19 = vmul.f32 0.70710677, %v3522_v50  ;;  %v818_v8 = vmul.f32 0.5, %v3522_v50 }
 0x1f0   : > { %v2617_v20 = vpop.eup %2616  ;;  %v1004_v22 = vadd.f32 1.0, %v2615_v17  ;;  %v881_v23 = vmul.f32 0.70710677, %v3527_v16  ;;  %v2277_v24 = vpop.f32.mrb[48].mxu0  ;;  %v817_v5 = vmul.f32 0.5, %v3527_v16 }
 0x1f1   : > { %v1003_v27 = vadd.f32 1.0, %v2617_v20  ;;  %2626 = verf.f32 %v882_v19  ;;  %v3534_v60 = vadd.f32 %v2277_v24, %v3288_v30  ;;  %v692_v28 = vpop.f32.mrb[49].mxu0  ;;  %2364 = vmatprep.mubr.msk.f32.mxu1 %vm1102_vm0, %v1065_v18 }
 0x1f2   : > { %2628 = verf.f32 %v881_v23  ;;  %v3539_v31 = vadd.f32 %v3288_v30, %v692_v28  ;;  %2365 = vmatmul.mubr.msk.f32.gmra.mrb[38].mxu1 %vm1102_vm0, %v1066_v21  ;;  %v1068_v36 = vmul.f32 %v1004_v22, %v812_v29 }
 0x1f3   : > { %v2619_v32 = vpop.eup %2618  ;;  %v1067_v33 = vmul.f32 %v1003_v27, %v811_v26  ;;  %v884_v34 = vmul.f32 0.70710677, %v3534_v60  ;;  %v820_v22 = vmul.f32 0.5, %v3534_v60 }
 0x1f4   : > { %v2621_v35 = vpop.eup %2620  ;;  %v1006_v37 = vadd.f32 1.0, %v2619_v32  ;;  %v883_v38 = vmul.f32 0.70710677, %v3539_v31  ;;  %v2280_v39 = vpop.f32.mrb[50].mxu0  ;;  %v819_v19 = vmul.f32 0.5, %v3539_v31 }
 0x1f5   : > { %v1005_v42 = vadd.f32 1.0, %v2621_v35  ;;  %2630 = verf.f32 %v884_v34  ;;  %v3546_v11 = vadd.f32 %v2280_v39, %v3288_v30  ;;  %v702_v43 = vpop.f32.mrb[51].mxu0  ;;  %2367 = vmatprep.mubr.msk.f32.mxu1 %vm1102_vm0, %v1067_v33 }
 0x1f6   : > { %2632 = verf.f32 %v883_v38  ;;  %v3551_v45 = vadd.f32 %v3288_v30, %v702_v43  ;;  %2368 = vmatmul.mubr.msk.f32.gmra.mrb[40].mxu1 %vm1102_vm0, %v1068_v36  ;;  %v1070_v51 = vmul.f32 %v1006_v37, %v814_v44 }
 0x1f7   : > { %v2623_v46 = vpop.eup %2622  ;;  %v1069_v47 = vmul.f32 %v1005_v42, %v813_v41  ;;  %v886_v48 = vmul.f32 0.70710677, %v3546_v11  ;;  %v822_v37 = vmul.f32 0.5, %v3546_v11 }
 0x1f8   : > { %v2625_v49 = vpop.eup %2624  ;;  %v1008_v52 = vadd.f32 1.0, %v2623_v46  ;;  %v885_v53 = vmul.f32 0.70710677, %v3551_v45  ;;  %v2283_v54 = vpop.f32.mrb[52].mxu0  ;;  %v821_v34 = vmul.f32 0.5, %v3551_v45 }
 0x1f9   : > { %v1007_v56 = vadd.f32 1.0, %v2625_v49  ;;  %2634 = verf.f32 %v886_v48  ;;  %v3558_v25 = vadd.f32 %v2283_v54, %v3288_v30  ;;  %v712_v57 = vpop.f32.mrb[53].mxu0  ;;  %2370 = vmatprep.mubr.msk.f32.mxu1 %vm1102_vm0, %v1069_v47 }
 0x1fa   : > { %2636 = verf.f32 %v885_v53  ;;  %v3563_v59 = vadd.f32 %v3288_v30, %v712_v57  ;;  %2371 = vmatmul.mubr.msk.f32.gmra.mrb[42].mxu1 %vm1102_vm0, %v1070_v51  ;;  %v1072_v1 = vmul.f32 %v1008_v52, %v816_v58 }
 0x1fb   : > { %v2627_v61 = vpop.eup %2626  ;;  %v1071_v62 = vmul.f32 %v1007_v56, %v815_v55  ;;  %v888_v63 = vmul.f32 0.70710677, %v3558_v25  ;;  %v824_v52 = vmul.f32 0.5, %v3558_v25 }
 0x1fc   : > { %v2629_v0 = vpop.eup %2628  ;;  %v1010_v2 = vadd.f32 1.0, %v2627_v61  ;;  %v887_v3 = vmul.f32 0.70710677, %v3563_v59  ;;  %v2286_v4 = vpop.f32.mrb[54].mxu0  ;;  %v823_v48 = vmul.f32 0.5, %v3563_v59 }
 0x1fd   : > { %v1009_v6 = vadd.f32 1.0, %v2629_v0  ;;  %2638 = verf.f32 %v888_v63  ;;  %v3570_v40 = vadd.f32 %v2286_v4, %v3288_v30  ;;  %v722_v7 = vpop.f32.mrb[55].mxu0  ;;  %2373 = vmatprep.mubr.msk.f32.mxu1 %vm1102_vm0, %v1071_v62 }
 0x1fe   : > { %2640 = verf.f32 %v887_v3  ;;  %v3575_v9 = vadd.f32 %v3288_v30, %v722_v7  ;;  %2374 = vmatmul.mubr.msk.f32.gmra.mrb[44].mxu1 %vm1102_vm0, %v1072_v1  ;;  %v1074_v15 = vmul.f32 %v1010_v2, %v818_v8  ;;  %v2662_v1 = vld [vmem:[#allocation7] ss:$0 sm:$0xff] }
 0x1ff   : > { %v2631_v10 = vpop.eup %2630  ;;  %v1073_v12 = vmul.f32 %v1009_v6, %v817_v5  ;;  %v890_v13 = vmul.f32 0.70710677, %v3570_v40 }
 0x200   : > { %v2633_v14 = vpop.eup %2632  ;;  %v1012_v16 = vadd.f32 1.0, %v2631_v10  ;;  %v889_v17 = vmul.f32 0.70710677, %v3575_v9  ;;  %v2289_v18 = vpop.f32.mrb[56].mxu0  ;;  %v825_v63 = vmul.f32 0.5, %v3575_v9 }
 0x201   : > { %v1011_v20 = vadd.f32 1.0, %v2633_v14  ;;  %2642 = verf.f32 %v890_v13  ;;  %v3582_v50 = vadd.f32 %v2289_v18, %v3288_v30  ;;  %v732_v21 = vpop.f32.mrb[57].mxu0  ;;  %2376 = vmatprep.mubr.msk.f32.mxu1 %vm1102_vm0, %v1073_v12 }
 0x202   : > { %2644 = verf.f32 %v889_v17  ;;  %v3587_v23 = vadd.f32 %v3288_v30, %v732_v21  ;;  %2377 = vmatmul.mubr.msk.f32.gmra.mrb[46].mxu1 %vm1102_vm0, %v1074_v15  ;;  %v1076_v29 = vmul.f32 %v1012_v16, %v820_v22 }
 0x203   : > { %v2635_v24 = vpop.eup %2634  ;;  %v1075_v26 = vmul.f32 %v1011_v20, %v819_v19  ;;  %v892_v27 = vmul.f32 0.70710677, %v3582_v50  ;;  %v828_v14 = vmul.f32 0.5, %v3582_v50 }
 0x204   : > { %v2637_v28 = vpop.eup %2636  ;;  %v1014_v31 = vadd.f32 1.0, %v2635_v24  ;;  %v891_v32 = vmul.f32 0.70710677, %v3587_v23  ;;  %v2292_v33 = vpop.f32.mrb[58].mxu0  ;;  %v827_v12 = vmul.f32 0.5, %v3587_v23 }
 0x205   : > { %v1013_v35 = vadd.f32 1.0, %v2637_v28  ;;  %2646 = verf.f32 %v892_v27  ;;  %v3594_v60 = vadd.f32 %v2292_v33, %v3288_v30  ;;  %v742_v36 = vpop.f32.mrb[59].mxu0  ;;  %2379 = vmatprep.mubr.msk.f32.mxu1 %vm1102_vm0, %v1075_v26 }
 0x206   : > { %2648 = verf.f32 %v891_v32  ;;  %v743_v38 = vadd.f32 %v3288_v30, %v742_v36  ;;  %2380 = vmatmul.mubr.msk.f32.gmra.mrb[48].mxu1 %vm1102_vm0, %v1076_v29  ;;  %v1078_v44 = vmul.f32 %v1014_v31, %v822_v37 }
 0x207   : > { %v2639_v39 = vpop.eup %2638  ;;  %v1077_v41 = vmul.f32 %v1013_v35, %v821_v34  ;;  %v894_v42 = vmul.f32 0.70710677, %v3594_v60  ;;  %v830_v21 = vmul.f32 0.5, %v3594_v60 }
 0x208   : > { %v2641_v43 = vpop.eup %2640  ;;  %v1016_v45 = vadd.f32 1.0, %v2639_v39  ;;  %v893_v46 = vmul.f32 0.70710677, %v743_v38  ;;  %v2295_v47 = vpop.f32.mrb[60].mxu0  ;;  %v829_v19 = vmul.f32 0.5, %v743_v38 }
 0x209   : > { %v1015_v49 = vadd.f32 1.0, %v2641_v43  ;;  %2650 = verf.f32 %v894_v42  ;;  %v758_v11 = vadd.f32 %v2295_v47, %v3288_v30  ;;  %v752_v51 = vpop.f32.mrb[61].mxu0  ;;  %2382 = vmatprep.mubr.msk.f32.mxu1 %vm1102_vm0, %v1077_v41  ;;  %v3624_v41 = vld [vmem:[#allocation10] ss:$0 sm:$0xff] }
 0x20a   : > { %2652 = verf.f32 %v893_v46  ;;  %v753_v53 = vadd.f32 %v3288_v30, %v752_v51  ;;  %2383 = vmatmul.mubr.msk.f32.gmra.mrb[50].mxu1 %vm1102_vm0, %v1078_v44  ;;  %v1080_v58 = vmul.f32 %v1016_v45, %v824_v52  ;;  %v826_v30 = vmul.f32 0.5, %v3570_v40  ;;  %v2663_v46 = vld [vmem:[%s3210_s28 + $0x8] sm:$0xff] }
 0x20b   : > { %v2643_v54 = vpop.eup %2642  ;;  %v1079_v55 = vmul.f32 %v1015_v49, %v823_v48  ;;  %v896_v56 = vmul.f32 0.70710677, %v758_v11  ;;  %v832_v29 = vmul.f32 0.5, %v758_v11  ;;  %v2664_v48 = vld [vmem:[%s3210_s28] sm:$0xff] }
 0x20c   : > { %v2645_v57 = vpop.eup %2644  ;;  %v1018_v59 = vadd.f32 1.0, %v2643_v54  ;;  %v895_v61 = vmul.f32 0.70710677, %v753_v53  ;;  %v2298_v62 = vpop.f32.mrb[62].mxu0  ;;  %v831_v27 = vmul.f32 0.5, %v753_v53  ;;  %v2665_v54 = vld [vmem:[%s3210_s28 + $0x18] sm:$0xff] }
 0x20d   : > { %v1017_v0 = vadd.f32 1.0, %v2645_v57  ;;  %2654 = verf.f32 %v896_v56  ;;  %v768_v2 = vadd.f32 %v2662_v1, %v2298_v62  ;;  %v762_v25 = vpop.f32.mrb[63].mxu0  ;;  %2385 = vmatprep.mubr.msk.f32.mxu1 %vm1102_vm0, %v1079_v55  ;;  %v2666_v56 = vld [vmem:[%s3210_s28 + $0x10] sm:$0xff] }
 0x20e   : > { %2656 = verf.f32 %v895_v61  ;;  %v763_v3 = vadd.f32 %v2662_v1, %v762_v25  ;;  %2386 = vmatmul.mubr.msk.f32.gmra.mrb[52].mxu1 %vm1102_vm0, %v1080_v58  ;;  %v1082_v8 = vmul.f32 %v1018_v59, %v826_v30  ;;  %v2668_v1 = vld [vmem:[%s3210_s28 + $0x20] sm:$0xff] }
 0x20f   : > { %v2647_v4 = vpop.eup %2646  ;;  %v1081_v5 = vmul.f32 %v1017_v0, %v825_v63  ;;  %v898_v6 = vmul.f32 0.70710677, %v768_v2  ;;  %v834_v37 = vmul.f32 0.5, %v768_v2  ;;  %v2667_v63 = vld [vmem:[%s3210_s28 + $0x28] sm:$0xff] }
 0x210   : > { %v2649_v7 = vpop.eup %2648  ;;  %v1020_v10 = vadd.f32 1.0, %v2647_v4  ;;  %v897_v9 = vmul.f32 0.70710677, %v763_v3  ;;  %v833_v60 = vmul.f32 0.5, %v763_v3 }
 0x211   : > { %v1019_v13 = vadd.f32 1.0, %v2649_v7  ;;  %2658 = verf.f32 %v898_v6  ;;  %2388 = vmatprep.mubr.msk.f32.mxu1 %vm1102_vm0, %v1081_v5  ;;  %v2669_v5 = vld [vmem:[%s3210_s28 + $0x38] sm:$0xff]  ;;  %v2670_v7 = vld [vmem:[%s3210_s28 + $0x30] sm:$0xff] }
 0x212   : > { %2660 = verf.f32 %v897_v9  ;;  %2389 = vmatmul.mubr.msk.f32.gmra.mrb[54].mxu1 %vm1102_vm0, %v1082_v8  ;;  %v1084_v17 = vmul.f32 %v1020_v10, %v828_v14  ;;  %v2671_v14 = vld [vmem:[%s3210_s28 + $0x48] sm:$0xff] }
 0x213   : > { %v2651_v40 = vpop.eup %2650  ;;  %v1083_v15 = vmul.f32 %v1019_v13, %v827_v12 }
 0x214   : > { %v2653_v16 = vpop.eup %2652  ;;  %v1022_v18 = vadd.f32 1.0, %v2651_v40 }
 0x215   : > { %v1021_v20 = vadd.f32 1.0, %v2653_v16  ;;  %2391 = vmatprep.mubr.msk.f32.mxu1 %vm1102_vm0, %v1083_v15  ;;  %v2672_v15 = vld [vmem:[%s3210_s28 + $0x40] sm:$0xff] }
 0x216   : > { %2392 = vmatmul.mubr.msk.f32.gmra.mrb[56].mxu1 %vm1102_vm0, %v1084_v17  ;;  %v1086_v50 = vmul.f32 %v1022_v18, %v830_v21  ;;  %v2673_v21 = vld [vmem:[%s3210_s28 + $0x58] sm:$0xff] }
 0x217   : > { %v2655_v22 = vpop.eup %2654  ;;  %v1085_v23 = vmul.f32 %v1021_v20, %v829_v19 }
 0x218   : > { %v2657_v24 = vpop.eup %2656  ;;  %v1024_v26 = vadd.f32 1.0, %v2655_v22 }
 0x219   : > { %v1023_v28 = vadd.f32 1.0, %v2657_v24  ;;  %2394 = vmatprep.mubr.msk.f32.mxu1 %vm1102_vm0, %v1085_v23  ;;  %v2674_v23 = vld [vmem:[%s3210_s28 + $0x50] sm:$0xff] }
 0x21a   : > { %2395 = vmatmul.mubr.msk.f32.gmra.mrb[58].mxu1 %vm1102_vm0, %v1086_v50  ;;  %v1088_v34 = vmul.f32 %v1024_v26, %v832_v29  ;;  %v2675_v29 = vld [vmem:[%s3210_s28 + $0x68] sm:$0xff] }
 0x21b   : > { %v2659_v31 = vpop.eup %2658  ;;  %v1087_v32 = vmul.f32 %v1023_v28, %v831_v27 }
 0x21c   : > { %v2661_v33 = vpop.eup %2660  ;;  %v1026_v35 = vadd.f32 1.0, %v2659_v31 }
 0x21d   : > { %v1025_v36 = vadd.f32 1.0, %v2661_v33  ;;  %2397 = vmatprep.mubr.msk.f32.mxu1 %vm1102_vm0, %v1087_v32  ;;  %v2676_v32 = vld [vmem:[%s3210_s28 + $0x60] sm:$0xff] }
 0x21e   : > { %2398 = vmatmul.mubr.msk.f32.gmra.mrb[60].mxu1 %vm1102_vm0, %v1088_v34  ;;  %v1090_v39 = vmul.f32 %v1026_v35, %v834_v37  ;;  %v2677_v37 = vld [vmem:[%s3210_s28 + $0x78] sm:$0xff] }
 0x21f   : > { %v1089_v38 = vmul.f32 %v1025_v36, %v833_v60 }
 0x221   : > { %2400 = vmatprep.mubr.msk.f32.mxu1 %vm1102_vm0, %v1089_v38 }
 0x222   : > { %2401 = vmatmul.mubr.msk.f32.gmra.mrb[62].mxu1 %vm1102_vm0, %v1090_v39  ;;  %v2678_v39 = vld [vmem:[%s3210_s28 + $0x70] sm:$0xff] }
 0x279   : > { %v2309_v42 = vpop.f32.mrb[0].mxu1 }
 0x27a   : > { %v1367_v43 = vadd.f32 %v2309_v42, %v3624_v41  ;;  %v1361_v44 = vpop.f32.mrb[1].mxu1 }
 0x27b   : > { %v1362_v45 = vadd.f32 %v3624_v41, %v1361_v44 }
 0x27c   : > { %v1681_v47 = vadd.f32 %v2663_v46, %v1367_v43 }
 0x27d   : > { %v1680_v49 = vadd.f32 %v2664_v48, %v1362_v45  ;;  %v2312_v11 = vpop.f32.mrb[2].mxu1 }
 0x27e   : > { %1745 = vst [vmem:[%s3632_s24 + $0x8] sm:$0xff] %v1681_v47  ;;  %v1377_v51 = vadd.f32 %v2312_v11, %v3624_v41  ;;  %v1371_v52 = vpop.f32.mrb[3].mxu1  ;;  %v2679_v47 = vld [vmem:[%s3210_s28 + $0x88] sm:$0xff] }
 0x27f   : > { %1744 = vst [vmem:[%s3632_s24] sm:$0xff] %v1680_v49  ;;  %v1372_v53 = vadd.f32 %v3624_v41, %v1371_v52  ;;  %v2680_v49 = vld [vmem:[%s3210_s28 + $0x80] sm:$0xff] }
 0x280   : > { %v1683_v55 = vadd.f32 %v2665_v54, %v1377_v51 }
 0x281   : > { %v1682_v57 = vadd.f32 %v2666_v56, %v1372_v53  ;;  %v2315_v58 = vpop.f32.mrb[4].mxu1 }
 0x282   : > { %1747 = vst [vmem:[%s3632_s24 + $0x18] sm:$0xff] %v1683_v55  ;;  %v1387_v59 = vadd.f32 %v2315_v58, %v3624_v41  ;;  %v1381_v61 = vpop.f32.mrb[5].mxu1  ;;  %v2681_v55 = vld [vmem:[%s3210_s28 + $0x98] sm:$0xff] }
 0x283   : > { %1746 = vst [vmem:[%s3632_s24 + $0x10] sm:$0xff] %v1682_v57  ;;  %v1382_v62 = vadd.f32 %v3624_v41, %v1381_v61  ;;  %v2682_v57 = vld [vmem:[%s3210_s28 + $0x90] sm:$0xff] }
 0x284   : > { %v1685_v0 = vadd.f32 %v2667_v63, %v1387_v59 }
 0x285   : > { %v1684_v2 = vadd.f32 %v2668_v1, %v1382_v62  ;;  %v2318_v25 = vpop.f32.mrb[6].mxu1 }
 0x286   : > { %1749 = vst [vmem:[%s3632_s24 + $0x28] sm:$0xff] %v1685_v0  ;;  %v1397_v30 = vadd.f32 %v2318_v25, %v3624_v41  ;;  %v1391_v3 = vpop.f32.mrb[7].mxu1  ;;  %v2683_v0 = vld [vmem:[%s3210_s28 + $0xa8] sm:$0xff] }
 0x287   : > { %1748 = vst [vmem:[%s3632_s24 + $0x20] sm:$0xff] %v1684_v2  ;;  %v1392_v4 = vadd.f32 %v3624_v41, %v1391_v3  ;;  %v2684_v2 = vld [vmem:[%s3210_s28 + $0xa0] sm:$0xff] }
 0x288   : > { %v1687_v6 = vadd.f32 %v2669_v5, %v1397_v30 }
 0x289   : > { %v1686_v8 = vadd.f32 %v2670_v7, %v1392_v4  ;;  %v2321_v10 = vpop.f32.mrb[8].mxu1 }
 0x28a   : > { %1751 = vst [vmem:[%s3632_s24 + $0x38] sm:$0xff] %v1687_v6  ;;  %v1407_v9 = vadd.f32 %v2321_v10, %v3624_v41  ;;  %v1401_v12 = vpop.f32.mrb[9].mxu1  ;;  %v2685_v6 = vld [vmem:[%s3210_s28 + $0xb8] sm:$0xff] }
 0x28b   : > { %1750 = vst [vmem:[%s3632_s24 + $0x30] sm:$0xff] %v1686_v8  ;;  %v1402_v13 = vadd.f32 %v3624_v41, %v1401_v12  ;;  %v2686_v8 = vld [vmem:[%s3210_s28 + $0xb0] sm:$0xff] }
 0x28c   : > { %v1689_v40 = vadd.f32 %v2671_v14, %v1407_v9 }
 0x28d   : > { %v1688_v16 = vadd.f32 %v2672_v15, %v1402_v13  ;;  %v2324_v17 = vpop.f32.mrb[10].mxu1 }
 0x28e   : > { %1753 = vst [vmem:[%s3632_s24 + $0x48] sm:$0xff] %v1689_v40  ;;  %v1417_v18 = vadd.f32 %v2324_v17, %v3624_v41  ;;  %v1411_v19 = vpop.f32.mrb[11].mxu1  ;;  %v2687_v40 = vld [vmem:[%s3210_s28 + $0xc8] sm:$0xff] }
 0x28f   : > { %1752 = vst [vmem:[%s3632_s24 + $0x40] sm:$0xff] %v1688_v16  ;;  %v1412_v20 = vadd.f32 %v3624_v41, %v1411_v19  ;;  %v2688_v16 = vld [vmem:[%s3210_s28 + $0xc0] sm:$0xff] }
 0x290   : > { %v1691_v22 = vadd.f32 %v2673_v21, %v1417_v18 }
 0x291   : > { %v1690_v24 = vadd.f32 %v2674_v23, %v1412_v20  ;;  %v2327_v50 = vpop.f32.mrb[12].mxu1 }
 0x292   : > { %1755 = vst [vmem:[%s3632_s24 + $0x58] sm:$0xff] %v1691_v22  ;;  %v1427_v26 = vadd.f32 %v2327_v50, %v3624_v41  ;;  %v1421_v27 = vpop.f32.mrb[13].mxu1  ;;  %v2689_v22 = vld [vmem:[%s3210_s28 + $0xd8] sm:$0xff] }
 0x293   : > { %1754 = vst [vmem:[%s3632_s24 + $0x50] sm:$0xff] %v1690_v24  ;;  %v1422_v28 = vadd.f32 %v3624_v41, %v1421_v27  ;;  %v2690_v24 = vld [vmem:[%s3210_s28 + $0xd0] sm:$0xff] }
 0x294   : > { %v1693_v31 = vadd.f32 %v2675_v29, %v1427_v26 }
 0x295   : > { %v1692_v33 = vadd.f32 %v2676_v32, %v1422_v28  ;;  %v2330_v34 = vpop.f32.mrb[14].mxu1 }
 0x296   : > { %1757 = vst [vmem:[%s3632_s24 + $0x68] sm:$0xff] %v1693_v31  ;;  %v1437_v35 = vadd.f32 %v2330_v34, %v3624_v41  ;;  %v1431_v60 = vpop.f32.mrb[15].mxu1  ;;  %v2691_v31 = vld [vmem:[%s3210_s28 + $0xe8] sm:$0xff] }
 0x297   : > { %1756 = vst [vmem:[%s3632_s24 + $0x60] sm:$0xff] %v1692_v33  ;;  %v1432_v36 = vadd.f32 %v3624_v41, %v1431_v60  ;;  %v2692_v33 = vld [vmem:[%s3210_s28 + $0xe0] sm:$0xff] }
 0x298   : > { %v1695_v38 = vadd.f32 %v2677_v37, %v1437_v35 }
 0x299   : > { %v1694_v42 = vadd.f32 %v2678_v39, %v1432_v36  ;;  %v2333_v43 = vpop.f32.mrb[16].mxu1 }
 0x29a   : > { %1759 = vst [vmem:[%s3632_s24 + $0x78] sm:$0xff] %v1695_v38  ;;  %v1447_v44 = vadd.f32 %v2333_v43, %v3624_v41  ;;  %v1441_v45 = vpop.f32.mrb[17].mxu1  ;;  %v2693_v38 = vld [vmem:[%s3210_s28 + $0xf8] sm:$0xff] }
 0x29b   : > { %1758 = vst [vmem:[%s3632_s24 + $0x70] sm:$0xff] %v1694_v42  ;;  %v1442_v46 = vadd.f32 %v3624_v41, %v1441_v45  ;;  %v2694_v42 = vld [vmem:[%s3210_s28 + $0xf0] sm:$0xff] }
 0x29c   : > { %v1697_v48 = vadd.f32 %v2679_v47, %v1447_v44 }
 0x29d   : > { %v1696_v11 = vadd.f32 %v2680_v49, %v1442_v46  ;;  %v2336_v51 = vpop.f32.mrb[18].mxu1 }
 0x29e   : > { %1761 = vst [vmem:[%s3632_s24 + $0x88] sm:$0xff] %v1697_v48  ;;  %v1457_v52 = vadd.f32 %v2336_v51, %v3624_v41  ;;  %v1451_v53 = vpop.f32.mrb[19].mxu1  ;;  %v2695_v48 = vld [vmem:[%s3210_s28 + $0x108] sm:$0xff] }
 0x29f   : > { %1760 = vst [vmem:[%s3632_s24 + $0x80] sm:$0xff] %v1696_v11  ;;  %v1452_v54 = vadd.f32 %v3624_v41, %v1451_v53  ;;  %v2696_v11 = vld [vmem:[%s3210_s28 + $0x100] sm:$0xff] }
 0x2a0   : > { %v1699_v56 = vadd.f32 %v2681_v55, %v1457_v52 }
 0x2a1   : > { %v1698_v58 = vadd.f32 %v2682_v57, %v1452_v54  ;;  %v2339_v59 = vpop.f32.mrb[20].mxu1 }
 0x2a2   : > { %1763 = vst [vmem:[%s3632_s24 + $0x98] sm:$0xff] %v1699_v56  ;;  %v1467_v61 = vadd.f32 %v2339_v59, %v3624_v41  ;;  %v1461_v62 = vpop.f32.mrb[21].mxu1  ;;  %v2697_v56 = vld [vmem:[%s3210_s28 + $0x118] sm:$0xff] }
 0x2a3   : > { %1762 = vst [vmem:[%s3632_s24 + $0x90] sm:$0xff] %v1698_v58  ;;  %v1462_v63 = vadd.f32 %v3624_v41, %v1461_v62  ;;  %v2698_v58 = vld [vmem:[%s3210_s28 + $0x110] sm:$0xff] }
 0x2a4   : > { %v1701_v1 = vadd.f32 %v2683_v0, %v1467_v61 }
 0x2a5   : > { %v1700_v25 = vadd.f32 %v2684_v2, %v1462_v63  ;;  %v2342_v30 = vpop.f32.mrb[22].mxu1 }
 0x2a6   : > { %1765 = vst [vmem:[%s3632_s24 + $0xa8] sm:$0xff] %v1701_v1  ;;  %v1477_v3 = vadd.f32 %v2342_v30, %v3624_v41  ;;  %v1471_v4 = vpop.f32.mrb[23].mxu1  ;;  %v2699_v1 = vld [vmem:[%s3210_s28 + $0x128] sm:$0xff] }
 0x2a7   : > { %1764 = vst [vmem:[%s3632_s24 + $0xa0] sm:$0xff] %v1700_v25  ;;  %v1472_v5 = vadd.f32 %v3624_v41, %v1471_v4  ;;  %v2700_v25 = vld [vmem:[%s3210_s28 + $0x120] sm:$0xff] }
 0x2a8   : > { %v1703_v7 = vadd.f32 %v2685_v6, %v1477_v3 }
 0x2a9   : > { %v1702_v10 = vadd.f32 %v2686_v8, %v1472_v5  ;;  %v2345_v9 = vpop.f32.mrb[24].mxu1 }
 0x2aa   : > { %1767 = vst [vmem:[%s3632_s24 + $0xb8] sm:$0xff] %v1703_v7  ;;  %v1487_v12 = vadd.f32 %v2345_v9, %v3624_v41  ;;  %v1481_v13 = vpop.f32.mrb[25].mxu1  ;;  %v2701_v7 = vld [vmem:[%s3210_s28 + $0x138] sm:$0xff] }
 0x2ab   : > { %1766 = vst [vmem:[%s3632_s24 + $0xb0] sm:$0xff] %v1702_v10  ;;  %v1482_v14 = vadd.f32 %v3624_v41, %v1481_v13  ;;  %v2702_v10 = vld [vmem:[%s3210_s28 + $0x130] sm:$0xff] }
 0x2ac   : > { %v1705_v15 = vadd.f32 %v2687_v40, %v1487_v12 }
 0x2ad   : > { %v1704_v17 = vadd.f32 %v2688_v16, %v1482_v14  ;;  %v2348_v18 = vpop.f32.mrb[26].mxu1 }
 0x2ae   : > { %1769 = vst [vmem:[%s3632_s24 + $0xc8] sm:$0xff] %v1705_v15  ;;  %v1497_v19 = vadd.f32 %v2348_v18, %v3624_v41  ;;  %v1491_v20 = vpop.f32.mrb[27].mxu1  ;;  %v2703_v15 = vld [vmem:[%s3210_s28 + $0x148] sm:$0xff] }
 0x2af   : > { %1768 = vst [vmem:[%s3632_s24 + $0xc0] sm:$0xff] %v1704_v17  ;;  %v1492_v21 = vadd.f32 %v3624_v41, %v1491_v20  ;;  %v2704_v17 = vld [vmem:[%s3210_s28 + $0x140] sm:$0xff] }
 0x2b0   : > { %v1707_v23 = vadd.f32 %v2689_v22, %v1497_v19 }
 0x2b1   : > { %v1706_v50 = vadd.f32 %v2690_v24, %v1492_v21  ;;  %v2351_v26 = vpop.f32.mrb[28].mxu1 }
 0x2b2   : > { %1771 = vst [vmem:[%s3632_s24 + $0xd8] sm:$0xff] %v1707_v23  ;;  %v1507_v27 = vadd.f32 %v2351_v26, %v3624_v41  ;;  %v1501_v28 = vpop.f32.mrb[29].mxu1  ;;  %v2705_v23 = vld [vmem:[%s3210_s28 + $0x158] sm:$0xff] }
 0x2b3   : > { %1770 = vst [vmem:[%s3632_s24 + $0xd0] sm:$0xff] %v1706_v50  ;;  %v1502_v29 = vadd.f32 %v3624_v41, %v1501_v28  ;;  %v2706_v50 = vld [vmem:[%s3210_s28 + $0x150] sm:$0xff] }
 0x2b4   : > { %v1709_v32 = vadd.f32 %v2691_v31, %v1507_v27 }
 0x2b5   : > { %v1708_v34 = vadd.f32 %v2692_v33, %v1502_v29  ;;  %v2354_v35 = vpop.f32.mrb[30].mxu1 }
 0x2b6   : > { %1773 = vst [vmem:[%s3632_s24 + $0xe8] sm:$0xff] %v1709_v32  ;;  %v1517_v60 = vadd.f32 %v2354_v35, %v3624_v41  ;;  %v1511_v36 = vpop.f32.mrb[31].mxu1  ;;  %v2707_v32 = vld [vmem:[%s3210_s28 + $0x168] sm:$0xff] }
 0x2b7   : > { %1772 = vst [vmem:[%s3632_s24 + $0xe0] sm:$0xff] %v1708_v34  ;;  %v1512_v37 = vadd.f32 %v3624_v41, %v1511_v36  ;;  %v2708_v34 = vld [vmem:[%s3210_s28 + $0x160] sm:$0xff] }
 0x2b8   : > { %v1711_v39 = vadd.f32 %v2693_v38, %v1517_v60 }
 0x2b9   : > { %v1710_v43 = vadd.f32 %v2694_v42, %v1512_v37  ;;  %v2357_v44 = vpop.f32.mrb[32].mxu1 }
 0x2ba   : > { %1775 = vst [vmem:[%s3632_s24 + $0xf8] sm:$0xff] %v1711_v39  ;;  %v1527_v45 = vadd.f32 %v2357_v44, %v3624_v41  ;;  %v1521_v46 = vpop.f32.mrb[33].mxu1  ;;  %v2709_v39 = vld [vmem:[%s3210_s28 + $0x178] sm:$0xff] }
 0x2bb   : > { %1774 = vst [vmem:[%s3632_s24 + $0xf0] sm:$0xff] %v1710_v43  ;;  %v1522_v47 = vadd.f32 %v3624_v41, %v1521_v46  ;;  %v2710_v43 = vld [vmem:[%s3210_s28 + $0x170] sm:$0xff] }
 0x2bc   : > { %v1713_v49 = vadd.f32 %v2695_v48, %v1527_v45 }
 0x2bd   : > { %v1712_v51 = vadd.f32 %v2696_v11, %v1522_v47  ;;  %v2360_v52 = vpop.f32.mrb[34].mxu1 }
 0x2be   : > { %1777 = vst [vmem:[%s3632_s24 + $0x108] sm:$0xff] %v1713_v49  ;;  %v1537_v53 = vadd.f32 %v2360_v52, %v3624_v41  ;;  %v1531_v54 = vpop.f32.mrb[35].mxu1  ;;  %v2711_v49 = vld [vmem:[%s3210_s28 + $0x188] sm:$0xff] }
 0x2bf   : > { %1776 = vst [vmem:[%s3632_s24 + $0x100] sm:$0xff] %v1712_v51  ;;  %v1532_v55 = vadd.f32 %v3624_v41, %v1531_v54  ;;  %v2712_v51 = vld [vmem:[%s3210_s28 + $0x180] sm:$0xff] }
 0x2c0   : > { %v1715_v57 = vadd.f32 %v2697_v56, %v1537_v53 }
 0x2c1   : > { %v1714_v59 = vadd.f32 %v2698_v58, %v1532_v55  ;;  %v2363_v61 = vpop.f32.mrb[36].mxu1 }
 0x2c2   : > { %1779 = vst [vmem:[%s3632_s24 + $0x118] sm:$0xff] %v1715_v57  ;;  %v1547_v62 = vadd.f32 %v2363_v61, %v3624_v41  ;;  %v1541_v63 = vpop.f32.mrb[37].mxu1  ;;  %v2713_v57 = vld [vmem:[%s3210_s28 + $0x198] sm:$0xff] }
 0x2c3   : > { %1778 = vst [vmem:[%s3632_s24 + $0x110] sm:$0xff] %v1714_v59  ;;  %v1542_v0 = vadd.f32 %v3624_v41, %v1541_v63  ;;  %v2714_v59 = vld [vmem:[%s3210_s28 + $0x190] sm:$0xff] }
 0x2c4   : > { %v1717_v2 = vadd.f32 %v2699_v1, %v1547_v62 }
 0x2c5   : > { %v1716_v30 = vadd.f32 %v2700_v25, %v1542_v0  ;;  %v2366_v3 = vpop.f32.mrb[38].mxu1 }
 0x2c6   : > { %1781 = vst [vmem:[%s3632_s24 + $0x128] sm:$0xff] %v1717_v2  ;;  %v1557_v4 = vadd.f32 %v2366_v3, %v3624_v41  ;;  %v1551_v5 = vpop.f32.mrb[39].mxu1  ;;  %v2715_v2 = vld [vmem:[%s3210_s28 + $0x1a8] sm:$0xff] }
 0x2c7   : > { %1780 = vst [vmem:[%s3632_s24 + $0x120] sm:$0xff] %v1716_v30  ;;  %v1552_v6 = vadd.f32 %v3624_v41, %v1551_v5  ;;  %v2716_v30 = vld [vmem:[%s3210_s28 + $0x1a0] sm:$0xff] }
 0x2c8   : > { %v1719_v8 = vadd.f32 %v2701_v7, %v1557_v4 }
 0x2c9   : > { %v1718_v9 = vadd.f32 %v2702_v10, %v1552_v6  ;;  %v2369_v12 = vpop.f32.mrb[40].mxu1 }
 0x2ca   : > { %1783 = vst [vmem:[%s3632_s24 + $0x138] sm:$0xff] %v1719_v8  ;;  %v1567_v13 = vadd.f32 %v2369_v12, %v3624_v41  ;;  %v1561_v14 = vpop.f32.mrb[41].mxu1  ;;  %v2717_v8 = vld [vmem:[%s3210_s28 + $0x1b8] sm:$0xff] }
 0x2cb   : > { %1782 = vst [vmem:[%s3632_s24 + $0x130] sm:$0xff] %v1718_v9  ;;  %v1562_v40 = vadd.f32 %v3624_v41, %v1561_v14  ;;  %v2718_v9 = vld [vmem:[%s3210_s28 + $0x1b0] sm:$0xff] }
 0x2cc   : > { %v1721_v16 = vadd.f32 %v2703_v15, %v1567_v13 }
 0x2cd   : > { %v1720_v18 = vadd.f32 %v2704_v17, %v1562_v40  ;;  %v2372_v19 = vpop.f32.mrb[42].mxu1 }
 0x2ce   : > { %1785 = vst [vmem:[%s3632_s24 + $0x148] sm:$0xff] %v1721_v16  ;;  %v1577_v20 = vadd.f32 %v2372_v19, %v3624_v41  ;;  %v1571_v21 = vpop.f32.mrb[43].mxu1  ;;  %v2719_v16 = vld [vmem:[%s3210_s28 + $0x1c8] sm:$0xff] }
 0x2cf   : > { %1784 = vst [vmem:[%s3632_s24 + $0x140] sm:$0xff] %v1720_v18  ;;  %v1572_v22 = vadd.f32 %v3624_v41, %v1571_v21  ;;  %v2720_v18 = vld [vmem:[%s3210_s28 + $0x1c0] sm:$0xff] }
 0x2d0   : > { %v1723_v24 = vadd.f32 %v2705_v23, %v1577_v20 }
 0x2d1   : > { %v1722_v26 = vadd.f32 %v2706_v50, %v1572_v22  ;;  %v2375_v27 = vpop.f32.mrb[44].mxu1 }
 0x2d2   : > { %1787 = vst [vmem:[%s3632_s24 + $0x158] sm:$0xff] %v1723_v24  ;;  %v1587_v28 = vadd.f32 %v2375_v27, %v3624_v41  ;;  %v1581_v29 = vpop.f32.mrb[45].mxu1  ;;  %v2721_v24 = vld [vmem:[%s3210_s28 + $0x1d8] sm:$0xff] }
 0x2d3   : > { %1786 = vst [vmem:[%s3632_s24 + $0x150] sm:$0xff] %v1722_v26  ;;  %v1582_v31 = vadd.f32 %v3624_v41, %v1581_v29  ;;  %v2722_v26 = vld [vmem:[%s3210_s28 + $0x1d0] sm:$0xff] }
 0x2d4   : > { %v1725_v33 = vadd.f32 %v2707_v32, %v1587_v28 }
 0x2d5   : > { %v1724_v35 = vadd.f32 %v2708_v34, %v1582_v31  ;;  %v2378_v60 = vpop.f32.mrb[46].mxu1 }
 0x2d6   : > { %1789 = vst [vmem:[%s3632_s24 + $0x168] sm:$0xff] %v1725_v33  ;;  %v1597_v36 = vadd.f32 %v2378_v60, %v3624_v41  ;;  %v1591_v37 = vpop.f32.mrb[47].mxu1  ;;  %v2723_v33 = vld [vmem:[%s3210_s28 + $0x1e8] sm:$0xff] }
 0x2d7   : > { %1788 = vst [vmem:[%s3632_s24 + $0x160] sm:$0xff] %v1724_v35  ;;  %v1592_v38 = vadd.f32 %v3624_v41, %v1591_v37  ;;  %v2724_v35 = vld [vmem:[%s3210_s28 + $0x1e0] sm:$0xff] }
 0x2d8   : > { %v1727_v42 = vadd.f32 %v2709_v39, %v1597_v36 }
 0x2d9   : > { %v1726_v44 = vadd.f32 %v2710_v43, %v1592_v38  ;;  %v2381_v45 = vpop.f32.mrb[48].mxu1 }
 0x2da   : > { %1791 = vst [vmem:[%s3632_s24 + $0x178] sm:$0xff] %v1727_v42  ;;  %v1607_v46 = vadd.f32 %v2381_v45, %v3624_v41  ;;  %v1601_v47 = vpop.f32.mrb[49].mxu1  ;;  %v2725_v42 = vld [vmem:[%s3210_s28 + $0x1f8] sm:$0xff] }
 0x2db   : > { %1790 = vst [vmem:[%s3632_s24 + $0x170] sm:$0xff] %v1726_v44  ;;  %v1602_v48 = vadd.f32 %v3624_v41, %v1601_v47  ;;  %v2726_v44 = vld [vmem:[%s3210_s28 + $0x1f0] sm:$0xff] }
 0x2dc   : > { %v1729_v11 = vadd.f32 %v2711_v49, %v1607_v46 }
 0x2dd   : > { %v1728_v52 = vadd.f32 %v2712_v51, %v1602_v48  ;;  %v2384_v53 = vpop.f32.mrb[50].mxu1 }
 0x2de   : > { %1793 = vst [vmem:[%s3632_s24 + $0x188] sm:$0xff] %v1729_v11  ;;  %v1617_v54 = vadd.f32 %v2384_v53, %v3624_v41  ;;  %v1611_v55 = vpop.f32.mrb[51].mxu1 }
 0x2df   : > { %1792 = vst [vmem:[%s3632_s24 + $0x180] sm:$0xff] %v1728_v52  ;;  %v1612_v56 = vadd.f32 %v3624_v41, %v1611_v55 }
 0x2e0   : > { %v1731_v58 = vadd.f32 %v2713_v57, %v1617_v54 }
 0x2e1   : > { %v1730_v61 = vadd.f32 %v2714_v59, %v1612_v56  ;;  %v2387_v62 = vpop.f32.mrb[52].mxu1 }
 0x2e2   : > { %1795 = vst [vmem:[%s3632_s24 + $0x198] sm:$0xff] %v1731_v58  ;;  %v1627_v63 = vadd.f32 %v2387_v62, %v3624_v41  ;;  %v1621_v0 = vpop.f32.mrb[53].mxu1 }
 0x2e3   : > { %1794 = vst [vmem:[%s3632_s24 + $0x190] sm:$0xff] %v1730_v61  ;;  %v1622_v1 = vadd.f32 %v3624_v41, %v1621_v0 }
 0x2e4   : > { %v1733_v25 = vadd.f32 %v2715_v2, %v1627_v63 }
 0x2e5   : > { %v1732_v3 = vadd.f32 %v2716_v30, %v1622_v1  ;;  %v2390_v4 = vpop.f32.mrb[54].mxu1 }
 0x2e6   : > { %1797 = vst [vmem:[%s3632_s24 + $0x1a8] sm:$0xff] %v1733_v25  ;;  %v1637_v5 = vadd.f32 %v2390_v4, %v3624_v41  ;;  %v1631_v6 = vpop.f32.mrb[55].mxu1 }
 0x2e7   : > { %1796 = vst [vmem:[%s3632_s24 + $0x1a0] sm:$0xff] %v1732_v3  ;;  %v1632_v7 = vadd.f32 %v3624_v41, %v1631_v6 }
 0x2e8   : > { %v1735_v10 = vadd.f32 %v2717_v8, %v1637_v5 }
 0x2e9   : > { %v1734_v12 = vadd.f32 %v2718_v9, %v1632_v7  ;;  %v2393_v13 = vpop.f32.mrb[56].mxu1 }
 0x2ea   : > { %1799 = vst [vmem:[%s3632_s24 + $0x1b8] sm:$0xff] %v1735_v10  ;;  %v1647_v14 = vadd.f32 %v2393_v13, %v3624_v41  ;;  %v1641_v40 = vpop.f32.mrb[57].mxu1 }
 0x2eb   : > { %1798 = vst [vmem:[%s3632_s24 + $0x1b0] sm:$0xff] %v1734_v12  ;;  %v1642_v15 = vadd.f32 %v3624_v41, %v1641_v40 }
 0x2ec   : > { %v1737_v17 = vadd.f32 %v2719_v16, %v1647_v14 }
 0x2ed   : > { %v1736_v19 = vadd.f32 %v2720_v18, %v1642_v15  ;;  %v2396_v20 = vpop.f32.mrb[58].mxu1 }
 0x2ee   : > { %1801 = vst [vmem:[%s3632_s24 + $0x1c8] sm:$0xff] %v1737_v17  ;;  %v1657_v21 = vadd.f32 %v2396_v20, %v3624_v41  ;;  %v1651_v22 = vpop.f32.mrb[59].mxu1 }
 0x2ef   : > { %1800 = vst [vmem:[%s3632_s24 + $0x1c0] sm:$0xff] %v1736_v19  ;;  %v1652_v23 = vadd.f32 %v3624_v41, %v1651_v22 }
 0x2f0   : > { %v1739_v50 = vadd.f32 %v2721_v24, %v1657_v21 }
 0x2f1   : > { %v1738_v27 = vadd.f32 %v2722_v26, %v1652_v23  ;;  %v2399_v28 = vpop.f32.mrb[60].mxu1 }
 0x2f2   : > { %1803 = vst [vmem:[%s3632_s24 + $0x1d8] sm:$0xff] %v1739_v50  ;;  %v1667_v29 = vadd.f32 %v2399_v28, %v3624_v41  ;;  %v1661_v31 = vpop.f32.mrb[61].mxu1 }
 0x2f3   : > { %1802 = vst [vmem:[%s3632_s24 + $0x1d0] sm:$0xff] %v1738_v27  ;;  %v1662_v32 = vadd.f32 %v3624_v41, %v1661_v31 }
 0x2f4   : > { %v1741_v34 = vadd.f32 %v2723_v33, %v1667_v29 }
 0x2f5   : > { %v1740_v60 = vadd.f32 %v2724_v35, %v1662_v32  ;;  %v2402_v36 = vpop.f32.mrb[62].mxu1 }
 0x2f6   : > { %1805 = vst [vmem:[%s3632_s24 + $0x1e8] sm:$0xff] %v1741_v34  ;;  %v1677_v37 = vadd.f32 %v2402_v36, %v3624_v41  ;;  %v1671_v38 = vpop.f32.mrb[63].mxu1 }
 0x2f7   : > { %1804 = vst [vmem:[%s3632_s24 + $0x1e0] sm:$0xff] %v1740_v60  ;;  %v1672_v39 = vadd.f32 %v3624_v41, %v1671_v38 }
 0x2f8   : > { %v1743_v43 = vadd.f32 %v2725_v42, %v1677_v37 }
 0x2f9   : > { %v1742_v45 = vadd.f32 %v2726_v44, %v1672_v39 }
 0x2fa   : > { %1807 = vst [vmem:[%s3632_s24 + $0x1f8] sm:$0xff] %v1743_v43 }
 0x2fb   : > { %1806 = vst [vmem:[%s3632_s24 + $0x1f0] sm:$0xff] %v1742_v45 }
 0x2fc   : > { %2882 = shalt.err (!%p2879_p12)
}
 0x2fd   : > { %s2883_s29 = scalar_lea.hbm %s3824_s6, 8192  ;;  %s2887_s13 = scalar_lea.hbm %s3877_s5, 32768 }
 0x2fe   : > { %p2884_p9 = scmp.ne.s32.totalorder %s3824_s6, %s2883_s29  ;;  %p2888_p6 = scmp.lt.u32.totalorder %s3824_s6, %s3877_s5 }
 0x2ff   : > { %p2889_p4 = scmp.lt.u32.totalorder %s2887_s13, %s2883_s29  ;;  %p2891_p3 = scmp.lt.u32.totalorder %s2883_s29, %s3824_s6 }
 0x300   : > { %p2885_p13 = pnand %p2884_p9, %p3149_p0 }
 0x301   : > { %p2890_p8 = por %p2889_p4, %p2888_p6 }
 0x302   : > { %p2886_p10 = pneg %p2885_p13 }
 0x303   : > { %p2892_p5 = por %p2891_p3, %p2890_p8 }
 0x305   : > { %p2893_p7 = pnand %p2892_p5, %p2886_p10 }
 0x307   : > { %2896 = shalt.err (!%p2893_p7)
}
 0x308   : > { %s2953_s26 = smov 128   ;;  %s2954_s27 = smov 8  }
 0x309   : > { %2461 = dma.vmem_to_hbm [thread:$0]  (%p3149_p0), %s3826_s23, 8192, %s3824_s6, %s1809_s22, %s2953_s26, %s2953_s26, %s2954_s27  }
 0x30a PF: > { %p2493_p11 = scmp.ge.s32.totalorder %s2943_s21, 2  ;;  %s1837_s16 = sand.u32 1, %s2931_s18  }
 0x30b   : > { %p3895_p1 = scmp.ne.s32.totalorder %s3882_s25, 0  ;;  %s1838_s17 = scalar_lea.sflag [#allocation4], %s1837_s16 }
 0x30d   : > { %p2481_p2 = pnand %p2493_p11, %p3895_p1 }
 0x30f   : > { %2926 = dma.done.wait (!%p2481_p2), %s1838_s17, 8192  }
 0x310   : > { %2928 = vsyncadd (!%p2481_p2), %s1838_s17, 4294959104  ;;  %p20_p12 = scmp.ge.s32.totalorder %s3139_s14, 6   ;;  %s3896_s18 = smov %s2935_s19 }
 0x311   : > { %s3897_s19 = smov %s2939_s20  ;;  %s3898_s20 = smov %s3155_s10 }
 0x312   : > { %s3899_s21 = smov %s3139_s14  ;;  %22 = sbr.rel (!%p20_p12) target bundleno = 7 (0x7), region = 101 }
 0x319   :  { %1843 = vsyncpa [#allocation3], 1 }
 0x31a   :  { %1845 = vsyncpa [#allocation3 + $0x1], 1 }
 0x31b   :  { %1846 = vsyncpa [#allocation6], 1 }
 0x31c   :  { %1847 = vsyncpa [#allocation9], 1 }
 0x31d   :  { %1848 = vsyncpa [#allocation4], 1 }
 0x31e   :  { %1850 = vsyncpa [#allocation4 + $0x1], 1 }

// kernel: tpu_custom_call.1
= control target key start
LH: loop header
LB: loop body
LE: loop exit
PB: predicated region body
PF: predicated region fallthrough
CT: control target
= control target key end

     0   :  { %10 = vsyncpa [#allocation3], 0  ;;  %s3872_s0 = inlined_call_operand.hbm [shape: f32[2048,128], index: 0, kind: input, shape index: {}]   ;;  %s3873_s1 = inlined_call_operand.hbm [shape: f32[128,32], index: 1, kind: input, shape index: {}]   ;;  %s3874_s2 = inlined_call_operand.hbm [shape: f32[1,32], index: 2, kind: input, shape index: {}]   ;;  %s3875_s3 = inlined_call_operand.hbm [shape: f32[32,128], index: 3, kind: input, shape index: {}]   ;;  %s3876_s4 = inlined_call_operand.hbm [shape: f32[1,128], index: 4, kind: input, shape index: {}]   ;;  %s3877_s5 = inlined_call_operand.hbm [shape: f32[2048,128], index: 5, kind: output, shape index: {}]  }
   0x1   :  { %12 = vsyncpa [#allocation3 + $0x1], 0 }
   0x2   :  { %13 = vsyncpa [#allocation6], 0 }
   0x3   :  { %14 = vsyncpa [#allocation9], 0 }
   0x4   :  { %15 = vsyncpa [#allocation4], 0 }
   0x5   :  { %17 = vsyncpa [#allocation4 + $0x1], 0  ;;  %s2985_s18 = smov 0   ;;  %s2987_s19 = smov 0  }
   0x6   :  { %s2989_s20 = smov 0   ;;  %s2991_s21 = smov 0  }
   0x7 LB: > { %s3006_s22 = sadd.s32 4294967295, %s2943_s21   ;;  %s1933_s23 = sadd.s32 4294967294, %s2943_s21   ;;  %s2943_s21 = sphi %s2991_s21, %s3899_s21   ;;  %s2939_s20 = sphi %s2989_s20, %s3898_s20   ;;  %s2935_s19 = sphi %s2987_s19, %s3897_s19   ;;  %s2931_s18 = sphi %s2985_s18, %s3896_s18  }
   0x8   : > { %p43_p0 = scmp.ne.s32.totalorder %s2935_s19, %s2931_s18  ;;  %p3878_p1 = scmp.eq.s32.totalorder %s3006_s22, 0 }
   0x9   : > { %p157_p3 = scmp.eq.s32.totalorder %s1933_s23, 3  ;;  %p1934_p5 = scmp.ge.s32.totalorder %s2943_s21, 1 }
   0xa   : > { %p3015_p4 = por %p3878_p1, %p43_p0  ;;  %p164_p7 = scmp.lt.s32.totalorder %s2943_s21, 5 }
   0xb   : > { %p3020_p6 = por %p157_p3, %p43_p0  ;;  %s2945_s27 = smov [#allocation5]  }
   0xc   : > { %s3881_s24 = scalar_select %p3015_p4, 1, 0 }
   0xd   : > { %s3882_s25 = scalar_select %p3020_p6, 1, 0 }
   0xe   : > { %p3025_p8 = pnand %p1934_p5, %p164_p7  ;;  %s176_s28 = sshll.u32 %s2945_s27, 4  ;;  %s3029_s28 = int_to_ptr.vmem [resolvable:$true] %s176_s28 }
   0xf   : > { %s2946_s30 = smov [#allocation8]   ;;  %s2947_s7 = smov [#allocation7]  }
  0x10   : > { %s3883_s26 = scalar_select %p3025_p8, 1, 0 }
  0x11   : > { %p2463_p9 = pneg %p3025_p8  ;;  %s200_s6 = sshll.u32 %s2946_s30, 4  ;;  %s3039_s6 = int_to_ptr.vmem [resolvable:$true] %s200_s6 }
  0x12   : > { %s3041_s8 = sshll.u32 %s2947_s7, 4  ;;  %s2727_s11 = scalar_lea.hbm %s3873_s1, 2048  ;;  %s191_s8 = int_to_ptr.vmem [resolvable:$true] %s3041_s8 }
  0x13   : > { %p3035_p10 = pnand %p2463_p9, %p3878_p1  ;;  %p2728_p11 = scmp.ne.s32.totalorder %s3873_s1, %s2727_s11 }
  0x14   : > { %p2734_p3 = scmp.lt.u32.totalorder %s2727_s11, %s3873_s1 }
  0x15   : > { %p3051_p12 = pneg %p3035_p10 }
  0x17   : > { %p2730_p13 = pnand %p3051_p12, %p2728_p11 }
  0x19   : > { %p2731_p0 = pneg %p2730_p13 }
  0x1b   : > { %p2736_p5 = pnand %p2734_p3, %p2731_p0 }
  0x1d   : > { %2739 = shalt.err (!%p2736_p5)
}
  0x1e   : > { %s2740_s17 = scalar_lea.vmem %s3029_s28, 2048  ;;  %p2748_p2 = scmp.lt.s32.totalorder %s3029_s28, %s3029_s28 }
  0x1f   : > { %p2741_p7 = scmp.ne.s32.totalorder %s3029_s28, %s2740_s17  ;;  %p2749_p6 = scmp.lt.s32.totalorder %s2740_s17, %s2740_s17 }
  0x21   : > { %p2743_p9 = pnand %p2741_p7, %p3051_p12  ;;  %p2750_p11 = por %p2749_p6, %p2748_p2 }
  0x23   : > { %p2744_p1 = pneg %p2743_p9 }
  0x25   : > { %p2751_p13 = pnand %p2750_p11, %p2744_p1 }
  0x27   : > { %2754 = shalt.err (!%p2751_p13)
}
  0x28   : > { %s2948_s23 = smov 128   ;;  %s2949_s27 = smov 8  }
  0x29   : > { %2466 = dma.hbm_to_vmem [thread:$0]  (!%p3035_p10), %s3873_s1, 2048, %s3029_s28, [#allocation6], %s2948_s23, %s2948_s23, %s2949_s27  }
  0x2a   : > { %s2755_s11 = scalar_lea.hbm %s3875_s3, 512 }
  0x2b   : > { %p2756_p1 = scmp.ne.s32.totalorder %s3875_s3, %s2755_s11  ;;  %p2762_p0 = scmp.lt.u32.totalorder %s2755_s11, %s3875_s3 }
  0x2d   : > { %p2758_p2 = pnand %p2756_p1, %p3051_p12 }
  0x2f   : > { %p2759_p6 = pneg %p2758_p2 }
  0x31   : > { %p2764_p3 = pnand %p2762_p0, %p2759_p6 }
  0x33   : > { %2767 = shalt.err (!%p2764_p3)
}
  0x34   : > { %s2768_s28 = scalar_lea.vmem %s3039_s6, 512  ;;  %p2776_p11 = scmp.lt.s32.totalorder %s3039_s6, %s3039_s6 }
  0x35   : > { %p2769_p5 = scmp.ne.s32.totalorder %s3039_s6, %s2768_s28  ;;  %p2777_p13 = scmp.lt.s32.totalorder %s2768_s28, %s2768_s28 }
  0x37   : > { %p2771_p7 = pnand %p2769_p5, %p3051_p12  ;;  %p2778_p1 = por %p2777_p13, %p2776_p11 }
  0x39   : > { %p2772_p9 = pneg %p2771_p7 }
  0x3b   : > { %p2779_p2 = pnand %p2778_p1, %p2772_p9 }
  0x3d   : > { %2782 = shalt.err (!%p2779_p2)
}
  0x3e   : > { %2472 = dma.hbm_to_vmem [thread:$0]  (!%p3035_p10), %s3875_s3, 512, %s3039_s6, [#allocation9], %s2948_s23, %s2948_s23, %s2949_s27  }
  0x3f   : > { %s2783_s10 = scalar_lea.hbm %s3874_s2, 16 }
  0x40   : > { %p2784_p6 = scmp.ne.s32.totalorder %s3874_s2, %s2783_s10  ;;  %p2790_p5 = scmp.lt.u32.totalorder %s2783_s10, %s3874_s2 }
  0x42   : > { %p2786_p0 = pnand %p2784_p6, %p3051_p12 }
  0x44   : > { %p2787_p3 = pneg %p2786_p0 }
  0x46   : > { %p2792_p7 = pnand %p2790_p5, %p2787_p3 }
  0x48   : > { %2795 = shalt.err (!%p2792_p7)
}
  0x49   : > { %s2796_s16 = scalar_lea.vmem %s191_s8, 16  ;;  %s2803_s6 = scalar_lea.vmem %s191_s8, 32 }
  0x4a   : > { %p2797_p9 = scmp.ne.s32.totalorder %s191_s8, %s2796_s16  ;;  %p2804_p1 = scmp.lt.s32.totalorder %s191_s8, %s191_s8 }
  0x4b   : > { %p2805_p2 = scmp.lt.s32.totalorder %s2803_s6, %s2796_s16 }
  0x4c   : > { %p2799_p11 = pnand %p2797_p9, %p3051_p12 }
  0x4d   : > { %p2806_p4 = por %p2805_p2, %p2804_p1 }
  0x4e   : > { %p2800_p13 = pneg %p2799_p11 }
  0x50   : > { %p2807_p8 = pnand %p2806_p4, %p2800_p13 }
  0x52   : > { %2810 = shalt.err (!%p2807_p8)
}
  0x53   : > { %2469 = dma.hbm_to_vmem [thread:$0]  (!%p3035_p10), %s3874_s2, 16, %s191_s8, [#allocation6]  }
  0x54   : > { %s2950_s30 = smov [#allocation10]   ;;  %s2811_s11 = scalar_lea.hbm %s3876_s4, 16 }
  0x55   : > { %s214_s7 = sshll.u32 %s2950_s30, 4  ;;  %p2812_p6 = scmp.ne.s32.totalorder %s3876_s4, %s2811_s11  ;;  %s215_s7 = int_to_ptr.vmem [resolvable:$true] %s214_s7 }
  0x56   : > { %p2818_p0 = scmp.lt.u32.totalorder %s2811_s11, %s3876_s4 }
  0x57   : > { %p2814_p4 = pnand %p2812_p6, %p3051_p12 }
  0x59   : > { %p2815_p8 = pneg %p2814_p4 }
  0x5b   : > { %p2820_p3 = pnand %p2818_p0, %p2815_p8 }
  0x5d   : > { %2823 = shalt.err (!%p2820_p3)
}
  0x5e   : > { %s2824_s8 = scalar_lea.vmem %s215_s7, 16  ;;  %s2831_s6 = scalar_lea.vmem %s215_s7, 32 }
  0x5f   : > { %p2825_p5 = scmp.ne.s32.totalorder %s215_s7, %s2824_s8  ;;  %p2832_p11 = scmp.lt.s32.totalorder %s215_s7, %s215_s7 }
  0x60   : > { %p2833_p13 = scmp.lt.s32.totalorder %s2831_s6, %s2824_s8 }
  0x61   : > { %p2827_p7 = pnand %p2825_p5, %p3051_p12 }
  0x62   : > { %p2834_p1 = por %p2833_p13, %p2832_p11 }
  0x63   : > { %p2828_p9 = pneg %p2827_p7 }
  0x65   : > { %p2835_p2 = pnand %p2834_p1, %p2828_p9 }
  0x67   : > { %2838 = shalt.err (!%p2835_p2)
}
  0x68   : > { %2475 = dma.hbm_to_vmem [thread:$0]  (!%p3035_p10), %s3876_s4, 16, %s215_s7, [#allocation9]  }
  0x69   : > { %s3139_s14 = sadd.s32 1, %s2943_s21   ;;  %s30_s30 = sadd.s32 1, %s2939_s20 }
  0x6a   : > { %s27_s29 = ssub.s32 %s2943_s21, %s3139_s14  ;;  %p37_p12 = scmp.ne.s32.totalorder %s2939_s20, %s2935_s19 }
  0x6b   : > { %p28_p6 = scmp.eq.s32.totalorder %s27_s29, 0  ;;  %p38_p4 = scmp.eq.s32.totalorder %s2943_s21, 0 }
  0x6c   : > { %p3886_p8 = scmp.eq.s32.totalorder %s3006_s22, 3  ;;  %p2488_p3 = scmp.lt.s32.totalorder %s2943_s21, 4 }
  0x6d   : > { %s3155_s10 = scalar_select %p28_p6, %s2939_s20, %s30_s30  }
  0x6e   : > { %p3149_p0 = por %p3886_p8, %p37_p12  ;;  %p39_p5 = por %p38_p4, %p37_p12 }
  0x6f   : > { %s225_s11 = sand.u32 1, %s2939_s20   ;;  %s2021_s7 = sshll.u32 %s2943_s21, 13 }
  0x70   : > { %s1940_s12 = sshll.u32 %s225_s11, 9  ;;  %s3162_s16 = scalar_lea.hbm %s3872_s0, %s2021_s7 }
  0x71   : > { %s229_s8 = scalar_lea.vmem [#allocation2], %s1940_s12  ;;  %p3166_p10 = pnand %p2488_p3, %p39_p5 }
  0x72   : > { %s236_s6 = sshll.u32 %s229_s8, 4  ;;  %s3170_s17 = scalar_lea.sflag [#allocation3], %s225_s11  ;;  %s3164_s6 = int_to_ptr.vmem [resolvable:$true] %s236_s6 }
  0x73   : > { %s2839_s30 = scalar_lea.hbm %s3162_s16, 8192  ;;  %p2841_p9 = pneg %p3166_p10 }
  0x74   : > { %p2840_p7 = scmp.ne.s32.totalorder %s3162_s16, %s2839_s30  ;;  %s2844_s7 = scalar_lea.hbm %s3872_s0, 32768 }
  0x75   : > { %p2845_p1 = scmp.lt.u32.totalorder %s3162_s16, %s3872_s0  ;;  %p2846_p2 = scmp.lt.u32.totalorder %s2844_s7, %s2839_s30 }
  0x76   : > { %p2842_p11 = pnand %p2841_p9, %p2840_p7  ;;  %p2848_p6 = scmp.lt.u32.totalorder %s2839_s30, %s3162_s16 }
  0x77   : > { %p2847_p12 = por %p2846_p2, %p2845_p1 }
  0x78   : > { %p2843_p13 = pneg %p2842_p11 }
  0x79   : > { %p2849_p4 = por %p2848_p6, %p2847_p12 }
  0x7b   : > { %p2850_p8 = pnand %p2849_p4, %p2843_p13 }
  0x7d   : > { %2853 = shalt.err (!%p2850_p8)
}
  0x7e   : > { %s2854_s11 = scalar_lea.vmem %s3164_s6, 8192  ;;  %s2951_s8 = smov [#allocation2]  }
  0x7f   : > { %p2855_p3 = scmp.ne.s32.totalorder %s3164_s6, %s2854_s11  ;;  %s2859_s29 = sshll.u32 %s2951_s8, 4  ;;  %s2860_s29 = int_to_ptr.vmem [resolvable:$false] %s2859_s29 }
  0x80   : > { %s2861_s12 = scalar_lea.vmem %s2860_s29, 16384  ;;  %p2862_p11 = scmp.lt.s32.totalorder %s3164_s6, %s2860_s29 }
  0x81   : > { %p2857_p5 = pnand %p2855_p3, %p2841_p9  ;;  %p2863_p1 = scmp.lt.s32.totalorder %s2861_s12, %s2854_s11 }
  0x83   : > { %p2858_p7 = pneg %p2857_p5  ;;  %p2864_p2 = por %p2863_p1, %p2862_p11 }
  0x85   : > { %p2865_p12 = pnand %p2864_p2, %p2858_p7 }
  0x87   : > { %2868 = shalt.err (!%p2865_p12)
}
  0x88   : > { %2479 = dma.hbm_to_vmem [thread:$0]  (!%p3166_p10), %s3162_s16, 8192, %s3164_s6, %s3170_s17, %s2948_s23, %s2948_s23, %s2949_s27  }
  0x89   : > { %p3889_p9 = scmp.ne.s32.totalorder %s3883_s26, 0 }
  0x8a   : > { %s3204_s30 = sand.u32 (!%p3889_p9), 1, %s2935_s19   ;;  %p3890_p13 = scmp.ne.s32.totalorder (!%p3889_p9), %s3881_s24, 0 }
  0x8b   : > { %248 = sbr.rel (%p3889_p9) target bundleno = 778 (0x30a), region = 40  ;;  %s1944_s7 = sshll.u32 (!%p3889_p9), %s3204_s30, 9 }
  0x8c   : > { %s251_s13 = scalar_lea.sflag (!%p3889_p9), [#allocation3], %s3204_s30  ;;  %s3210_s28 = scalar_lea.vmem (!%p3889_p9), [#allocation2], %s1944_s7 }
  0x92   : > { %2914 = dma.done.wait (%p3890_p13), %s251_s13, 8192  }
  0x93   : > { %2916 = vsyncadd (%p3890_p13), %s251_s13, 4294959104  ;;  %p3891_p10 = scmp.eq.s32.totalorder %s3006_s22, 0 }
  0x95   : > { %2918 = dma.done.wait (%p3891_p10), [#allocation6], 2064   ;;  %p3892_p6 = pmov %p3891_p10 }
  0x97   : > { %2920 = vsyncadd (%p3892_p6), [#allocation6], 4294965232  ;;  %p3893_p4 = pmov %p3892_p6 }
  0x99   : > { %2922 = dma.done.wait (%p3893_p4), [#allocation9], 528   ;;  %p3894_p8 = pmov %p3893_p4 }
  0x9a   : > { %v363_v0 = vld [vmem:[#allocation5] sm:$0xff]  ;;  %v364_v1 = vld [vmem:[#allocation5 + $0x8] sm:$0xff]  ;;  %v365_v2 = vld [vmem:[#allocation5 + $0x10] sm:$0xff]  ;;  %vm1102_vm0 = vcmask 261120   ;;  %s3632_s24 = scalar_lea.vmem [#allocation11], %s1944_s7  ;;  %s2022_s26 = sshll.u32 %s3006_s22, 13 }
  0x9b   : > { %2924 = vsyncadd (%p3894_p8), [#allocation9], 4294966768  ;;  %v2403_v3 = vpack.c.bf16 %v364_v1, %v363_v0  ;;  %v366_v4 = vld [vmem:[#allocation5 + $0x18] sm:$0xff]  ;;  %v367_v6 = vld [vmem:[#allocation5 + $0x20] sm:$0xff]  ;;  %s1822_s23 = sshll.u32 %s3632_s24, 4  ;;  %s3824_s6 = scalar_lea.hbm %s3877_s5, %s2022_s26  ;;  %s3826_s23 = int_to_ptr.vmem [resolvable:$true] %s1822_s23 }
  0x9c   : > { %v2407_v5 = vpack.c.bf16 %v366_v4, %v365_v2  ;;  %v368_v7 = vld [vmem:[#allocation5 + $0x28] sm:$0xff]  ;;  %v299_v9 = vld [vmem:[%s3210_s28] sm:$0xff]  ;;  %v369_v10 = vld [vmem:[#allocation5 + $0x30] sm:$0xff]  ;;  %s1809_s22 = scalar_lea.sflag [#allocation4], %s3204_s30  ;;  %s2869_s17 = scalar_lea.vmem %s3826_s23, 8192 }
  0x9d   : > { %2404 = vmatprep.subr.bf16.mxu0 %v2403_v3  ;;  %v2411_v8 = vpack.c.bf16 %v368_v7, %v367_v6  ;;  %v370_v11 = vld [vmem:[#allocation5 + $0x38] sm:$0xff]  ;;  %2203 = vmatprep.mubr.f32.mxu0 %v299_v9  ;;  %v371_v13 = vld [vmem:[#allocation5 + $0x40] sm:$0xff]  ;;  %v372_v14 = vld [vmem:[#allocation5 + $0x48] sm:$0xff]  ;;  %p2870_p3 = scmp.ne.s32.totalorder %s3826_s23, %s2869_s17  ;;  %s2952_s15 = smov [#allocation11]  }
  0x9e   : > { %2406 = vmatpush3.bf16.msra.mxu0 %v2403_v3  ;;  %v2415_v12 = vpack.c.bf16 %v370_v11, %v369_v10  ;;  %v2419_v15 = vpack.c.bf16 %v372_v14, %v371_v13  ;;  %v373_v16 = vld [vmem:[#allocation5 + $0x50] sm:$0xff]  ;;  %v374_v17 = vld [vmem:[#allocation5 + $0x58] sm:$0xff]  ;;  %v375_v19 = vld [vmem:[#allocation5 + $0x60] sm:$0xff]  ;;  %s2873_s11 = sshll.u32 %s2952_s15, 4  ;;  %s2874_s11 = int_to_ptr.vmem [resolvable:$false] %s2873_s11 }
  0x9f   : > { %2408 = vmatprep.subr.bf16.mxu0 %v2407_v5  ;;  %v2423_v18 = vpack.c.bf16 %v374_v17, %v373_v16  ;;  %v376_v20 = vld [vmem:[#allocation5 + $0x68] sm:$0xff]  ;;  %v377_v22 = vld [vmem:[#allocation5 + $0x70] sm:$0xff]  ;;  %v378_v23 = vld [vmem:[#allocation5 + $0x78] sm:$0xff]  ;;  %p2871_p5 = pnand %p2870_p3, %p3149_p0  ;;  %s2875_s8 = scalar_lea.vmem %s2874_s11, 16384 }
  0xa0   : > { %v2427_v21 = vpack.c.bf16 %v376_v20, %v375_v19  ;;  %v2431_v24 = vpack.c.bf16 %v378_v23, %v377_v22  ;;  %v300_v25 = vld [vmem:[%s3210_s28 + $0x8] sm:$0xff]  ;;  %v301_v26 = vld [vmem:[%s3210_s28 + $0x10] sm:$0xff]  ;;  %v302_v27 = vld [vmem:[%s3210_s28 + $0x18] sm:$0xff]  ;;  %p2876_p11 = scmp.lt.s32.totalorder %s3826_s23, %s2874_s11  ;;  %p2877_p1 = scmp.lt.s32.totalorder %s2875_s8, %s2869_s17 }
  0xa1   : > { %v303_v28 = vld [vmem:[%s3210_s28 + $0x20] sm:$0xff]  ;;  %v304_v29 = vld [vmem:[%s3210_s28 + $0x28] sm:$0xff]  ;;  %v305_v30 = vld [vmem:[%s3210_s28 + $0x30] sm:$0xff]  ;;  %p2872_p7 = pneg %p2871_p5 }
  0xa2   : > { %2410 = vmatpush3.bf16.msra.mxu0 %v2407_v5  ;;  %v306_v31 = vld [vmem:[%s3210_s28 + $0x38] sm:$0xff]  ;;  %v307_v32 = vld [vmem:[%s3210_s28 + $0x40] sm:$0xff]  ;;  %v308_v33 = vld [vmem:[%s3210_s28 + $0x48] sm:$0xff]  ;;  %p2878_p2 = por %p2877_p1, %p2876_p11 }
  0xa3   : > { %2412 = vmatprep.subr.bf16.mxu0 %v2411_v8  ;;  %v309_v34 = vld [vmem:[%s3210_s28 + $0x50] sm:$0xff]  ;;  %v310_v35 = vld [vmem:[%s3210_s28 + $0x58] sm:$0xff]  ;;  %v311_v36 = vld [vmem:[%s3210_s28 + $0x60] sm:$0xff] }
  0xa4   : > { %v312_v37 = vld [vmem:[%s3210_s28 + $0x68] sm:$0xff]  ;;  %v313_v38 = vld [vmem:[%s3210_s28 + $0x70] sm:$0xff]  ;;  %v314_v39 = vld [vmem:[%s3210_s28 + $0x78] sm:$0xff]  ;;  %p2879_p12 = pnand %p2878_p2, %p2872_p7 }
  0xa5   : > { %v315_v40 = vld [vmem:[%s3210_s28 + $0x80] sm:$0xff]  ;;  %v316_v41 = vld [vmem:[%s3210_s28 + $0x88] sm:$0xff]  ;;  %v317_v42 = vld [vmem:[%s3210_s28 + $0x90] sm:$0xff] }
  0xa6   : > { %2414 = vmatpush3.bf16.msra.mxu0 %v2411_v8  ;;  %v318_v43 = vld [vmem:[%s3210_s28 + $0x98] sm:$0xff]  ;;  %v319_v44 = vld [vmem:[%s3210_s28 + $0xa0] sm:$0xff]  ;;  %v320_v45 = vld [vmem:[%s3210_s28 + $0xa8] sm:$0xff] }
  0xa7   : > { %2416 = vmatprep.subr.bf16.mxu0 %v2415_v12  ;;  %v321_v46 = vld [vmem:[%s3210_s28 + $0xb0] sm:$0xff]  ;;  %v322_v47 = vld [vmem:[%s3210_s28 + $0xb8] sm:$0xff]  ;;  %v323_v48 = vld [vmem:[%s3210_s28 + $0xc0] sm:$0xff] }
  0xa8   : > { %v324_v49 = vld [vmem:[%s3210_s28 + $0xc8] sm:$0xff]  ;;  %v325_v50 = vld [vmem:[%s3210_s28 + $0xd0] sm:$0xff]  ;;  %v326_v51 = vld [vmem:[%s3210_s28 + $0xd8] sm:$0xff] }
  0xa9   : > { %v327_v52 = vld [vmem:[%s3210_s28 + $0xe0] sm:$0xff]  ;;  %v328_v53 = vld [vmem:[%s3210_s28 + $0xe8] sm:$0xff]  ;;  %v329_v54 = vld [vmem:[%s3210_s28 + $0xf0] sm:$0xff] }
  0xaa   : > { %2418 = vmatpush3.bf16.msra.mxu0 %v2415_v12  ;;  %v330_v55 = vld [vmem:[%s3210_s28 + $0xf8] sm:$0xff]  ;;  %v331_v56 = vld [vmem:[%s3210_s28 + $0x100] sm:$0xff]  ;;  %v332_v57 = vld [vmem:[%s3210_s28 + $0x108] sm:$0xff] }
  0xab   : > { %2420 = vmatprep.subr.bf16.mxu0 %v2419_v15  ;;  %v333_v58 = vld [vmem:[%s3210_s28 + $0x110] sm:$0xff]  ;;  %v334_v59 = vld [vmem:[%s3210_s28 + $0x118] sm:$0xff]  ;;  %v335_v60 = vld [vmem:[%s3210_s28 + $0x120] sm:$0xff] }
  0xac   : > { %v336_v61 = vld [vmem:[%s3210_s28 + $0x128] sm:$0xff]  ;;  %v337_v62 = vld [vmem:[%s3210_s28 + $0x130] sm:$0xff]  ;;  %v338_v63 = vld [vmem:[%s3210_s28 + $0x138] sm:$0xff] }
  0xad   : > { %v339_v0 = vld [vmem:[%s3210_s28 + $0x140] sm:$0xff]  ;;  %v340_v1 = vld [vmem:[%s3210_s28 + $0x148] sm:$0xff]  ;;  %v341_v2 = vld [vmem:[%s3210_s28 + $0x150] sm:$0xff] }
  0xae   : > { %2422 = vmatpush3.bf16.msra.mxu0 %v2419_v15  ;;  %v342_v3 = vld [vmem:[%s3210_s28 + $0x158] sm:$0xff]  ;;  %v343_v4 = vld [vmem:[%s3210_s28 + $0x160] sm:$0xff]  ;;  %v344_v5 = vld [vmem:[%s3210_s28 + $0x168] sm:$0xff] }
  0xaf   : > { %2424 = vmatprep.subr.bf16.mxu0 %v2423_v18  ;;  %v345_v6 = vld [vmem:[%s3210_s28 + $0x170] sm:$0xff]  ;;  %v346_v7 = vld [vmem:[%s3210_s28 + $0x178] sm:$0xff]  ;;  %v347_v8 = vld [vmem:[%s3210_s28 + $0x180] sm:$0xff] }
  0xb0   : > { %v348_v9 = vld [vmem:[%s3210_s28 + $0x188] sm:$0xff]  ;;  %v349_v10 = vld [vmem:[%s3210_s28 + $0x190] sm:$0xff]  ;;  %v350_v14 = vld [vmem:[%s3210_s28 + $0x198] sm:$0xff] }
  0xb1   : > { %v1091_v11 = vld [vmem:[#allocation8] sm:$0xff]  ;;  %v1092_v12 = vld [vmem:[#allocation8 + $0x8] sm:$0xff]  ;;  %v1093_v16 = vld [vmem:[#allocation8 + $0x10] sm:$0xff] }
  0xb2   : > { %2426 = vmatpush3.bf16.msra.mxu0 %v2423_v18  ;;  %v2435_v13 = vpack.c.bf16 %v1092_v12, %v1091_v11  ;;  %v351_v15 = vld [vmem:[%s3210_s28 + $0x1a0] sm:$0xff]  ;;  %v352_v19 = vld [vmem:[%s3210_s28 + $0x1a8] sm:$0xff]  ;;  %v353_v20 = vld [vmem:[%s3210_s28 + $0x1b0] sm:$0xff] }
  0xb3   : > { %2428 = vmatprep.subr.bf16.mxu0 %v2427_v21  ;;  %v1094_v17 = vld [vmem:[#allocation8 + $0x18] sm:$0xff]  ;;  %v356_v23 = vld [vmem:[%s3210_s28 + $0x1c8] sm:$0xff] }
  0xb4   : > { %2436 = vmatprep.subr.bf16.mxu1 %v2435_v13  ;;  %v2439_v18 = vpack.c.bf16 %v1094_v17, %v1093_v16  ;;  %v355_v22 = vld [vmem:[%s3210_s28 + $0x1c0] sm:$0xff] }
  0xb5   : > { %2438 = vmatpush3.bf16.msra.mxu1 %v2435_v13 }
  0xb6   : > { %2430 = vmatpush3.bf16.msra.mxu0 %v2427_v21  ;;  %2440 = vmatprep.subr.bf16.mxu1 %v2439_v18  ;;  %v354_v21 = vld [vmem:[%s3210_s28 + $0x1b8] sm:$0xff] }
  0xb7   : > { %2432 = vmatprep.subr.bf16.mxu0 %v2431_v24 }
  0xb9   : > { %2442 = vmatpush3.bf16.msra.mxu1 %v2439_v18 }
  0xba   : > { %2434 = vmatpush3.bf16.msra.mxu0 %v2431_v24  ;;  %v357_v24 = vld [vmem:[%s3210_s28 + $0x1d0] sm:$0xff] }
  0xbd   : > { %2204 = vmatmul.mubr.f32.vlgmr.msra.gmra.mrb[0].mxu0 %v300_v25  ;;  %v358_v25 = vld [vmem:[%s3210_s28 + $0x1d8] sm:$0xff] }
  0xbe   : > { %2206 = vmatprep.mubr.f32.mxu0 %v301_v26  ;;  %v359_v26 = vld [vmem:[%s3210_s28 + $0x1e0] sm:$0xff] }
  0xc1   : > { %2207 = vmatmul.mubr.f32.gmra.mrb[2].mxu0 %v302_v27  ;;  %v360_v27 = vld [vmem:[%s3210_s28 + $0x1e8] sm:$0xff] }
  0xc2   : > { %2209 = vmatprep.mubr.f32.mxu0 %v303_v28  ;;  %v361_v28 = vld [vmem:[%s3210_s28 + $0x1f0] sm:$0xff] }
  0xc5   : > { %2210 = vmatmul.mubr.f32.gmra.mrb[4].mxu0 %v304_v29  ;;  %v362_v29 = vld [vmem:[%s3210_s28 + $0x1f8] sm:$0xff] }
  0xc6   : > { %2212 = vmatprep.mubr.f32.mxu0 %v305_v30  ;;  %v3288_v30 = vld [vmem:[#allocation7] ss:$0 sm:$0xff] }
  0xc9   : > { %2213 = vmatmul.mubr.f32.gmra.mrb[6].mxu0 %v306_v31 }
  0xca   : > { %2215 = vmatprep.mubr.f32.mxu0 %v307_v32 }
  0xcd   : > { %2216 = vmatmul.mubr.f32.gmra.mrb[8].mxu0 %v308_v33 }
  0xce   : > { %2218 = vmatprep.mubr.f32.mxu0 %v309_v34 }
  0xd1   : > { %2219 = vmatmul.mubr.f32.gmra.mrb[10].mxu0 %v310_v35 }
  0xd2   : > { %2221 = vmatprep.mubr.f32.mxu0 %v311_v36 }
  0xd5   : > { %2222 = vmatmul.mubr.f32.gmra.mrb[12].mxu0 %v312_v37 }
  0xd6   : > { %2224 = vmatprep.mubr.f32.mxu0 %v313_v38 }
  0xd9   : > { %2225 = vmatmul.mubr.f32.gmra.mrb[14].mxu0 %v314_v39 }
  0xda   : > { %2227 = vmatprep.mubr.f32.mxu0 %v315_v40 }
  0xdd   : > { %2228 = vmatmul.mubr.f32.gmra.mrb[16].mxu0 %v316_v41 }
  0xde   : > { %2230 = vmatprep.mubr.f32.mxu0 %v317_v42 }
  0xe1   : > { %2231 = vmatmul.mubr.f32.gmra.mrb[18].mxu0 %v318_v43 }
  0xe2   : > { %2233 = vmatprep.mubr.f32.mxu0 %v319_v44 }
  0xe5   : > { %2234 = vmatmul.mubr.f32.gmra.mrb[20].mxu0 %v320_v45 }
  0xe6   : > { %2236 = vmatprep.mubr.f32.mxu0 %v321_v46 }
  0xe9   : > { %2237 = vmatmul.mubr.f32.gmra.mrb[22].mxu0 %v322_v47 }
  0xea   : > { %2239 = vmatprep.mubr.f32.mxu0 %v323_v48 }
  0xed   : > { %2240 = vmatmul.mubr.f32.gmra.mrb[24].mxu0 %v324_v49 }
  0xee   : > { %2242 = vmatprep.mubr.f32.mxu0 %v325_v50 }
  0xf1   : > { %2243 = vmatmul.mubr.f32.gmra.mrb[26].mxu0 %v326_v51 }
  0xf2   : > { %2245 = vmatprep.mubr.f32.mxu0 %v327_v52 }
  0xf5   : > { %2246 = vmatmul.mubr.f32.gmra.mrb[28].mxu0 %v328_v53 }
  0xf6   : > { %2248 = vmatprep.mubr.f32.mxu0 %v329_v54 }
  0xf9   : > { %2249 = vmatmul.mubr.f32.gmra.mrb[30].mxu0 %v330_v55 }
  0xfa   : > { %2251 = vmatprep.mubr.f32.mxu0 %v331_v56 }
  0xfd   : > { %2252 = vmatmul.mubr.f32.gmra.mrb[32].mxu0 %v332_v57 }
  0xfe   : > { %2254 = vmatprep.mubr.f32.mxu0 %v333_v58 }
 0x101   : > { %2255 = vmatmul.mubr.f32.gmra.mrb[34].mxu0 %v334_v59 }
 0x102   : > { %2257 = vmatprep.mubr.f32.mxu0 %v335_v60 }
 0x105   : > { %2258 = vmatmul.mubr.f32.gmra.mrb[36].mxu0 %v336_v61 }
 0x106   : > { %2260 = vmatprep.mubr.f32.mxu0 %v337_v62 }
 0x109   : > { %2261 = vmatmul.mubr.f32.gmra.mrb[38].mxu0 %v338_v63 }
 0x10a   : > { %2263 = vmatprep.mubr.f32.mxu0 %v339_v0 }
 0x10d   : > { %2264 = vmatmul.mubr.f32.gmra.mrb[40].mxu0 %v340_v1 }
 0x10e   : > { %2266 = vmatprep.mubr.f32.mxu0 %v341_v2 }
 0x111   : > { %2267 = vmatmul.mubr.f32.gmra.mrb[42].mxu0 %v342_v3 }
 0x112   : > { %2269 = vmatprep.mubr.f32.mxu0 %v343_v4 }
 0x115   : > { %2270 = vmatmul.mubr.f32.gmra.mrb[44].mxu0 %v344_v5 }
 0x116   : > { %2272 = vmatprep.mubr.f32.mxu0 %v345_v6 }
 0x119   : > { %2273 = vmatmul.mubr.f32.gmra.mrb[46].mxu0 %v346_v7 }
 0x11a   : > { %2275 = vmatprep.mubr.f32.mxu0 %v347_v8 }
 0x11d   : > { %2276 = vmatmul.mubr.f32.gmra.mrb[48].mxu0 %v348_v9 }
 0x11e   : > { %2278 = vmatprep.mubr.f32.mxu0 %v349_v10 }
 0x121   : > { %2279 = vmatmul.mubr.f32.gmra.mrb[50].mxu0 %v350_v14 }
 0x122   : > { %2281 = vmatprep.mubr.f32.mxu0 %v351_v15 }
 0x125   : > { %2282 = vmatmul.mubr.f32.gmra.mrb[52].mxu0 %v352_v19 }
 0x126   : > { %2284 = vmatprep.mubr.f32.mxu0 %v353_v20 }
 0x129   : > { %2285 = vmatmul.mubr.f32.gmra.mrb[54].mxu0 %v354_v21 }
 0x12a   : > { %2287 = vmatprep.mubr.f32.mxu0 %v355_v22 }
 0x12d   : > { %2288 = vmatmul.mubr.f32.gmra.mrb[56].mxu0 %v356_v23 }
 0x12e   : > { %2290 = vmatprep.mubr.f32.mxu0 %v357_v24 }
 0x131   : > { %2291 = vmatmul.mubr.f32.gmra.mrb[58].mxu0 %v358_v25 }
 0x132   : > { %2293 = vmatprep.mubr.f32.mxu0 %v359_v26 }
 0x135   : > { %2294 = vmatmul.mubr.f32.gmra.mrb[60].mxu0 %v360_v27 }
 0x136   : > { %2296 = vmatprep.mubr.f32.mxu0 %v361_v28 }
 0x139   : > { %2297 = vmatmul.mubr.f32.gmra.mrb[62].mxu0 %v362_v29 }
 0x190   : > { %v2205_v31 = vpop.f32.mrb[0].mxu0 }
 0x191   : > { %v458_v32 = vadd.f32 %v2205_v31, %v3288_v30  ;;  %v452_v33 = vpop.f32.mrb[1].mxu0 }
 0x192   : > { %v453_v34 = vadd.f32 %v3288_v30, %v452_v33 }
 0x193   : > { %v836_v35 = vmul.f32 0.70710677, %v458_v32  ;;  %v772_v63 = vmul.f32 0.5, %v458_v32 }
 0x194   : > { %v835_v36 = vmul.f32 0.70710677, %v453_v34  ;;  %v2208_v37 = vpop.f32.mrb[2].mxu0  ;;  %v771_v59 = vmul.f32 0.5, %v453_v34 }
 0x195   : > { %2534 = verf.f32 %v836_v35  ;;  %v468_v38 = vadd.f32 %v2208_v37, %v3288_v30  ;;  %v462_v39 = vpop.f32.mrb[3].mxu0 }
 0x196   : > { %2536 = verf.f32 %v835_v36  ;;  %v463_v40 = vadd.f32 %v3288_v30, %v462_v39 }
 0x197   : > { %v838_v41 = vmul.f32 0.70710677, %v468_v38  ;;  %v774_v13 = vmul.f32 0.5, %v468_v38 }
 0x198   : > { %v837_v42 = vmul.f32 0.70710677, %v463_v40  ;;  %v2211_v43 = vpop.f32.mrb[4].mxu0  ;;  %v773_v9 = vmul.f32 0.5, %v463_v40 }
 0x199   : > { %2538 = verf.f32 %v838_v41  ;;  %v478_v44 = vadd.f32 %v2211_v43, %v3288_v30  ;;  %v472_v45 = vpop.f32.mrb[5].mxu0 }
 0x19a   : > { %2540 = verf.f32 %v837_v42  ;;  %v473_v46 = vadd.f32 %v3288_v30, %v472_v45 }
 0x19b   : > { %v840_v47 = vmul.f32 0.70710677, %v478_v44  ;;  %v776_v27 = vmul.f32 0.5, %v478_v44 }
 0x19c   : > { %v839_v48 = vmul.f32 0.70710677, %v473_v46  ;;  %v2214_v49 = vpop.f32.mrb[6].mxu0  ;;  %v775_v23 = vmul.f32 0.5, %v473_v46 }
 0x19d   : > { %2542 = verf.f32 %v840_v47  ;;  %v3297_v50 = vadd.f32 %v2214_v49, %v3288_v30  ;;  %v482_v51 = vpop.f32.mrb[7].mxu0 }
 0x19e   : > { %2544 = verf.f32 %v839_v48  ;;  %v483_v52 = vadd.f32 %v3288_v30, %v482_v51 }
 0x19f   : > { %v2535_v53 = vpop.eup %2534  ;;  %v842_v54 = vmul.f32 0.70710677, %v3297_v50  ;;  %v778_v42 = vmul.f32 0.5, %v3297_v50 }
 0x1a0   : > { %v2537_v55 = vpop.eup %2536  ;;  %v964_v56 = vadd.f32 1.0, %v2535_v53  ;;  %v841_v57 = vmul.f32 0.70710677, %v483_v52  ;;  %v2217_v58 = vpop.f32.mrb[8].mxu0  ;;  %v777_v38 = vmul.f32 0.5, %v483_v52 }
 0x1a1   : > { %2546 = verf.f32 %v842_v54  ;;  %v3302_v60 = vadd.f32 %v2217_v58, %v3288_v30  ;;  %v492_v61 = vpop.f32.mrb[9].mxu0  ;;  %v963_v62 = vadd.f32 1.0, %v2537_v55 }
 0x1a2   : > { %2548 = verf.f32 %v841_v57  ;;  %v3305_v0 = vadd.f32 %v3288_v30, %v492_v61  ;;  %v1028_v5 = vmul.f32 %v964_v56, %v772_v63 }
 0x1a3   : > { %v2539_v1 = vpop.eup %2538  ;;  %v844_v2 = vmul.f32 0.70710677, %v3302_v60  ;;  %v1027_v3 = vmul.f32 %v963_v62, %v771_v59  ;;  %v780_v56 = vmul.f32 0.5, %v3302_v60 }
 0x1a4   : > { %v2541_v4 = vpop.eup %2540  ;;  %v966_v6 = vadd.f32 1.0, %v2539_v1  ;;  %v843_v7 = vmul.f32 0.70710677, %v3305_v0  ;;  %v2220_v8 = vpop.f32.mrb[10].mxu0  ;;  %v779_v53 = vmul.f32 0.5, %v3305_v0 }
 0x1a5   : > { %v965_v10 = vadd.f32 1.0, %v2541_v4  ;;  %2550 = verf.f32 %v844_v2  ;;  %v3310_v11 = vadd.f32 %v2220_v8, %v3288_v30  ;;  %v502_v12 = vpop.f32.mrb[11].mxu0  ;;  %2307 = vmatprep.mubr.msk.f32.mxu1 %vm1102_vm0, %v1027_v3 }
 0x1a6   : > { %2552 = verf.f32 %v843_v7  ;;  %v3314_v14 = vadd.f32 %v3288_v30, %v502_v12  ;;  %2308 = vmatmul.mubr.msk.f32.vlgmr.msra.gmra.mrb[0].mxu1 %vm1102_vm0, %v1028_v5  ;;  %v1030_v19 = vmul.f32 %v966_v6, %v774_v13 }
 0x1a7   : > { %v2543_v15 = vpop.eup %2542  ;;  %v1029_v16 = vmul.f32 %v965_v10, %v773_v9  ;;  %v846_v17 = vmul.f32 0.70710677, %v3310_v11  ;;  %v782_v6 = vmul.f32 0.5, %v3310_v11 }
 0x1a8   : > { %v2545_v18 = vpop.eup %2544  ;;  %v968_v20 = vadd.f32 1.0, %v2543_v15  ;;  %v845_v21 = vmul.f32 0.70710677, %v3314_v14  ;;  %v2223_v22 = vpop.f32.mrb[12].mxu0  ;;  %v781_v3 = vmul.f32 0.5, %v3314_v14 }
 0x1a9   : > { %v967_v24 = vadd.f32 1.0, %v2545_v18  ;;  %2554 = verf.f32 %v846_v17  ;;  %v3320_v25 = vadd.f32 %v2223_v22, %v3288_v30  ;;  %v512_v26 = vpop.f32.mrb[13].mxu0  ;;  %2310 = vmatprep.mubr.msk.f32.mxu1 %vm1102_vm0, %v1029_v16 }
 0x1aa   : > { %2556 = verf.f32 %v845_v21  ;;  %v3324_v28 = vadd.f32 %v3288_v30, %v512_v26  ;;  %2311 = vmatmul.mubr.msk.f32.gmra.mrb[2].mxu1 %vm1102_vm0, %v1030_v19  ;;  %v1032_v34 = vmul.f32 %v968_v20, %v776_v27 }
 0x1ab   : > { %v2547_v29 = vpop.eup %2546  ;;  %v1031_v31 = vmul.f32 %v967_v24, %v775_v23  ;;  %v848_v32 = vmul.f32 0.70710677, %v3320_v25  ;;  %v784_v20 = vmul.f32 0.5, %v3320_v25 }
 0x1ac   : > { %v2549_v33 = vpop.eup %2548  ;;  %v970_v35 = vadd.f32 1.0, %v2547_v29  ;;  %v847_v36 = vmul.f32 0.70710677, %v3324_v28  ;;  %v2226_v37 = vpop.f32.mrb[14].mxu0  ;;  %v783_v17 = vmul.f32 0.5, %v3324_v28 }
 0x1ad   : > { %v969_v39 = vadd.f32 1.0, %v2549_v33  ;;  %2558 = verf.f32 %v848_v32  ;;  %v3330_v40 = vadd.f32 %v2226_v37, %v3288_v30  ;;  %v522_v41 = vpop.f32.mrb[15].mxu0  ;;  %2313 = vmatprep.mubr.msk.f32.mxu1 %vm1102_vm0, %v1031_v31 }
 0x1ae   : > { %2560 = verf.f32 %v847_v36  ;;  %v3335_v43 = vadd.f32 %v3288_v30, %v522_v41  ;;  %2314 = vmatmul.mubr.msk.f32.gmra.mrb[4].mxu1 %vm1102_vm0, %v1032_v34  ;;  %v1034_v48 = vmul.f32 %v970_v35, %v778_v42 }
 0x1af   : > { %v2551_v44 = vpop.eup %2550  ;;  %v1033_v45 = vmul.f32 %v969_v39, %v777_v38  ;;  %v850_v46 = vmul.f32 0.70710677, %v3330_v40  ;;  %v786_v35 = vmul.f32 0.5, %v3330_v40 }
 0x1b0   : > { %v2553_v47 = vpop.eup %2552  ;;  %v972_v49 = vadd.f32 1.0, %v2551_v44  ;;  %v849_v51 = vmul.f32 0.70710677, %v3335_v43  ;;  %v2229_v52 = vpop.f32.mrb[16].mxu0  ;;  %v785_v32 = vmul.f32 0.5, %v3335_v43 }
 0x1b1   : > { %v971_v54 = vadd.f32 1.0, %v2553_v47  ;;  %2562 = verf.f32 %v850_v46  ;;  %v3342_v50 = vadd.f32 %v2229_v52, %v3288_v30  ;;  %v532_v55 = vpop.f32.mrb[17].mxu0  ;;  %2316 = vmatprep.mubr.msk.f32.mxu1 %vm1102_vm0, %v1033_v45 }
 0x1b2   : > { %2564 = verf.f32 %v849_v51  ;;  %v3347_v57 = vadd.f32 %v3288_v30, %v532_v55  ;;  %2317 = vmatmul.mubr.msk.f32.gmra.mrb[6].mxu1 %vm1102_vm0, %v1034_v48  ;;  %v1036_v63 = vmul.f32 %v972_v49, %v780_v56 }
 0x1b3   : > { %v2555_v58 = vpop.eup %2554  ;;  %v1035_v59 = vmul.f32 %v971_v54, %v779_v53  ;;  %v852_v61 = vmul.f32 0.70710677, %v3342_v50  ;;  %v788_v49 = vmul.f32 0.5, %v3342_v50 }
 0x1b4   : > { %v2557_v62 = vpop.eup %2556  ;;  %v974_v0 = vadd.f32 1.0, %v2555_v58  ;;  %v851_v1 = vmul.f32 0.70710677, %v3347_v57  ;;  %v2232_v2 = vpop.f32.mrb[18].mxu0  ;;  %v787_v46 = vmul.f32 0.5, %v3347_v57 }
 0x1b5   : > { %v973_v4 = vadd.f32 1.0, %v2557_v62  ;;  %2566 = verf.f32 %v852_v61  ;;  %v3354_v60 = vadd.f32 %v2232_v2, %v3288_v30  ;;  %v542_v5 = vpop.f32.mrb[19].mxu0  ;;  %2319 = vmatprep.mubr.msk.f32.mxu1 %vm1102_vm0, %v1035_v59 }
 0x1b6   : > { %2568 = verf.f32 %v851_v1  ;;  %v3359_v7 = vadd.f32 %v3288_v30, %v542_v5  ;;  %2320 = vmatmul.mubr.msk.f32.gmra.mrb[8].mxu1 %vm1102_vm0, %v1036_v63  ;;  %v1038_v13 = vmul.f32 %v974_v0, %v782_v6 }
 0x1b7   : > { %v2559_v8 = vpop.eup %2558  ;;  %v1037_v9 = vmul.f32 %v973_v4, %v781_v3  ;;  %v854_v10 = vmul.f32 0.70710677, %v3354_v60  ;;  %v790_v0 = vmul.f32 0.5, %v3354_v60 }
 0x1b8   : > { %v2561_v12 = vpop.eup %2560  ;;  %v976_v14 = vadd.f32 1.0, %v2559_v8  ;;  %v853_v15 = vmul.f32 0.70710677, %v3359_v7  ;;  %v2235_v16 = vpop.f32.mrb[20].mxu0  ;;  %v789_v61 = vmul.f32 0.5, %v3359_v7 }
 0x1b9   : > { %v975_v18 = vadd.f32 1.0, %v2561_v12  ;;  %2570 = verf.f32 %v854_v10  ;;  %v3366_v11 = vadd.f32 %v2235_v16, %v3288_v30  ;;  %v552_v19 = vpop.f32.mrb[21].mxu0  ;;  %2322 = vmatprep.mubr.msk.f32.mxu1 %vm1102_vm0, %v1037_v9 }
 0x1ba   : > { %2572 = verf.f32 %v853_v15  ;;  %v3371_v21 = vadd.f32 %v3288_v30, %v552_v19  ;;  %2323 = vmatmul.mubr.msk.f32.gmra.mrb[10].mxu1 %vm1102_vm0, %v1038_v13  ;;  %v1040_v27 = vmul.f32 %v976_v14, %v784_v20 }
 0x1bb   : > { %v2563_v22 = vpop.eup %2562  ;;  %v1039_v23 = vmul.f32 %v975_v18, %v783_v17  ;;  %v856_v24 = vmul.f32 0.70710677, %v3366_v11  ;;  %v792_v14 = vmul.f32 0.5, %v3366_v11 }
 0x1bc   : > { %v2565_v26 = vpop.eup %2564  ;;  %v978_v28 = vadd.f32 1.0, %v2563_v22  ;;  %v855_v29 = vmul.f32 0.70710677, %v3371_v21  ;;  %v2238_v31 = vpop.f32.mrb[22].mxu0  ;;  %v791_v10 = vmul.f32 0.5, %v3371_v21 }
 0x1bd   : > { %v977_v33 = vadd.f32 1.0, %v2565_v26  ;;  %2574 = verf.f32 %v856_v24  ;;  %v3378_v25 = vadd.f32 %v2238_v31, %v3288_v30  ;;  %v562_v34 = vpop.f32.mrb[23].mxu0  ;;  %2325 = vmatprep.mubr.msk.f32.mxu1 %vm1102_vm0, %v1039_v23 }
 0x1be   : > { %2576 = verf.f32 %v855_v29  ;;  %v3383_v36 = vadd.f32 %v3288_v30, %v562_v34  ;;  %2326 = vmatmul.mubr.msk.f32.gmra.mrb[12].mxu1 %vm1102_vm0, %v1040_v27  ;;  %v1042_v42 = vmul.f32 %v978_v28, %v786_v35 }
 0x1bf   : > { %v2567_v37 = vpop.eup %2566  ;;  %v1041_v38 = vmul.f32 %v977_v33, %v785_v32  ;;  %v858_v39 = vmul.f32 0.70710677, %v3378_v25  ;;  %v794_v28 = vmul.f32 0.5, %v3378_v25 }
 0x1c0   : > { %v2569_v41 = vpop.eup %2568  ;;  %v980_v43 = vadd.f32 1.0, %v2567_v37  ;;  %v857_v44 = vmul.f32 0.70710677, %v3383_v36  ;;  %v2241_v45 = vpop.f32.mrb[24].mxu0  ;;  %v793_v24 = vmul.f32 0.5, %v3383_v36 }
 0x1c1   : > { %v979_v47 = vadd.f32 1.0, %v2569_v41  ;;  %2578 = verf.f32 %v858_v39  ;;  %v3390_v40 = vadd.f32 %v2241_v45, %v3288_v30  ;;  %v572_v48 = vpop.f32.mrb[25].mxu0  ;;  %2328 = vmatprep.mubr.msk.f32.mxu1 %vm1102_vm0, %v1041_v38 }
 0x1c2   : > { %2580 = verf.f32 %v857_v44  ;;  %v3395_v51 = vadd.f32 %v3288_v30, %v572_v48  ;;  %2329 = vmatmul.mubr.msk.f32.gmra.mrb[14].mxu1 %vm1102_vm0, %v1042_v42  ;;  %v1044_v56 = vmul.f32 %v980_v43, %v788_v49 }
 0x1c3   : > { %v2571_v52 = vpop.eup %2570  ;;  %v1043_v53 = vmul.f32 %v979_v47, %v787_v46  ;;  %v860_v54 = vmul.f32 0.70710677, %v3390_v40  ;;  %v796_v43 = vmul.f32 0.5, %v3390_v40 }
 0x1c4   : > { %v2573_v55 = vpop.eup %2572  ;;  %v982_v57 = vadd.f32 1.0, %v2571_v52  ;;  %v859_v58 = vmul.f32 0.70710677, %v3395_v51  ;;  %v2244_v59 = vpop.f32.mrb[26].mxu0  ;;  %v795_v39 = vmul.f32 0.5, %v3395_v51 }
 0x1c5   : > { %v981_v62 = vadd.f32 1.0, %v2573_v55  ;;  %2582 = verf.f32 %v860_v54  ;;  %v3402_v50 = vadd.f32 %v2244_v59, %v3288_v30  ;;  %v582_v63 = vpop.f32.mrb[27].mxu0  ;;  %2331 = vmatprep.mubr.msk.f32.mxu1 %vm1102_vm0, %v1043_v53 }
 0x1c6   : > { %2584 = verf.f32 %v859_v58  ;;  %v3407_v1 = vadd.f32 %v3288_v30, %v582_v63  ;;  %2332 = vmatmul.mubr.msk.f32.gmra.mrb[16].mxu1 %vm1102_vm0, %v1044_v56  ;;  %v1046_v6 = vmul.f32 %v982_v57, %v790_v0 }
 0x1c7   : > { %v2575_v2 = vpop.eup %2574  ;;  %v1045_v3 = vmul.f32 %v981_v62, %v789_v61  ;;  %v862_v4 = vmul.f32 0.70710677, %v3402_v50  ;;  %v798_v57 = vmul.f32 0.5, %v3402_v50 }
 0x1c8   : > { %v2577_v5 = vpop.eup %2576  ;;  %v984_v7 = vadd.f32 1.0, %v2575_v2  ;;  %v861_v8 = vmul.f32 0.70710677, %v3407_v1  ;;  %v2247_v9 = vpop.f32.mrb[28].mxu0  ;;  %v797_v54 = vmul.f32 0.5, %v3407_v1 }
 0x1c9   : > { %v983_v12 = vadd.f32 1.0, %v2577_v5  ;;  %2586 = verf.f32 %v862_v4  ;;  %v3414_v60 = vadd.f32 %v2247_v9, %v3288_v30  ;;  %v592_v13 = vpop.f32.mrb[29].mxu0  ;;  %2334 = vmatprep.mubr.msk.f32.mxu1 %vm1102_vm0, %v1045_v3 }
 0x1ca   : > { %2588 = verf.f32 %v861_v8  ;;  %v3419_v15 = vadd.f32 %v3288_v30, %v592_v13  ;;  %2335 = vmatmul.mubr.msk.f32.gmra.mrb[18].mxu1 %vm1102_vm0, %v1046_v6  ;;  %v1048_v20 = vmul.f32 %v984_v7, %v792_v14 }
 0x1cb   : > { %v2579_v16 = vpop.eup %2578  ;;  %v1047_v17 = vmul.f32 %v983_v12, %v791_v10  ;;  %v864_v18 = vmul.f32 0.70710677, %v3414_v60  ;;  %v800_v7 = vmul.f32 0.5, %v3414_v60 }
 0x1cc   : > { %v2581_v19 = vpop.eup %2580  ;;  %v986_v21 = vadd.f32 1.0, %v2579_v16  ;;  %v863_v22 = vmul.f32 0.70710677, %v3419_v15  ;;  %v2250_v23 = vpop.f32.mrb[30].mxu0  ;;  %v799_v4 = vmul.f32 0.5, %v3419_v15 }
 0x1cd   : > { %v985_v26 = vadd.f32 1.0, %v2581_v19  ;;  %2590 = verf.f32 %v864_v18  ;;  %v3426_v11 = vadd.f32 %v2250_v23, %v3288_v30  ;;  %v602_v27 = vpop.f32.mrb[31].mxu0  ;;  %2337 = vmatprep.mubr.msk.f32.mxu1 %vm1102_vm0, %v1047_v17 }
 0x1ce   : > { %2592 = verf.f32 %v863_v22  ;;  %v3431_v29 = vadd.f32 %v3288_v30, %v602_v27  ;;  %2338 = vmatmul.mubr.msk.f32.gmra.mrb[20].mxu1 %vm1102_vm0, %v1048_v20  ;;  %v1050_v35 = vmul.f32 %v986_v21, %v794_v28 }
 0x1cf   : > { %v2583_v31 = vpop.eup %2582  ;;  %v1049_v32 = vmul.f32 %v985_v26, %v793_v24  ;;  %v866_v33 = vmul.f32 0.70710677, %v3426_v11  ;;  %v802_v21 = vmul.f32 0.5, %v3426_v11 }
 0x1d0   : > { %v2585_v34 = vpop.eup %2584  ;;  %v988_v36 = vadd.f32 1.0, %v2583_v31  ;;  %v865_v37 = vmul.f32 0.70710677, %v3431_v29  ;;  %v2253_v38 = vpop.f32.mrb[32].mxu0  ;;  %v801_v18 = vmul.f32 0.5, %v3431_v29 }
 0x1d1   : > { %v987_v41 = vadd.f32 1.0, %v2585_v34  ;;  %2594 = verf.f32 %v866_v33  ;;  %v3438_v25 = vadd.f32 %v2253_v38, %v3288_v30  ;;  %v612_v42 = vpop.f32.mrb[33].mxu0  ;;  %2340 = vmatprep.mubr.msk.f32.mxu1 %vm1102_vm0, %v1049_v32 }
 0x1d2   : > { %2596 = verf.f32 %v865_v37  ;;  %v3443_v44 = vadd.f32 %v3288_v30, %v612_v42  ;;  %2341 = vmatmul.mubr.msk.f32.gmra.mrb[22].mxu1 %vm1102_vm0, %v1050_v35  ;;  %v1052_v49 = vmul.f32 %v988_v36, %v796_v43 }
 0x1d3   : > { %v2587_v45 = vpop.eup %2586  ;;  %v1051_v46 = vmul.f32 %v987_v41, %v795_v39  ;;  %v868_v47 = vmul.f32 0.70710677, %v3438_v25  ;;  %v804_v36 = vmul.f32 0.5, %v3438_v25 }
 0x1d4   : > { %v2589_v48 = vpop.eup %2588  ;;  %v990_v51 = vadd.f32 1.0, %v2587_v45  ;;  %v867_v52 = vmul.f32 0.70710677, %v3443_v44  ;;  %v2256_v53 = vpop.f32.mrb[34].mxu0  ;;  %v803_v33 = vmul.f32 0.5, %v3443_v44 }
 0x1d5   : > { %v989_v55 = vadd.f32 1.0, %v2589_v48  ;;  %2598 = verf.f32 %v868_v47  ;;  %v3450_v40 = vadd.f32 %v2256_v53, %v3288_v30  ;;  %v622_v56 = vpop.f32.mrb[35].mxu0  ;;  %2343 = vmatprep.mubr.msk.f32.mxu1 %vm1102_vm0, %v1051_v46 }
 0x1d6   : > { %2600 = verf.f32 %v867_v52  ;;  %v3455_v58 = vadd.f32 %v3288_v30, %v622_v56  ;;  %2344 = vmatmul.mubr.msk.f32.gmra.mrb[24].mxu1 %vm1102_vm0, %v1052_v49  ;;  %v1054_v0 = vmul.f32 %v990_v51, %v798_v57 }
 0x1d7   : > { %v2591_v59 = vpop.eup %2590  ;;  %v1053_v61 = vmul.f32 %v989_v55, %v797_v54  ;;  %v870_v62 = vmul.f32 0.70710677, %v3450_v40  ;;  %v806_v51 = vmul.f32 0.5, %v3450_v40 }
 0x1d8   : > { %v2593_v63 = vpop.eup %2592  ;;  %v992_v1 = vadd.f32 1.0, %v2591_v59  ;;  %v869_v2 = vmul.f32 0.70710677, %v3455_v58  ;;  %v2259_v3 = vpop.f32.mrb[36].mxu0  ;;  %v805_v47 = vmul.f32 0.5, %v3455_v58 }
 0x1d9   : > { %v991_v5 = vadd.f32 1.0, %v2593_v63  ;;  %2602 = verf.f32 %v870_v62  ;;  %v3462_v50 = vadd.f32 %v2259_v3, %v3288_v30  ;;  %v632_v6 = vpop.f32.mrb[37].mxu0  ;;  %2346 = vmatprep.mubr.msk.f32.mxu1 %vm1102_vm0, %v1053_v61 }
 0x1da   : > { %2604 = verf.f32 %v869_v2  ;;  %v3467_v8 = vadd.f32 %v3288_v30, %v632_v6  ;;  %2347 = vmatmul.mubr.msk.f32.gmra.mrb[26].mxu1 %vm1102_vm0, %v1054_v0  ;;  %v1056_v14 = vmul.f32 %v992_v1, %v800_v7 }
 0x1db   : > { %v2595_v9 = vpop.eup %2594  ;;  %v1055_v10 = vmul.f32 %v991_v5, %v799_v4  ;;  %v872_v12 = vmul.f32 0.70710677, %v3462_v50  ;;  %v808_v1 = vmul.f32 0.5, %v3462_v50 }
 0x1dc   : > { %v2597_v13 = vpop.eup %2596  ;;  %v994_v15 = vadd.f32 1.0, %v2595_v9  ;;  %v871_v16 = vmul.f32 0.70710677, %v3467_v8  ;;  %v2262_v17 = vpop.f32.mrb[38].mxu0  ;;  %v807_v62 = vmul.f32 0.5, %v3467_v8 }
 0x1dd   : > { %v993_v19 = vadd.f32 1.0, %v2597_v13  ;;  %2606 = verf.f32 %v872_v12  ;;  %v3474_v60 = vadd.f32 %v2262_v17, %v3288_v30  ;;  %v642_v20 = vpop.f32.mrb[39].mxu0  ;;  %2349 = vmatprep.mubr.msk.f32.mxu1 %vm1102_vm0, %v1055_v10 }
 0x1de   : > { %2608 = verf.f32 %v871_v16  ;;  %v3479_v22 = vadd.f32 %v3288_v30, %v642_v20  ;;  %2350 = vmatmul.mubr.msk.f32.gmra.mrb[28].mxu1 %vm1102_vm0, %v1056_v14  ;;  %v1058_v28 = vmul.f32 %v994_v15, %v802_v21 }
 0x1df   : > { %v2599_v23 = vpop.eup %2598  ;;  %v1057_v24 = vmul.f32 %v993_v19, %v801_v18  ;;  %v874_v26 = vmul.f32 0.70710677, %v3474_v60  ;;  %v810_v15 = vmul.f32 0.5, %v3474_v60 }
 0x1e0   : > { %v2601_v27 = vpop.eup %2600  ;;  %v996_v29 = vadd.f32 1.0, %v2599_v23  ;;  %v873_v31 = vmul.f32 0.70710677, %v3479_v22  ;;  %v2265_v32 = vpop.f32.mrb[40].mxu0  ;;  %v809_v12 = vmul.f32 0.5, %v3479_v22 }
 0x1e1   : > { %v995_v34 = vadd.f32 1.0, %v2601_v27  ;;  %2610 = verf.f32 %v874_v26  ;;  %v3486_v11 = vadd.f32 %v2265_v32, %v3288_v30  ;;  %v652_v35 = vpop.f32.mrb[41].mxu0  ;;  %2352 = vmatprep.mubr.msk.f32.mxu1 %vm1102_vm0, %v1057_v24 }
 0x1e2   : > { %2612 = verf.f32 %v873_v31  ;;  %v3491_v37 = vadd.f32 %v3288_v30, %v652_v35  ;;  %2353 = vmatmul.mubr.msk.f32.gmra.mrb[30].mxu1 %vm1102_vm0, %v1058_v28  ;;  %v1060_v43 = vmul.f32 %v996_v29, %v804_v36 }
 0x1e3   : > { %v2603_v38 = vpop.eup %2602  ;;  %v1059_v39 = vmul.f32 %v995_v34, %v803_v33  ;;  %v876_v41 = vmul.f32 0.70710677, %v3486_v11  ;;  %v812_v29 = vmul.f32 0.5, %v3486_v11 }
 0x1e4   : > { %v2605_v42 = vpop.eup %2604  ;;  %v998_v44 = vadd.f32 1.0, %v2603_v38  ;;  %v875_v45 = vmul.f32 0.70710677, %v3491_v37  ;;  %v2268_v46 = vpop.f32.mrb[42].mxu0  ;;  %v811_v26 = vmul.f32 0.5, %v3491_v37 }
 0x1e5   : > { %v997_v48 = vadd.f32 1.0, %v2605_v42  ;;  %2614 = verf.f32 %v876_v41  ;;  %v3498_v25 = vadd.f32 %v2268_v46, %v3288_v30  ;;  %v662_v49 = vpop.f32.mrb[43].mxu0  ;;  %2355 = vmatprep.mubr.msk.f32.mxu1 %vm1102_vm0, %v1059_v39 }
 0x1e6   : > { %2616 = verf.f32 %v875_v45  ;;  %v3503_v52 = vadd.f32 %v3288_v30, %v662_v49  ;;  %2356 = vmatmul.mubr.msk.f32.gmra.mrb[32].mxu1 %vm1102_vm0, %v1060_v43  ;;  %v1062_v57 = vmul.f32 %v998_v44, %v806_v51 }
 0x1e7   : > { %v2607_v53 = vpop.eup %2606  ;;  %v1061_v54 = vmul.f32 %v997_v48, %v805_v47  ;;  %v878_v55 = vmul.f32 0.70710677, %v3498_v25  ;;  %v814_v44 = vmul.f32 0.5, %v3498_v25 }
 0x1e8   : > { %v2609_v56 = vpop.eup %2608  ;;  %v1000_v58 = vadd.f32 1.0, %v2607_v53  ;;  %v877_v59 = vmul.f32 0.70710677, %v3503_v52  ;;  %v2271_v61 = vpop.f32.mrb[44].mxu0  ;;  %v813_v41 = vmul.f32 0.5, %v3503_v52 }
 0x1e9   : > { %v999_v63 = vadd.f32 1.0, %v2609_v56  ;;  %2618 = verf.f32 %v878_v55  ;;  %v3510_v40 = vadd.f32 %v2271_v61, %v3288_v30  ;;  %v672_v0 = vpop.f32.mrb[45].mxu0  ;;  %2358 = vmatprep.mubr.msk.f32.mxu1 %vm1102_vm0, %v1061_v54 }
 0x1ea   : > { %2620 = verf.f32 %v877_v59  ;;  %v3515_v2 = vadd.f32 %v3288_v30, %v672_v0  ;;  %2359 = vmatmul.mubr.msk.f32.gmra.mrb[34].mxu1 %vm1102_vm0, %v1062_v57  ;;  %v1064_v7 = vmul.f32 %v1000_v58, %v808_v1 }
 0x1eb   : > { %v2611_v3 = vpop.eup %2610  ;;  %v1063_v4 = vmul.f32 %v999_v63, %v807_v62  ;;  %v880_v5 = vmul.f32 0.70710677, %v3510_v40  ;;  %v816_v58 = vmul.f32 0.5, %v3510_v40 }
 0x1ec   : > { %v2613_v6 = vpop.eup %2612  ;;  %v1002_v8 = vadd.f32 1.0, %v2611_v3  ;;  %v879_v9 = vmul.f32 0.70710677, %v3515_v2  ;;  %v2274_v10 = vpop.f32.mrb[46].mxu0  ;;  %v815_v55 = vmul.f32 0.5, %v3515_v2 }
 0x1ed   : > { %v1001_v13 = vadd.f32 1.0, %v2613_v6  ;;  %2622 = verf.f32 %v880_v5  ;;  %v3522_v50 = vadd.f32 %v2274_v10, %v3288_v30  ;;  %v682_v14 = vpop.f32.mrb[47].mxu0  ;;  %2361 = vmatprep.mubr.msk.f32.mxu1 %vm1102_vm0, %v1063_v4 }
 0x1ee   : > { %2624 = verf.f32 %v879_v9  ;;  %v3527_v16 = vadd.f32 %v3288_v30, %v682_v14  ;;  %2362 = vmatmul.mubr.msk.f32.gmra.mrb[36].mxu1 %vm1102_vm0, %v1064_v7  ;;  %v1066_v21 = vmul.f32 %v1002_v8, %v810_v15 }
 0x1ef   : > { %v2615_v17 = vpop.eup %2614  ;;  %v1065_v18 = vmul.f32 %v1001_v13, %v809_v12  ;;  %v882_v19 = vmul.f32 0.70710677, %v3522_v50  ;;  %v818_v8 = vmul.f32 0.5, %v3522_v50 }
 0x1f0   : > { %v2617_v20 = vpop.eup %2616  ;;  %v1004_v22 = vadd.f32 1.0, %v2615_v17  ;;  %v881_v23 = vmul.f32 0.70710677, %v3527_v16  ;;  %v2277_v24 = vpop.f32.mrb[48].mxu0  ;;  %v817_v5 = vmul.f32 0.5, %v3527_v16 }
 0x1f1   : > { %v1003_v27 = vadd.f32 1.0, %v2617_v20  ;;  %2626 = verf.f32 %v882_v19  ;;  %v3534_v60 = vadd.f32 %v2277_v24, %v3288_v30  ;;  %v692_v28 = vpop.f32.mrb[49].mxu0  ;;  %2364 = vmatprep.mubr.msk.f32.mxu1 %vm1102_vm0, %v1065_v18 }
 0x1f2   : > { %2628 = verf.f32 %v881_v23  ;;  %v3539_v31 = vadd.f32 %v3288_v30, %v692_v28  ;;  %2365 = vmatmul.mubr.msk.f32.gmra.mrb[38].mxu1 %vm1102_vm0, %v1066_v21  ;;  %v1068_v36 = vmul.f32 %v1004_v22, %v812_v29 }
 0x1f3   : > { %v2619_v32 = vpop.eup %2618  ;;  %v1067_v33 = vmul.f32 %v1003_v27, %v811_v26  ;;  %v884_v34 = vmul.f32 0.70710677, %v3534_v60  ;;  %v820_v22 = vmul.f32 0.5, %v3534_v60 }
 0x1f4   : > { %v2621_v35 = vpop.eup %2620  ;;  %v1006_v37 = vadd.f32 1.0, %v2619_v32  ;;  %v883_v38 = vmul.f32 0.70710677, %v3539_v31  ;;  %v2280_v39 = vpop.f32.mrb[50].mxu0  ;;  %v819_v19 = vmul.f32 0.5, %v3539_v31 }
 0x1f5   : > { %v1005_v42 = vadd.f32 1.0, %v2621_v35  ;;  %2630 = verf.f32 %v884_v34  ;;  %v3546_v11 = vadd.f32 %v2280_v39, %v3288_v30  ;;  %v702_v43 = vpop.f32.mrb[51].mxu0  ;;  %2367 = vmatprep.mubr.msk.f32.mxu1 %vm1102_vm0, %v1067_v33 }
 0x1f6   : > { %2632 = verf.f32 %v883_v38  ;;  %v3551_v45 = vadd.f32 %v3288_v30, %v702_v43  ;;  %2368 = vmatmul.mubr.msk.f32.gmra.mrb[40].mxu1 %vm1102_vm0, %v1068_v36  ;;  %v1070_v51 = vmul.f32 %v1006_v37, %v814_v44 }
 0x1f7   : > { %v2623_v46 = vpop.eup %2622  ;;  %v1069_v47 = vmul.f32 %v1005_v42, %v813_v41  ;;  %v886_v48 = vmul.f32 0.70710677, %v3546_v11  ;;  %v822_v37 = vmul.f32 0.5, %v3546_v11 }
 0x1f8   : > { %v2625_v49 = vpop.eup %2624  ;;  %v1008_v52 = vadd.f32 1.0, %v2623_v46  ;;  %v885_v53 = vmul.f32 0.70710677, %v3551_v45  ;;  %v2283_v54 = vpop.f32.mrb[52].mxu0  ;;  %v821_v34 = vmul.f32 0.5, %v3551_v45 }
 0x1f9   : > { %v1007_v56 = vadd.f32 1.0, %v2625_v49  ;;  %2634 = verf.f32 %v886_v48  ;;  %v3558_v25 = vadd.f32 %v2283_v54, %v3288_v30  ;;  %v712_v57 = vpop.f32.mrb[53].mxu0  ;;  %2370 = vmatprep.mubr.msk.f32.mxu1 %vm1102_vm0, %v1069_v47 }
 0x1fa   : > { %2636 = verf.f32 %v885_v53  ;;  %v3563_v59 = vadd.f32 %v3288_v30, %v712_v57  ;;  %2371 = vmatmul.mubr.msk.f32.gmra.mrb[42].mxu1 %vm1102_vm0, %v1070_v51  ;;  %v1072_v1 = vmul.f32 %v1008_v52, %v816_v58 }
 0x1fb   : > { %v2627_v61 = vpop.eup %2626  ;;  %v1071_v62 = vmul.f32 %v1007_v56, %v815_v55  ;;  %v888_v63 = vmul.f32 0.70710677, %v3558_v25  ;;  %v824_v52 = vmul.f32 0.5, %v3558_v25 }
 0x1fc   : > { %v2629_v0 = vpop.eup %2628  ;;  %v1010_v2 = vadd.f32 1.0, %v2627_v61  ;;  %v887_v3 = vmul.f32 0.70710677, %v3563_v59  ;;  %v2286_v4 = vpop.f32.mrb[54].mxu0  ;;  %v823_v48 = vmul.f32 0.5, %v3563_v59 }
 0x1fd   : > { %v1009_v6 = vadd.f32 1.0, %v2629_v0  ;;  %2638 = verf.f32 %v888_v63  ;;  %v3570_v40 = vadd.f32 %v2286_v4, %v3288_v30  ;;  %v722_v7 = vpop.f32.mrb[55].mxu0  ;;  %2373 = vmatprep.mubr.msk.f32.mxu1 %vm1102_vm0, %v1071_v62 }
 0x1fe   : > { %2640 = verf.f32 %v887_v3  ;;  %v3575_v9 = vadd.f32 %v3288_v30, %v722_v7  ;;  %2374 = vmatmul.mubr.msk.f32.gmra.mrb[44].mxu1 %vm1102_vm0, %v1072_v1  ;;  %v1074_v15 = vmul.f32 %v1010_v2, %v818_v8  ;;  %v2662_v1 = vld [vmem:[#allocation7] ss:$0 sm:$0xff] }
 0x1ff   : > { %v2631_v10 = vpop.eup %2630  ;;  %v1073_v12 = vmul.f32 %v1009_v6, %v817_v5  ;;  %v890_v13 = vmul.f32 0.70710677, %v3570_v40 }
 0x200   : > { %v2633_v14 = vpop.eup %2632  ;;  %v1012_v16 = vadd.f32 1.0, %v2631_v10  ;;  %v889_v17 = vmul.f32 0.70710677, %v3575_v9  ;;  %v2289_v18 = vpop.f32.mrb[56].mxu0  ;;  %v825_v63 = vmul.f32 0.5, %v3575_v9 }
 0x201   : > { %v1011_v20 = vadd.f32 1.0, %v2633_v14  ;;  %2642 = verf.f32 %v890_v13  ;;  %v3582_v50 = vadd.f32 %v2289_v18, %v3288_v30  ;;  %v732_v21 = vpop.f32.mrb[57].mxu0  ;;  %2376 = vmatprep.mubr.msk.f32.mxu1 %vm1102_vm0, %v1073_v12 }
 0x202   : > { %2644 = verf.f32 %v889_v17  ;;  %v3587_v23 = vadd.f32 %v3288_v30, %v732_v21  ;;  %2377 = vmatmul.mubr.msk.f32.gmra.mrb[46].mxu1 %vm1102_vm0, %v1074_v15  ;;  %v1076_v29 = vmul.f32 %v1012_v16, %v820_v22 }
 0x203   : > { %v2635_v24 = vpop.eup %2634  ;;  %v1075_v26 = vmul.f32 %v1011_v20, %v819_v19  ;;  %v892_v27 = vmul.f32 0.70710677, %v3582_v50  ;;  %v828_v14 = vmul.f32 0.5, %v3582_v50 }
 0x204   : > { %v2637_v28 = vpop.eup %2636  ;;  %v1014_v31 = vadd.f32 1.0, %v2635_v24  ;;  %v891_v32 = vmul.f32 0.70710677, %v3587_v23  ;;  %v2292_v33 = vpop.f32.mrb[58].mxu0  ;;  %v827_v12 = vmul.f32 0.5, %v3587_v23 }
 0x205   : > { %v1013_v35 = vadd.f32 1.0, %v2637_v28  ;;  %2646 = verf.f32 %v892_v27  ;;  %v3594_v60 = vadd.f32 %v2292_v33, %v3288_v30  ;;  %v742_v36 = vpop.f32.mrb[59].mxu0  ;;  %2379 = vmatprep.mubr.msk.f32.mxu1 %vm1102_vm0, %v1075_v26 }
 0x206   : > { %2648 = verf.f32 %v891_v32  ;;  %v743_v38 = vadd.f32 %v3288_v30, %v742_v36  ;;  %2380 = vmatmul.mubr.msk.f32.gmra.mrb[48].mxu1 %vm1102_vm0, %v1076_v29  ;;  %v1078_v44 = vmul.f32 %v1014_v31, %v822_v37 }
 0x207   : > { %v2639_v39 = vpop.eup %2638  ;;  %v1077_v41 = vmul.f32 %v1013_v35, %v821_v34  ;;  %v894_v42 = vmul.f32 0.70710677, %v3594_v60  ;;  %v830_v21 = vmul.f32 0.5, %v3594_v60 }
 0x208   : > { %v2641_v43 = vpop.eup %2640  ;;  %v1016_v45 = vadd.f32 1.0, %v2639_v39  ;;  %v893_v46 = vmul.f32 0.70710677, %v743_v38  ;;  %v2295_v47 = vpop.f32.mrb[60].mxu0  ;;  %v829_v19 = vmul.f32 0.5, %v743_v38 }
 0x209   : > { %v1015_v49 = vadd.f32 1.0, %v2641_v43  ;;  %2650 = verf.f32 %v894_v42  ;;  %v758_v11 = vadd.f32 %v2295_v47, %v3288_v30  ;;  %v752_v51 = vpop.f32.mrb[61].mxu0  ;;  %2382 = vmatprep.mubr.msk.f32.mxu1 %vm1102_vm0, %v1077_v41  ;;  %v3624_v41 = vld [vmem:[#allocation10] ss:$0 sm:$0xff] }
 0x20a   : > { %2652 = verf.f32 %v893_v46  ;;  %v753_v53 = vadd.f32 %v3288_v30, %v752_v51  ;;  %2383 = vmatmul.mubr.msk.f32.gmra.mrb[50].mxu1 %vm1102_vm0, %v1078_v44  ;;  %v1080_v58 = vmul.f32 %v1016_v45, %v824_v52  ;;  %v826_v30 = vmul.f32 0.5, %v3570_v40  ;;  %v2663_v46 = vld [vmem:[%s3210_s28 + $0x8] sm:$0xff] }
 0x20b   : > { %v2643_v54 = vpop.eup %2642  ;;  %v1079_v55 = vmul.f32 %v1015_v49, %v823_v48  ;;  %v896_v56 = vmul.f32 0.70710677, %v758_v11  ;;  %v832_v29 = vmul.f32 0.5, %v758_v11  ;;  %v2664_v48 = vld [vmem:[%s3210_s28] sm:$0xff] }
 0x20c   : > { %v2645_v57 = vpop.eup %2644  ;;  %v1018_v59 = vadd.f32 1.0, %v2643_v54  ;;  %v895_v61 = vmul.f32 0.70710677, %v753_v53  ;;  %v2298_v62 = vpop.f32.mrb[62].mxu0  ;;  %v831_v27 = vmul.f32 0.5, %v753_v53  ;;  %v2665_v54 = vld [vmem:[%s3210_s28 + $0x18] sm:$0xff] }
 0x20d   : > { %v1017_v0 = vadd.f32 1.0, %v2645_v57  ;;  %2654 = verf.f32 %v896_v56  ;;  %v768_v2 = vadd.f32 %v2662_v1, %v2298_v62  ;;  %v762_v25 = vpop.f32.mrb[63].mxu0  ;;  %2385 = vmatprep.mubr.msk.f32.mxu1 %vm1102_vm0, %v1079_v55  ;;  %v2666_v56 = vld [vmem:[%s3210_s28 + $0x10] sm:$0xff] }
 0x20e   : > { %2656 = verf.f32 %v895_v61  ;;  %v763_v3 = vadd.f32 %v2662_v1, %v762_v25  ;;  %2386 = vmatmul.mubr.msk.f32.gmra.mrb[52].mxu1 %vm1102_vm0, %v1080_v58  ;;  %v1082_v8 = vmul.f32 %v1018_v59, %v826_v30  ;;  %v2668_v1 = vld [vmem:[%s3210_s28 + $0x20] sm:$0xff] }
 0x20f   : > { %v2647_v4 = vpop.eup %2646  ;;  %v1081_v5 = vmul.f32 %v1017_v0, %v825_v63  ;;  %v898_v6 = vmul.f32 0.70710677, %v768_v2  ;;  %v834_v37 = vmul.f32 0.5, %v768_v2  ;;  %v2667_v63 = vld [vmem:[%s3210_s28 + $0x28] sm:$0xff] }
 0x210   : > { %v2649_v7 = vpop.eup %2648  ;;  %v1020_v10 = vadd.f32 1.0, %v2647_v4  ;;  %v897_v9 = vmul.f32 0.70710677, %v763_v3  ;;  %v833_v60 = vmul.f32 0.5, %v763_v3 }
 0x211   : > { %v1019_v13 = vadd.f32 1.0, %v2649_v7  ;;  %2658 = verf.f32 %v898_v6  ;;  %2388 = vmatprep.mubr.msk.f32.mxu1 %vm1102_vm0, %v1081_v5  ;;  %v2669_v5 = vld [vmem:[%s3210_s28 + $0x38] sm:$0xff]  ;;  %v2670_v7 = vld [vmem:[%s3210_s28 + $0x30] sm:$0xff] }
 0x212   : > { %2660 = verf.f32 %v897_v9  ;;  %2389 = vmatmul.mubr.msk.f32.gmra.mrb[54].mxu1 %vm1102_vm0, %v1082_v8  ;;  %v1084_v17 = vmul.f32 %v1020_v10, %v828_v14  ;;  %v2671_v14 = vld [vmem:[%s3210_s28 + $0x48] sm:$0xff] }
 0x213   : > { %v2651_v40 = vpop.eup %2650  ;;  %v1083_v15 = vmul.f32 %v1019_v13, %v827_v12 }
 0x214   : > { %v2653_v16 = vpop.eup %2652  ;;  %v1022_v18 = vadd.f32 1.0, %v2651_v40 }
 0x215   : > { %v1021_v20 = vadd.f32 1.0, %v2653_v16  ;;  %2391 = vmatprep.mubr.msk.f32.mxu1 %vm1102_vm0, %v1083_v15  ;;  %v2672_v15 = vld [vmem:[%s3210_s28 + $0x40] sm:$0xff] }
 0x216   : > { %2392 = vmatmul.mubr.msk.f32.gmra.mrb[56].mxu1 %vm1102_vm0, %v1084_v17  ;;  %v1086_v50 = vmul.f32 %v1022_v18, %v830_v21  ;;  %v2673_v21 = vld [vmem:[%s3210_s28 + $0x58] sm:$0xff] }
 0x217   : > { %v2655_v22 = vpop.eup %2654  ;;  %v1085_v23 = vmul.f32 %v1021_v20, %v829_v19 }
 0x218   : > { %v2657_v24 = vpop.eup %2656  ;;  %v1024_v26 = vadd.f32 1.0, %v2655_v22 }
 0x219   : > { %v1023_v28 = vadd.f32 1.0, %v2657_v24  ;;  %2394 = vmatprep.mubr.msk.f32.mxu1 %vm1102_vm0, %v1085_v23  ;;  %v2674_v23 = vld [vmem:[%s3210_s28 + $0x50] sm:$0xff] }
 0x21a   : > { %2395 = vmatmul.mubr.msk.f32.gmra.mrb[58].mxu1 %vm1102_vm0, %v1086_v50  ;;  %v1088_v34 = vmul.f32 %v1024_v26, %v832_v29  ;;  %v2675_v29 = vld [vmem:[%s3210_s28 + $0x68] sm:$0xff] }
 0x21b   : > { %v2659_v31 = vpop.eup %2658  ;;  %v1087_v32 = vmul.f32 %v1023_v28, %v831_v27 }
 0x21c   : > { %v2661_v33 = vpop.eup %2660  ;;  %v1026_v35 = vadd.f32 1.0, %v2659_v31 }
 0x21d   : > { %v1025_v36 = vadd.f32 1.0, %v2661_v33  ;;  %2397 = vmatprep.mubr.msk.f32.mxu1 %vm1102_vm0, %v1087_v32  ;;  %v2676_v32 = vld [vmem:[%s3210_s28 + $0x60] sm:$0xff] }
 0x21e   : > { %2398 = vmatmul.mubr.msk.f32.gmra.mrb[60].mxu1 %vm1102_vm0, %v1088_v34  ;;  %v1090_v39 = vmul.f32 %v1026_v35, %v834_v37  ;;  %v2677_v37 = vld [vmem:[%s3210_s28 + $0x78] sm:$0xff] }
 0x21f   : > { %v1089_v38 = vmul.f32 %v1025_v36, %v833_v60 }
 0x221   : > { %2400 = vmatprep.mubr.msk.f32.mxu1 %vm1102_vm0, %v1089_v38 }
 0x222   : > { %2401 = vmatmul.mubr.msk.f32.gmra.mrb[62].mxu1 %vm1102_vm0, %v1090_v39  ;;  %v2678_v39 = vld [vmem:[%s3210_s28 + $0x70] sm:$0xff] }
 0x279   : > { %v2309_v42 = vpop.f32.mrb[0].mxu1 }
 0x27a   : > { %v1367_v43 = vadd.f32 %v2309_v42, %v3624_v41  ;;  %v1361_v44 = vpop.f32.mrb[1].mxu1 }
 0x27b   : > { %v1362_v45 = vadd.f32 %v3624_v41, %v1361_v44 }
 0x27c   : > { %v1681_v47 = vadd.f32 %v2663_v46, %v1367_v43 }
 0x27d   : > { %v1680_v49 = vadd.f32 %v2664_v48, %v1362_v45  ;;  %v2312_v11 = vpop.f32.mrb[2].mxu1 }
 0x27e   : > { %1745 = vst [vmem:[%s3632_s24 + $0x8] sm:$0xff] %v1681_v47  ;;  %v1377_v51 = vadd.f32 %v2312_v11, %v3624_v41  ;;  %v1371_v52 = vpop.f32.mrb[3].mxu1  ;;  %v2679_v47 = vld [vmem:[%s3210_s28 + $0x88] sm:$0xff] }
 0x27f   : > { %1744 = vst [vmem:[%s3632_s24] sm:$0xff] %v1680_v49  ;;  %v1372_v53 = vadd.f32 %v3624_v41, %v1371_v52  ;;  %v2680_v49 = vld [vmem:[%s3210_s28 + $0x80] sm:$0xff] }
 0x280   : > { %v1683_v55 = vadd.f32 %v2665_v54, %v1377_v51 }
 0x281   : > { %v1682_v57 = vadd.f32 %v2666_v56, %v1372_v53  ;;  %v2315_v58 = vpop.f32.mrb[4].mxu1 }
 0x282   : > { %1747 = vst [vmem:[%s3632_s24 + $0x18] sm:$0xff] %v1683_v55  ;;  %v1387_v59 = vadd.f32 %v2315_v58, %v3624_v41  ;;  %v1381_v61 = vpop.f32.mrb[5].mxu1  ;;  %v2681_v55 = vld [vmem:[%s3210_s28 + $0x98] sm:$0xff] }
 0x283   : > { %1746 = vst [vmem:[%s3632_s24 + $0x10] sm:$0xff] %v1682_v57  ;;  %v1382_v62 = vadd.f32 %v3624_v41, %v1381_v61  ;;  %v2682_v57 = vld [vmem:[%s3210_s28 + $0x90] sm:$0xff] }
 0x284   : > { %v1685_v0 = vadd.f32 %v2667_v63, %v1387_v59 }
 0x285   : > { %v1684_v2 = vadd.f32 %v2668_v1, %v1382_v62  ;;  %v2318_v25 = vpop.f32.mrb[6].mxu1 }
 0x286   : > { %1749 = vst [vmem:[%s3632_s24 + $0x28] sm:$0xff] %v1685_v0  ;;  %v1397_v30 = vadd.f32 %v2318_v25, %v3624_v41  ;;  %v1391_v3 = vpop.f32.mrb[7].mxu1  ;;  %v2683_v0 = vld [vmem:[%s3210_s28 + $0xa8] sm:$0xff] }
 0x287   : > { %1748 = vst [vmem:[%s3632_s24 + $0x20] sm:$0xff] %v1684_v2  ;;  %v1392_v4 = vadd.f32 %v3624_v41, %v1391_v3  ;;  %v2684_v2 = vld [vmem:[%s3210_s28 + $0xa0] sm:$0xff] }
 0x288   : > { %v1687_v6 = vadd.f32 %v2669_v5, %v1397_v30 }
 0x289   : > { %v1686_v8 = vadd.f32 %v2670_v7, %v1392_v4  ;;  %v2321_v10 = vpop.f32.mrb[8].mxu1 }
 0x28a   : > { %1751 = vst [vmem:[%s3632_s24 + $0x38] sm:$0xff] %v1687_v6  ;;  %v1407_v9 = vadd.f32 %v2321_v10, %v3624_v41  ;;  %v1401_v12 = vpop.f32.mrb[9].mxu1  ;;  %v2685_v6 = vld [vmem:[%s3210_s28 + $0xb8] sm:$0xff] }
 0x28b   : > { %1750 = vst [vmem:[%s3632_s24 + $0x30] sm:$0xff] %v1686_v8  ;;  %v1402_v13 = vadd.f32 %v3624_v41, %v1401_v12  ;;  %v2686_v8 = vld [vmem:[%s3210_s28 + $0xb0] sm:$0xff] }
 0x28c   : > { %v1689_v40 = vadd.f32 %v2671_v14, %v1407_v9 }
 0x28d   : > { %v1688_v16 = vadd.f32 %v2672_v15, %v1402_v13  ;;  %v2324_v17 = vpop.f32.mrb[10].mxu1 }
 0x28e   : > { %1753 = vst [vmem:[%s3632_s24 + $0x48] sm:$0xff] %v1689_v40  ;;  %v1417_v18 = vadd.f32 %v2324_v17, %v3624_v41  ;;  %v1411_v19 = vpop.f32.mrb[11].mxu1  ;;  %v2687_v40 = vld [vmem:[%s3210_s28 + $0xc8] sm:$0xff] }
 0x28f   : > { %1752 = vst [vmem:[%s3632_s24 + $0x40] sm:$0xff] %v1688_v16  ;;  %v1412_v20 = vadd.f32 %v3624_v41, %v1411_v19  ;;  %v2688_v16 = vld [vmem:[%s3210_s28 + $0xc0] sm:$0xff] }
 0x290   : > { %v1691_v22 = vadd.f32 %v2673_v21, %v1417_v18 }
 0x291   : > { %v1690_v24 = vadd.f32 %v2674_v23, %v1412_v20  ;;  %v2327_v50 = vpop.f32.mrb[12].mxu1 }
 0x292   : > { %1755 = vst [vmem:[%s3632_s24 + $0x58] sm:$0xff] %v1691_v22  ;;  %v1427_v26 = vadd.f32 %v2327_v50, %v3624_v41  ;;  %v1421_v27 = vpop.f32.mrb[13].mxu1  ;;  %v2689_v22 = vld [vmem:[%s3210_s28 + $0xd8] sm:$0xff] }
 0x293   : > { %1754 = vst [vmem:[%s3632_s24 + $0x50] sm:$0xff] %v1690_v24  ;;  %v1422_v28 = vadd.f32 %v3624_v41, %v1421_v27  ;;  %v2690_v24 = vld [vmem:[%s3210_s28 + $0xd0] sm:$0xff] }
 0x294   : > { %v1693_v31 = vadd.f32 %v2675_v29, %v1427_v26 }
 0x295   : > { %v1692_v33 = vadd.f32 %v2676_v32, %v1422_v28  ;;  %v2330_v34 = vpop.f32.mrb[14].mxu1 }
 0x296   : > { %1757 = vst [vmem:[%s3632_s24 + $0x68] sm:$0xff] %v1693_v31  ;;  %v1437_v35 = vadd.f32 %v2330_v34, %v3624_v41  ;;  %v1431_v60 = vpop.f32.mrb[15].mxu1  ;;  %v2691_v31 = vld [vmem:[%s3210_s28 + $0xe8] sm:$0xff] }
 0x297   : > { %1756 = vst [vmem:[%s3632_s24 + $0x60] sm:$0xff] %v1692_v33  ;;  %v1432_v36 = vadd.f32 %v3624_v41, %v1431_v60  ;;  %v2692_v33 = vld [vmem:[%s3210_s28 + $0xe0] sm:$0xff] }
 0x298   : > { %v1695_v38 = vadd.f32 %v2677_v37, %v1437_v35 }
 0x299   : > { %v1694_v42 = vadd.f32 %v2678_v39, %v1432_v36  ;;  %v2333_v43 = vpop.f32.mrb[16].mxu1 }
 0x29a   : > { %1759 = vst [vmem:[%s3632_s24 + $0x78] sm:$0xff] %v1695_v38  ;;  %v1447_v44 = vadd.f32 %v2333_v43, %v3624_v41  ;;  %v1441_v45 = vpop.f32.mrb[17].mxu1  ;;  %v2693_v38 = vld [vmem:[%s3210_s28 + $0xf8] sm:$0xff] }
 0x29b   : > { %1758 = vst [vmem:[%s3632_s24 + $0x70] sm:$0xff] %v1694_v42  ;;  %v1442_v46 = vadd.f32 %v3624_v41, %v1441_v45  ;;  %v2694_v42 = vld [vmem:[%s3210_s28 + $0xf0] sm:$0xff] }
 0x29c   : > { %v1697_v48 = vadd.f32 %v2679_v47, %v1447_v44 }
 0x29d   : > { %v1696_v11 = vadd.f32 %v2680_v49, %v1442_v46  ;;  %v2336_v51 = vpop.f32.mrb[18].mxu1 }
 0x29e   : > { %1761 = vst [vmem:[%s3632_s24 + $0x88] sm:$0xff] %v1697_v48  ;;  %v1457_v52 = vadd.f32 %v2336_v51, %v3624_v41  ;;  %v1451_v53 = vpop.f32.mrb[19].mxu1  ;;  %v2695_v48 = vld [vmem:[%s3210_s28 + $0x108] sm:$0xff] }
 0x29f   : > { %1760 = vst [vmem:[%s3632_s24 + $0x80] sm:$0xff] %v1696_v11  ;;  %v1452_v54 = vadd.f32 %v3624_v41, %v1451_v53  ;;  %v2696_v11 = vld [vmem:[%s3210_s28 + $0x100] sm:$0xff] }
 0x2a0   : > { %v1699_v56 = vadd.f32 %v2681_v55, %v1457_v52 }
 0x2a1   : > { %v1698_v58 = vadd.f32 %v2682_v57, %v1452_v54  ;;  %v2339_v59 = vpop.f32.mrb[20].mxu1 }
 0x2a2   : > { %1763 = vst [vmem:[%s3632_s24 + $0x98] sm:$0xff] %v1699_v56  ;;  %v1467_v61 = vadd.f32 %v2339_v59, %v3624_v41  ;;  %v1461_v62 = vpop.f32.mrb[21].mxu1  ;;  %v2697_v56 = vld [vmem:[%s3210_s28 + $0x118] sm:$0xff] }
 0x2a3   : > { %1762 = vst [vmem:[%s3632_s24 + $0x90] sm:$0xff] %v1698_v58  ;;  %v1462_v63 = vadd.f32 %v3624_v41, %v1461_v62  ;;  %v2698_v58 = vld [vmem:[%s3210_s28 + $0x110] sm:$0xff] }
 0x2a4   : > { %v1701_v1 = vadd.f32 %v2683_v0, %v1467_v61 }
 0x2a5   : > { %v1700_v25 = vadd.f32 %v2684_v2, %v1462_v63  ;;  %v2342_v30 = vpop.f32.mrb[22].mxu1 }
 0x2a6   : > { %1765 = vst [vmem:[%s3632_s24 + $0xa8] sm:$0xff] %v1701_v1  ;;  %v1477_v3 = vadd.f32 %v2342_v30, %v3624_v41  ;;  %v1471_v4 = vpop.f32.mrb[23].mxu1  ;;  %v2699_v1 = vld [vmem:[%s3210_s28 + $0x128] sm:$0xff] }
 0x2a7   : > { %1764 = vst [vmem:[%s3632_s24 + $0xa0] sm:$0xff] %v1700_v25  ;;  %v1472_v5 = vadd.f32 %v3624_v41, %v1471_v4  ;;  %v2700_v25 = vld [vmem:[%s3210_s28 + $0x120] sm:$0xff] }
 0x2a8   : > { %v1703_v7 = vadd.f32 %v2685_v6, %v1477_v3 }
 0x2a9   : > { %v1702_v10 = vadd.f32 %v2686_v8, %v1472_v5  ;;  %v2345_v9 = vpop.f32.mrb[24].mxu1 }
 0x2aa   : > { %1767 = vst [vmem:[%s3632_s24 + $0xb8] sm:$0xff] %v1703_v7  ;;  %v1487_v12 = vadd.f32 %v2345_v9, %v3624_v41  ;;  %v1481_v13 = vpop.f32.mrb[25].mxu1  ;;  %v2701_v7 = vld [vmem:[%s3210_s28 + $0x138] sm:$0xff] }
 0x2ab   : > { %1766 = vst [vmem:[%s3632_s24 + $0xb0] sm:$0xff] %v1702_v10  ;;  %v1482_v14 = vadd.f32 %v3624_v41, %v1481_v13  ;;  %v2702_v10 = vld [vmem:[%s3210_s28 + $0x130] sm:$0xff] }
 0x2ac   : > { %v1705_v15 = vadd.f32 %v2687_v40, %v1487_v12 }
 0x2ad   : > { %v1704_v17 = vadd.f32 %v2688_v16, %v1482_v14  ;;  %v2348_v18 = vpop.f32.mrb[26].mxu1 }
 0x2ae   : > { %1769 = vst [vmem:[%s3632_s24 + $0xc8] sm:$0xff] %v1705_v15  ;;  %v1497_v19 = vadd.f32 %v2348_v18, %v3624_v41  ;;  %v1491_v20 = vpop.f32.mrb[27].mxu1  ;;  %v2703_v15 = vld [vmem:[%s3210_s28 + $0x148] sm:$0xff] }
 0x2af   : > { %1768 = vst [vmem:[%s3632_s24 + $0xc0] sm:$0xff] %v1704_v17  ;;  %v1492_v21 = vadd.f32 %v3624_v41, %v1491_v20  ;;  %v2704_v17 = vld [vmem:[%s3210_s28 + $0x140] sm:$0xff] }
 0x2b0   : > { %v1707_v23 = vadd.f32 %v2689_v22, %v1497_v19 }
 0x2b1   : > { %v1706_v50 = vadd.f32 %v2690_v24, %v1492_v21  ;;  %v2351_v26 = vpop.f32.mrb[28].mxu1 }
 0x2b2   : > { %1771 = vst [vmem:[%s3632_s24 + $0xd8] sm:$0xff] %v1707_v23  ;;  %v1507_v27 = vadd.f32 %v2351_v26, %v3624_v41  ;;  %v1501_v28 = vpop.f32.mrb[29].mxu1  ;;  %v2705_v23 = vld [vmem:[%s3210_s28 + $0x158] sm:$0xff] }
 0x2b3   : > { %1770 = vst [vmem:[%s3632_s24 + $0xd0] sm:$0xff] %v1706_v50  ;;  %v1502_v29 = vadd.f32 %v3624_v41, %v1501_v28  ;;  %v2706_v50 = vld [vmem:[%s3210_s28 + $0x150] sm:$0xff] }
 0x2b4   : > { %v1709_v32 = vadd.f32 %v2691_v31, %v1507_v27 }
 0x2b5   : > { %v1708_v34 = vadd.f32 %v2692_v33, %v1502_v29  ;;  %v2354_v35 = vpop.f32.mrb[30].mxu1 }
 0x2b6   : > { %1773 = vst [vmem:[%s3632_s24 + $0xe8] sm:$0xff] %v1709_v32  ;;  %v1517_v60 = vadd.f32 %v2354_v35, %v3624_v41  ;;  %v1511_v36 = vpop.f32.mrb[31].mxu1  ;;  %v2707_v32 = vld [vmem:[%s3210_s28 + $0x168] sm:$0xff] }
 0x2b7   : > { %1772 = vst [vmem:[%s3632_s24 + $0xe0] sm:$0xff] %v1708_v34  ;;  %v1512_v37 = vadd.f32 %v3624_v41, %v1511_v36  ;;  %v2708_v34 = vld [vmem:[%s3210_s28 + $0x160] sm:$0xff] }
 0x2b8   : > { %v1711_v39 = vadd.f32 %v2693_v38, %v1517_v60 }
 0x2b9   : > { %v1710_v43 = vadd.f32 %v2694_v42, %v1512_v37  ;;  %v2357_v44 = vpop.f32.mrb[32].mxu1 }
 0x2ba   : > { %1775 = vst [vmem:[%s3632_s24 + $0xf8] sm:$0xff] %v1711_v39  ;;  %v1527_v45 = vadd.f32 %v2357_v44, %v3624_v41  ;;  %v1521_v46 = vpop.f32.mrb[33].mxu1  ;;  %v2709_v39 = vld [vmem:[%s3210_s28 + $0x178] sm:$0xff] }
 0x2bb   : > { %1774 = vst [vmem:[%s3632_s24 + $0xf0] sm:$0xff] %v1710_v43  ;;  %v1522_v47 = vadd.f32 %v3624_v41, %v1521_v46  ;;  %v2710_v43 = vld [vmem:[%s3210_s28 + $0x170] sm:$0xff] }
 0x2bc   : > { %v1713_v49 = vadd.f32 %v2695_v48, %v1527_v45 }
 0x2bd   : > { %v1712_v51 = vadd.f32 %v2696_v11, %v1522_v47  ;;  %v2360_v52 = vpop.f32.mrb[34].mxu1 }
 0x2be   : > { %1777 = vst [vmem:[%s3632_s24 + $0x108] sm:$0xff] %v1713_v49  ;;  %v1537_v53 = vadd.f32 %v2360_v52, %v3624_v41  ;;  %v1531_v54 = vpop.f32.mrb[35].mxu1  ;;  %v2711_v49 = vld [vmem:[%s3210_s28 + $0x188] sm:$0xff] }
 0x2bf   : > { %1776 = vst [vmem:[%s3632_s24 + $0x100] sm:$0xff] %v1712_v51  ;;  %v1532_v55 = vadd.f32 %v3624_v41, %v1531_v54  ;;  %v2712_v51 = vld [vmem:[%s3210_s28 + $0x180] sm:$0xff] }
 0x2c0   : > { %v1715_v57 = vadd.f32 %v2697_v56, %v1537_v53 }
 0x2c1   : > { %v1714_v59 = vadd.f32 %v2698_v58, %v1532_v55  ;;  %v2363_v61 = vpop.f32.mrb[36].mxu1 }
 0x2c2   : > { %1779 = vst [vmem:[%s3632_s24 + $0x118] sm:$0xff] %v1715_v57  ;;  %v1547_v62 = vadd.f32 %v2363_v61, %v3624_v41  ;;  %v1541_v63 = vpop.f32.mrb[37].mxu1  ;;  %v2713_v57 = vld [vmem:[%s3210_s28 + $0x198] sm:$0xff] }
 0x2c3   : > { %1778 = vst [vmem:[%s3632_s24 + $0x110] sm:$0xff] %v1714_v59  ;;  %v1542_v0 = vadd.f32 %v3624_v41, %v1541_v63  ;;  %v2714_v59 = vld [vmem:[%s3210_s28 + $0x190] sm:$0xff] }
 0x2c4   : > { %v1717_v2 = vadd.f32 %v2699_v1, %v1547_v62 }
 0x2c5   : > { %v1716_v30 = vadd.f32 %v2700_v25, %v1542_v0  ;;  %v2366_v3 = vpop.f32.mrb[38].mxu1 }
 0x2c6   : > { %1781 = vst [vmem:[%s3632_s24 + $0x128] sm:$0xff] %v1717_v2  ;;  %v1557_v4 = vadd.f32 %v2366_v3, %v3624_v41  ;;  %v1551_v5 = vpop.f32.mrb[39].mxu1  ;;  %v2715_v2 = vld [vmem:[%s3210_s28 + $0x1a8] sm:$0xff] }
 0x2c7   : > { %1780 = vst [vmem:[%s3632_s24 + $0x120] sm:$0xff] %v1716_v30  ;;  %v1552_v6 = vadd.f32 %v3624_v41, %v1551_v5  ;;  %v2716_v30 = vld [vmem:[%s3210_s28 + $0x1a0] sm:$0xff] }
 0x2c8   : > { %v1719_v8 = vadd.f32 %v2701_v7, %v1557_v4 }
 0x2c9   : > { %v1718_v9 = vadd.f32 %v2702_v10, %v1552_v6  ;;  %v2369_v12 = vpop.f32.mrb[40].mxu1 }
 0x2ca   : > { %1783 = vst [vmem:[%s3632_s24 + $0x138] sm:$0xff] %v1719_v8  ;;  %v1567_v13 = vadd.f32 %v2369_v12, %v3624_v41  ;;  %v1561_v14 = vpop.f32.mrb[41].mxu1  ;;  %v2717_v8 = vld [vmem:[%s3210_s28 + $0x1b8] sm:$0xff] }
 0x2cb   : > { %1782 = vst [vmem:[%s3632_s24 + $0x130] sm:$0xff] %v1718_v9  ;;  %v1562_v40 = vadd.f32 %v3624_v41, %v1561_v14  ;;  %v2718_v9 = vld [vmem:[%s3210_s28 + $0x1b0] sm:$0xff] }
 0x2cc   : > { %v1721_v16 = vadd.f32 %v2703_v15, %v1567_v13 }
 0x2cd   : > { %v1720_v18 = vadd.f32 %v2704_v17, %v1562_v40  ;;  %v2372_v19 = vpop.f32.mrb[42].mxu1 }
 0x2ce   : > { %1785 = vst [vmem:[%s3632_s24 + $0x148] sm:$0xff] %v1721_v16  ;;  %v1577_v20 = vadd.f32 %v2372_v19, %v3624_v41  ;;  %v1571_v21 = vpop.f32.mrb[43].mxu1  ;;  %v2719_v16 = vld [vmem:[%s3210_s28 + $0x1c8] sm:$0xff] }
 0x2cf   : > { %1784 = vst [vmem:[%s3632_s24 + $0x140] sm:$0xff] %v1720_v18  ;;  %v1572_v22 = vadd.f32 %v3624_v41, %v1571_v21  ;;  %v2720_v18 = vld [vmem:[%s3210_s28 + $0x1c0] sm:$0xff] }
 0x2d0   : > { %v1723_v24 = vadd.f32 %v2705_v23, %v1577_v20 }
 0x2d1   : > { %v1722_v26 = vadd.f32 %v2706_v50, %v1572_v22  ;;  %v2375_v27 = vpop.f32.mrb[44].mxu1 }
 0x2d2   : > { %1787 = vst [vmem:[%s3632_s24 + $0x158] sm:$0xff] %v1723_v24  ;;  %v1587_v28 = vadd.f32 %v2375_v27, %v3624_v41  ;;  %v1581_v29 = vpop.f32.mrb[45].mxu1  ;;  %v2721_v24 = vld [vmem:[%s3210_s28 + $0x1d8] sm:$0xff] }
 0x2d3   : > { %1786 = vst [vmem:[%s3632_s24 + $0x150] sm:$0xff] %v1722_v26  ;;  %v1582_v31 = vadd.f32 %v3624_v41, %v1581_v29  ;;  %v2722_v26 = vld [vmem:[%s3210_s28 + $0x1d0] sm:$0xff] }
 0x2d4   : > { %v1725_v33 = vadd.f32 %v2707_v32, %v1587_v28 }
 0x2d5   : > { %v1724_v35 = vadd.f32 %v2708_v34, %v1582_v31  ;;  %v2378_v60 = vpop.f32.mrb[46].mxu1 }
 0x2d6   : > { %1789 = vst [vmem:[%s3632_s24 + $0x168] sm:$0xff] %v1725_v33  ;;  %v1597_v36 = vadd.f32 %v2378_v60, %v3624_v41  ;;  %v1591_v37 = vpop.f32.mrb[47].mxu1  ;;  %v2723_v33 = vld [vmem:[%s3210_s28 + $0x1e8] sm:$0xff] }
 0x2d7   : > { %1788 = vst [vmem:[%s3632_s24 + $0x160] sm:$0xff] %v1724_v35  ;;  %v1592_v38 = vadd.f32 %v3624_v41, %v1591_v37  ;;  %v2724_v35 = vld [vmem:[%s3210_s28 + $0x1e0] sm:$0xff] }
 0x2d8   : > { %v1727_v42 = vadd.f32 %v2709_v39, %v1597_v36 }
 0x2d9   : > { %v1726_v44 = vadd.f32 %v2710_v43, %v1592_v38  ;;  %v2381_v45 = vpop.f32.mrb[48].mxu1 }
 0x2da   : > { %1791 = vst [vmem:[%s3632_s24 + $0x178] sm:$0xff] %v1727_v42  ;;  %v1607_v46 = vadd.f32 %v2381_v45, %v3624_v41  ;;  %v1601_v47 = vpop.f32.mrb[49].mxu1  ;;  %v2725_v42 = vld [vmem:[%s3210_s28 + $0x1f8] sm:$0xff] }
 0x2db   : > { %1790 = vst [vmem:[%s3632_s24 + $0x170] sm:$0xff] %v1726_v44  ;;  %v1602_v48 = vadd.f32 %v3624_v41, %v1601_v47  ;;  %v2726_v44 = vld [vmem:[%s3210_s28 + $0x1f0] sm:$0xff] }
 0x2dc   : > { %v1729_v11 = vadd.f32 %v2711_v49, %v1607_v46 }
 0x2dd   : > { %v1728_v52 = vadd.f32 %v2712_v51, %v1602_v48  ;;  %v2384_v53 = vpop.f32.mrb[50].mxu1 }
 0x2de   : > { %1793 = vst [vmem:[%s3632_s24 + $0x188] sm:$0xff] %v1729_v11  ;;  %v1617_v54 = vadd.f32 %v2384_v53, %v3624_v41  ;;  %v1611_v55 = vpop.f32.mrb[51].mxu1 }
 0x2df   : > { %1792 = vst [vmem:[%s3632_s24 + $0x180] sm:$0xff] %v1728_v52  ;;  %v1612_v56 = vadd.f32 %v3624_v41, %v1611_v55 }
 0x2e0   : > { %v1731_v58 = vadd.f32 %v2713_v57, %v1617_v54 }
 0x2e1   : > { %v1730_v61 = vadd.f32 %v2714_v59, %v1612_v56  ;;  %v2387_v62 = vpop.f32.mrb[52].mxu1 }
 0x2e2   : > { %1795 = vst [vmem:[%s3632_s24 + $0x198] sm:$0xff] %v1731_v58  ;;  %v1627_v63 = vadd.f32 %v2387_v62, %v3624_v41  ;;  %v1621_v0 = vpop.f32.mrb[53].mxu1 }
 0x2e3   : > { %1794 = vst [vmem:[%s3632_s24 + $0x190] sm:$0xff] %v1730_v61  ;;  %v1622_v1 = vadd.f32 %v3624_v41, %v1621_v0 }
 0x2e4   : > { %v1733_v25 = vadd.f32 %v2715_v2, %v1627_v63 }
 0x2e5   : > { %v1732_v3 = vadd.f32 %v2716_v30, %v1622_v1  ;;  %v2390_v4 = vpop.f32.mrb[54].mxu1 }
 0x2e6   : > { %1797 = vst [vmem:[%s3632_s24 + $0x1a8] sm:$0xff] %v1733_v25  ;;  %v1637_v5 = vadd.f32 %v2390_v4, %v3624_v41  ;;  %v1631_v6 = vpop.f32.mrb[55].mxu1 }
 0x2e7   : > { %1796 = vst [vmem:[%s3632_s24 + $0x1a0] sm:$0xff] %v1732_v3  ;;  %v1632_v7 = vadd.f32 %v3624_v41, %v1631_v6 }
 0x2e8   : > { %v1735_v10 = vadd.f32 %v2717_v8, %v1637_v5 }
 0x2e9   : > { %v1734_v12 = vadd.f32 %v2718_v9, %v1632_v7  ;;  %v2393_v13 = vpop.f32.mrb[56].mxu1 }
 0x2ea   : > { %1799 = vst [vmem:[%s3632_s24 + $0x1b8] sm:$0xff] %v1735_v10  ;;  %v1647_v14 = vadd.f32 %v2393_v13, %v3624_v41  ;;  %v1641_v40 = vpop.f32.mrb[57].mxu1 }
 0x2eb   : > { %1798 = vst [vmem:[%s3632_s24 + $0x1b0] sm:$0xff] %v1734_v12  ;;  %v1642_v15 = vadd.f32 %v3624_v41, %v1641_v40 }
 0x2ec   : > { %v1737_v17 = vadd.f32 %v2719_v16, %v1647_v14 }
 0x2ed   : > { %v1736_v19 = vadd.f32 %v2720_v18, %v1642_v15  ;;  %v2396_v20 = vpop.f32.mrb[58].mxu1 }
 0x2ee   : > { %1801 = vst [vmem:[%s3632_s24 + $0x1c8] sm:$0xff] %v1737_v17  ;;  %v1657_v21 = vadd.f32 %v2396_v20, %v3624_v41  ;;  %v1651_v22 = vpop.f32.mrb[59].mxu1 }
 0x2ef   : > { %1800 = vst [vmem:[%s3632_s24 + $0x1c0] sm:$0xff] %v1736_v19  ;;  %v1652_v23 = vadd.f32 %v3624_v41, %v1651_v22 }
 0x2f0   : > { %v1739_v50 = vadd.f32 %v2721_v24, %v1657_v21 }
 0x2f1   : > { %v1738_v27 = vadd.f32 %v2722_v26, %v1652_v23  ;;  %v2399_v28 = vpop.f32.mrb[60].mxu1 }
 0x2f2   : > { %1803 = vst [vmem:[%s3632_s24 + $0x1d8] sm:$0xff] %v1739_v50  ;;  %v1667_v29 = vadd.f32 %v2399_v28, %v3624_v41  ;;  %v1661_v31 = vpop.f32.mrb[61].mxu1 }
 0x2f3   : > { %1802 = vst [vmem:[%s3632_s24 + $0x1d0] sm:$0xff] %v1738_v27  ;;  %v1662_v32 = vadd.f32 %v3624_v41, %v1661_v31 }
 0x2f4   : > { %v1741_v34 = vadd.f32 %v2723_v33, %v1667_v29 }
 0x2f5   : > { %v1740_v60 = vadd.f32 %v2724_v35, %v1662_v32  ;;  %v2402_v36 = vpop.f32.mrb[62].mxu1 }
 0x2f6   : > { %1805 = vst [vmem:[%s3632_s24 + $0x1e8] sm:$0xff] %v1741_v34  ;;  %v1677_v37 = vadd.f32 %v2402_v36, %v3624_v41  ;;  %v1671_v38 = vpop.f32.mrb[63].mxu1 }
 0x2f7   : > { %1804 = vst [vmem:[%s3632_s24 + $0x1e0] sm:$0xff] %v1740_v60  ;;  %v1672_v39 = vadd.f32 %v3624_v41, %v1671_v38 }
 0x2f8   : > { %v1743_v43 = vadd.f32 %v2725_v42, %v1677_v37 }
 0x2f9   : > { %v1742_v45 = vadd.f32 %v2726_v44, %v1672_v39 }
 0x2fa   : > { %1807 = vst [vmem:[%s3632_s24 + $0x1f8] sm:$0xff] %v1743_v43 }
 0x2fb   : > { %1806 = vst [vmem:[%s3632_s24 + $0x1f0] sm:$0xff] %v1742_v45 }
 0x2fc   : > { %2882 = shalt.err (!%p2879_p12)
}
 0x2fd   : > { %s2883_s29 = scalar_lea.hbm %s3824_s6, 8192  ;;  %s2887_s13 = scalar_lea.hbm %s3877_s5, 32768 }
 0x2fe   : > { %p2884_p9 = scmp.ne.s32.totalorder %s3824_s6, %s2883_s29  ;;  %p2888_p6 = scmp.lt.u32.totalorder %s3824_s6, %s3877_s5 }
 0x2ff   : > { %p2889_p4 = scmp.lt.u32.totalorder %s2887_s13, %s2883_s29  ;;  %p2891_p3 = scmp.lt.u32.totalorder %s2883_s29, %s3824_s6 }
 0x300   : > { %p2885_p13 = pnand %p2884_p9, %p3149_p0 }
 0x301   : > { %p2890_p8 = por %p2889_p4, %p2888_p6 }
 0x302   : > { %p2886_p10 = pneg %p2885_p13 }
 0x303   : > { %p2892_p5 = por %p2891_p3, %p2890_p8 }
 0x305   : > { %p2893_p7 = pnand %p2892_p5, %p2886_p10 }
 0x307   : > { %2896 = shalt.err (!%p2893_p7)
}
 0x308   : > { %s2953_s26 = smov 128   ;;  %s2954_s27 = smov 8  }
 0x309   : > { %2461 = dma.vmem_to_hbm [thread:$0]  (%p3149_p0), %s3826_s23, 8192, %s3824_s6, %s1809_s22, %s2953_s26, %s2953_s26, %s2954_s27  }
 0x30a PF: > { %p2493_p11 = scmp.ge.s32.totalorder %s2943_s21, 2  ;;  %s1837_s16 = sand.u32 1, %s2931_s18  }
 0x30b   : > { %p3895_p1 = scmp.ne.s32.totalorder %s3882_s25, 0  ;;  %s1838_s17 = scalar_lea.sflag [#allocation4], %s1837_s16 }
 0x30d   : > { %p2481_p2 = pnand %p2493_p11, %p3895_p1 }
 0x30f   : > { %2926 = dma.done.wait (!%p2481_p2), %s1838_s17, 8192  }
 0x310   : > { %2928 = vsyncadd (!%p2481_p2), %s1838_s17, 4294959104  ;;  %p20_p12 = scmp.ge.s32.totalorder %s3139_s14, 6   ;;  %s3896_s18 = smov %s2935_s19 }
 0x311   : > { %s3897_s19 = smov %s2939_s20  ;;  %s3898_s20 = smov %s3155_s10 }
 0x312   : > { %s3899_s21 = smov %s3139_s14  ;;  %22 = sbr.rel (!%p20_p12) target bundleno = 7 (0x7), region = 101 }
 0x319   :  { %1843 = vsyncpa [#allocation3], 1 }
 0x31a   :  { %1845 = vsyncpa [#allocation3 + $0x1], 1 }
 0x31b   :  { %1846 = vsyncpa [#allocation6], 1 }
 0x31c   :  { %1847 = vsyncpa [#allocation9], 1 }
 0x31d   :  { %1848 = vsyncpa [#allocation4], 1 }
 0x31e   :  { %1850 = vsyncpa [#allocation4 + $0x1], 1 }

</bundles_post_ra>
